<compile_context>
chip_gen: v6e
topology: v6e:2x2x1
jax: 0.10.0
libtpu: 0.0.40
codegen_flags: <defaults>
</compile_context>

<pallas_src>
import functools

import jax
import jax.numpy as jnp
from jax import lax
from jax.experimental import pallas as pl
from jax.experimental.pallas import tpu as pltpu

N_EMBED = 480
BLOCK_SIZE = 256   # causal-mask buffer size in the torch module (only T <= 256 used)
LN_EPS = 1e-5      # torch.nn.LayerNorm default eps


def _layer_norm(v, gamma, beta):
    mu = jnp.mean(v, axis=-1, keepdims=True)
    var = jnp.mean(jnp.square(v - mu), axis=-1, keepdims=True)
    return (v - mu) * lax.rsqrt(var + LN_EPS) * gamma + beta


def _block_kernel(num_heads, head_pad,
                  x_ref, ln1_g_ref, ln1_b_ref,
                  wqkv_ref, wproj_ref, bproj_ref,
                  ln2_g_ref, ln2_b_ref,
                  w1_ref, b1_ref, w2_ref, b2_ref,
                  o_ref):
    """One grid step == G batch rows: the full transformer Block in VMEM."""
    G, T, C = x_ref.shape
    Hp = num_heads * head_pad
    hp = head_pad

    # Flatten the G batch rows so every dense matmul feeds G*T rows to the MXU.
    x = x_ref[...].reshape(G * T, C)                              # f32

    # ---- LayerNorm 1 + fused QKV projection (all heads, one MXU matmul) ----
    h1 = _layer_norm(x, ln1_g_ref[...], ln1_b_ref[...])           # (G*T, C) f32
    # w_qkv already carries the C**-0.5 scale folded into its Q columns and is
    # pre-cast to bf16 (one-time packing, not per call).
    qkv = jnp.dot(h1.astype(jnp.bfloat16), wqkv_ref[...],
                  preferred_element_type=jnp.float32)             # (G*T, 3*Hp) f32

    row_i = lax.broadcasted_iota(jnp.int32, (T, T), 0)
    col_i = lax.broadcasted_iota(jnp.int32, (T, T), 1)
    causal = row_i >= col_i                                       # == tril[:T,:T]

    # ---- per-(batch-row, head) causal softmax-attention ----
    # Every slice below starts at a multiple of 128 lanes / 8 sublanes -> free.
    cat_rows = []
    for g in range(G):
        r0 = g * T
        head_outs = []
        for h in range(num_heads):
            c0 = h * hp
            q = qkv[r0:r0 + T, c0:c0 + hp]                        # (T, 128) f32
            k = qkv[r0:r0 + T, Hp + c0:Hp + c0 + hp]
            v = qkv[r0:r0 + T, 2 * Hp + c0:2 * Hp + c0 + hp]
            # Contract over the padded head dim directly (no materialized k.T).
            # Pad columns are exactly zero in q and k, so they add nothing.
            s = lax.dot_general(q.astype(jnp.bfloat16), k.astype(jnp.bfloat16),
                                dimension_numbers=(((1,), (1,)), ((), ())),
                                preferred_element_type=jnp.float32)
            # Large finite negative instead of -inf (robust if a row were ever
            # fully masked); exp underflows to exactly 0 either way.
            s = jnp.where(causal, s, -1e30)
            s = s - jnp.max(s, axis=-1, keepdims=True)
            e = jnp.exp(s)
            p = e * pl.reciprocal(jnp.sum(e, axis=-1, keepdims=True), approx=True)
            head_outs.append(
                jnp.dot(p.astype(jnp.bfloat16), v.astype(jnp.bfloat16),
                        preferred_element_type=jnp.float32))      # (T, 128)
        cat_rows.append(jnp.concatenate(head_outs, axis=-1))      # (T, Hp)
    cat = jnp.concatenate(cat_rows, axis=0)                       # (G*T, Hp)

    # ---- output projection + residual (pad rows of w_proj are zero) ----
    sa = jnp.dot(cat.astype(jnp.bfloat16), wproj_ref[...],
                 preferred_element_type=jnp.float32) + bproj_ref[...]
    x1 = x + sa

    # ---- LayerNorm 2 + FeedForward (Linear -> ReLU -> Linear) + residual ----
    h2 = _layer_norm(x1, ln2_g_ref[...], ln2_b_ref[...])
    hid = jnp.dot(h2.astype(jnp.bfloat16), w1_ref[...],
                  preferred_element_type=jnp.float32) + b1_ref[...]
    hid = jnp.maximum(hid, 0.0)
    ff = jnp.dot(hid.astype(jnp.bfloat16), w2_ref[...],
                 preferred_element_type=jnp.float32) + b2_ref[...]

    o_ref[...] = (x1 + ff).reshape(G, T, C).astype(o_ref.dtype)


def pack_block_params(params, num_heads):
    """ONE-TIME weight preparation (call once, reuse forever).

    * Per-head Q/K/V weights -> one lane-dense (C, 3*H*128) bf16 matrix.
      Each head occupies a zero-padded 128-wide column slab; the C**-0.5
      attention scale (the torch module uses n_embed, not head_size) is folded
      into the Q columns.
    * w_proj rows are zero-padded to match the padded head layout.
    * FFN weights are pre-cast to bf16 (MXU operand dtype).
    """
    E = params["w_proj"].shape[0]
    hs = E // num_heads
    hp = ((hs + 127) // 128) * 128          # 80 -> 128, lane-aligned head slab
    Hp = num_heads * hp
    cdt = jnp.bfloat16
    scale = E ** (-0.5)                     # NOTE: n_embed**-0.5, per the module

    def pack_heads(w, s=1.0):               # (H, E, hs) -> (E, Hp), zero-padded
        out = jnp.zeros((E, Hp), jnp.float32)
        for h in range(num_heads):
            out = out.at[:, h * hp:h * hp + hs].set(w[h] * s)
        return out

    w_qkv = jnp.concatenate([pack_heads(params["wq"], scale),
                             pack_heads(params["wk"]),
                             pack_heads(params["wv"])], axis=-1).astype(cdt)

    w_proj = jnp.zeros((Hp, E), jnp.float32)     # pad rows MUST stay zero
    for h in range(num_heads):
        w_proj = w_proj.at[h * hp:h * hp + hs, :].set(
            params["w_proj"][h * hs:(h + 1) * hs, :])
    w_proj = w_proj.astype(cdt)

    return dict(
        ln1_g=params["ln1_g"], ln1_b=params["ln1_b"],
        w_qkv=w_qkv, w_proj=w_proj, b_proj=params["b_proj"],
        ln2_g=params["ln2_g"], ln2_b=params["ln2_b"],
        w1=params["w1"].astype(cdt), b1=params["b1"],
        w2=params["w2"].astype(cdt), b2=params["b2"],
    )


def _pick_rows_per_step(B, T, target_rows=128):
    """Largest G | B with G*T near `target_rows`, keeping >=2 grid steps
    (so v7x's two TensorCores both get work on the parallel axis)."""
    best = 1
    for g in range(1, B + 1):
        if B % g:
            continue
        if B >= 2 and B // g < 2:
            continue
        best = g
        if g * T >= target_rows:
            break
    return best


@functools.partial(jax.jit, static_argnames=("num_heads",))
def block_forward(x, packed, *, num_heads):
    B, T, C = x.shape
    hp = packed["w_proj"].shape[0] // num_heads
    G = _pick_rows_per_step(B, T)

    args = (x,
            packed["ln1_g"], packed["ln1_b"],
            packed["w_qkv"], packed["w_proj"], packed["b_proj"],
            packed["ln2_g"], packed["ln2_b"],
            packed["w1"], packed["b1"], packed["w2"], packed["b2"])

    def full_spec(a):
        # Whole array, same block every grid step -> single DMA; weights never
        # change across steps, so single-buffer them (saves ~half the VMEM).
        return pl.BlockSpec(a.shape, lambda b, _nd=a.ndim: (0,) * _nd,
                            pipeline_mode=pl.Buffered(1))

    in_specs = [pl.BlockSpec((G, T, C), lambda b: (b, 0, 0))]
    in_specs += [full_spec(a) for a in args[1:]]

    return pl.pallas_call(
        functools.partial(_block_kernel, num_heads, hp),
        out_shape=jax.ShapeDtypeStruct((B, T, C), x.dtype),
        grid=(B // G,),
        in_specs=in_specs,
        out_specs=pl.BlockSpec((G, T, C), lambda b: (b, 0, 0)),
        compiler_params=pltpu.CompilerParams(
            dimension_semantics=("parallel",)),
    )(*args)


def _reference(x, p, num_heads):
    """Plain-JAX f32 replica of the torch Block.forward (correctness check)."""
    B, T, C = x.shape

    def ln(v, g, b):
        mu = jnp.mean(v, axis=-1, keepdims=True)
        var = jnp.mean(jnp.square(v - mu), axis=-1, keepdims=True)
        return (v - mu) * lax.rsqrt(var + LN_EPS) * g + b

    tril = jnp.tril(jnp.ones((T, T), jnp.float32))
    h1 = ln(x, p["ln1_g"], p["ln1_b"])
    outs = []
    for h in range(num_heads):
        q = h1 @ p["wq"][h]
        k = h1 @ p["wk"][h]
        v = h1 @ p["wv"][h]
        wei = (q @ jnp.swapaxes(k, -2, -1)) * C ** (-0.5)
        wei = jnp.where(tril == 0, -jnp.inf, wei)
        wei = jax.nn.softmax(wei, axis=-1)
        outs.append(wei @ v)
    sa = jnp.concatenate(outs, axis=-1) @ p["w_proj"] + p["b_proj"]
    x1 = x + sa
    h2 = ln(x1, p["ln2_g"], p["ln2_b"])
    ff = jnp.maximum(h2 @ p["w1"] + p["b1"], 0.0) @ p["w2"] + p["b2"]
    return x1 + ff


if __name__ == "__main__":
    # Shapes consistent with the module: n_embed = 480 is fixed by the code.
    B, T = 2, 8
    E = N_EMBED
    num_heads = 6
    head_size = E // num_heads          # 80

    key = jax.random.PRNGKey(0)
    ks = jax.random.split(key, 12)

    def normal(k, shape, scale=1.0):
        return jax.random.normal(k, shape, jnp.float32) * scale

    x = normal(ks[0], (B, T, E))
    params = dict(
        ln1_g=1.0 + 0.1 * normal(ks[1], (1, E)),
        ln1_b=0.1 * normal(ks[2], (1, E)),
        # per-head Linear(n_embed, head_size, bias=False) weights, stored (in, out)
        wq=normal(ks[3], (num_heads, E, head_size), E ** -0.5),
        wk=normal(ks[4], (num_heads, E, head_size), E ** -0.5),
        wv=normal(ks[5], (num_heads, E, head_size), E ** -0.5),
        w_proj=normal(ks[6], (E, E), E ** -0.5),
        b_proj=0.01 * normal(ks[7], (1, E)),
        ln2_g=1.0 + 0.1 * normal(ks[8], (1, E)),
        ln2_b=0.1 * normal(ks[9], (1, E)),
        w1=normal(ks[10], (E, E), E ** -0.5),
        b1=jnp.zeros((1, E), jnp.float32),
        w2=normal(ks[11], (E, E), E ** -0.5),
        b2=jnp.zeros((1, E), jnp.float32),
    )

    # One-time weight packing (lane-aligned head slabs, folded scale, bf16 cast)
    packed = jax.tree_util.tree_map(jax.block_until_ready,
                                    pack_block_params(params, num_heads))

    out = block_forward(x, packed, num_heads=num_heads)
    out = jax.block_until_ready(out)

    ref = _reference(x, params, num_heads)
    assert out.shape == (B, T, E)
    # Kernel uses bf16 MXU operands (f32 accumulation) + approx reciprocal in
    # the softmax vs. the pure-f32 reference; 5e-2 tolerance is safe here.
    max_err = jnp.max(jnp.abs(out - ref))
    assert jnp.allclose(out, ref, atol=5e-2, rtol=5e-2), \
        f"mismatch vs reference: max abs err {max_err}"

    print("KERNEL_OK")
</pallas_src>

<mosaic_0001>
module attributes {stable_mosaic.version = 11 : i64} {
  func.func @_block_kernel(%arg0: i32, %arg1: memref<1x8x480xf32, #tpu.memory_space<vmem>>, %arg2: memref<1x480xf32, #tpu.memory_space<vmem>>, %arg3: memref<1x480xf32, #tpu.memory_space<vmem>>, %arg4: memref<480x2304xbf16, #tpu.memory_space<vmem>>, %arg5: memref<768x480xbf16, #tpu.memory_space<vmem>>, %arg6: memref<1x480xf32, #tpu.memory_space<vmem>>, %arg7: memref<1x480xf32, #tpu.memory_space<vmem>>, %arg8: memref<1x480xf32, #tpu.memory_space<vmem>>, %arg9: memref<480x480xbf16, #tpu.memory_space<vmem>>, %arg10: memref<1x480xf32, #tpu.memory_space<vmem>>, %arg11: memref<480x480xbf16, #tpu.memory_space<vmem>>, %arg12: memref<1x480xf32, #tpu.memory_space<vmem>>, %arg13: memref<1x8x480xf32, #tpu.memory_space<vmem>>) attributes {dimension_semantics = [#tpu.dimension_semantics<parallel>], iteration_bounds = array<i64: 2>, scalar_prefetch = 0 : i64, scratch_operands = 0 : i64, tpu.core_type = #tpu.core_type<tc>, window_params = [{transform_indices = @transform_0, window_bounds = array<i64: 1, 8, 480>}, {pipeline_mode = #tpu.pipeline_mode<synchronous>, transform_indices = @transform_1, window_bounds = array<i64: 1, 480>}, {pipeline_mode = #tpu.pipeline_mode<synchronous>, transform_indices = @transform_2, window_bounds = array<i64: 1, 480>}, {pipeline_mode = #tpu.pipeline_mode<synchronous>, transform_indices = @transform_3, window_bounds = array<i64: 480, 2304>}, {pipeline_mode = #tpu.pipeline_mode<synchronous>, transform_indices = @transform_4, window_bounds = array<i64: 768, 480>}, {pipeline_mode = #tpu.pipeline_mode<synchronous>, transform_indices = @transform_5, window_bounds = array<i64: 1, 480>}, {pipeline_mode = #tpu.pipeline_mode<synchronous>, transform_indices = @transform_6, window_bounds = array<i64: 1, 480>}, {pipeline_mode = #tpu.pipeline_mode<synchronous>, transform_indices = @transform_7, window_bounds = array<i64: 1, 480>}, {pipeline_mode = #tpu.pipeline_mode<synchronous>, transform_indices = @transform_8, window_bounds = array<i64: 480, 480>}, {pipeline_mode = #tpu.pipeline_mode<synchronous>, transform_indices = @transform_9, window_bounds = array<i64: 1, 480>}, {pipeline_mode = #tpu.pipeline_mode<synchronous>, transform_indices = @transform_10, window_bounds = array<i64: 480, 480>}, {pipeline_mode = #tpu.pipeline_mode<synchronous>, transform_indices = @transform_11, window_bounds = array<i64: 1, 480>}, {transform_indices = @transform_12, window_bounds = array<i64: 1, 8, 480>}]} {
    %c0 = arith.constant 0 : index
    %c0_0 = arith.constant 0 : index
    %c0_1 = arith.constant 0 : index
    %0 = vector.load %arg1[%c0, %c0_0, %c0_1] : memref<1x8x480xf32, #tpu.memory_space<vmem>>, vector<1x8x480xf32>
    %1 = vector.shape_cast %0 : vector<1x8x480xf32> to vector<8x480xf32>
    %c0_2 = arith.constant 0 : index
    %c0_3 = arith.constant 0 : index
    %2 = vector.load %arg2[%c0_2, %c0_3] : memref<1x480xf32, #tpu.memory_space<vmem>>, vector<1x480xf32>
    %c0_4 = arith.constant 0 : index
    %c0_5 = arith.constant 0 : index
    %3 = vector.load %arg3[%c0_4, %c0_5] : memref<1x480xf32, #tpu.memory_space<vmem>>, vector<1x480xf32>
    %cst = arith.constant dense<0.000000e+00> : vector<8xf32>
    %4 = vector.multi_reduction <add>, %1, %cst [1] : vector<8x480xf32> to vector<8xf32>
    %5 = vector.shape_cast %4 : vector<8xf32> to vector<8x1xf32>
    %cst_6 = arith.constant 4.800000e+02 : f32
    %6 = vector.broadcast %cst_6 : f32 to vector<8x1xf32>
    %7 = arith.divf %5, %6 : vector<8x1xf32>
    %8 = vector.broadcast %7 : vector<8x1xf32> to vector<8x480xf32>
    %9 = arith.subf %1, %8 : vector<8x480xf32>
    %10 = arith.mulf %9, %9 : vector<8x480xf32>
    %cst_7 = arith.constant dense<0.000000e+00> : vector<8xf32>
    %11 = vector.multi_reduction <add>, %10, %cst_7 [1] : vector<8x480xf32> to vector<8xf32>
    %12 = vector.shape_cast %11 : vector<8xf32> to vector<8x1xf32>
    %cst_8 = arith.constant 4.800000e+02 : f32
    %13 = vector.broadcast %cst_8 : f32 to vector<8x1xf32>
    %14 = arith.divf %12, %13 : vector<8x1xf32>
    %15 = vector.broadcast %7 : vector<8x1xf32> to vector<8x480xf32>
    %16 = arith.subf %1, %15 : vector<8x480xf32>
    %cst_9 = arith.constant 9.99999974E-6 : f32
    %17 = vector.broadcast %cst_9 : f32 to vector<8x1xf32>
    %18 = arith.addf %14, %17 : vector<8x1xf32>
    %19 = math.rsqrt %18 : vector<8x1xf32>
    %20 = vector.broadcast %19 : vector<8x1xf32> to vector<8x480xf32>
    %21 = arith.mulf %16, %20 : vector<8x480xf32>
    %22 = vector.broadcast %2 : vector<1x480xf32> to vector<8x480xf32>
    %23 = arith.mulf %21, %22 : vector<8x480xf32>
    %24 = vector.broadcast %3 : vector<1x480xf32> to vector<8x480xf32>
    %25 = arith.addf %23, %24 : vector<8x480xf32>
    %26 = arith.truncf %25 : vector<8x480xf32> to vector<8x480xbf16>
    %c0_10 = arith.constant 0 : index
    %c0_11 = arith.constant 0 : index
    %27 = vector.load %arg4[%c0_10, %c0_11] : memref<480x2304xbf16, #tpu.memory_space<vmem>>, vector<480x2304xbf16>
    %cst_12 = arith.constant dense<0.000000e+00> : vector<8x2304xf32>
    %28 = tpu.matmul %26, %27, %cst_12 {dimension_numbers = #tpu.dot_dimension_numbers<[1], [0], [0], [1], [0, 0, 1, 1], [], []>} : vector<8x480xbf16>, vector<480x2304xbf16>, vector<8x2304xf32> -> vector<8x2304xf32>
    %29 = tpu.iota {dimensions = array<i32: 0>} : vector<8x8xi32>
    %30 = tpu.iota {dimensions = array<i32: 1>} : vector<8x8xi32>
    %31 = arith.cmpi sge, %29, %30 : vector<8x8xi32>
    %32 = vector.extract_strided_slice %28 {offsets = [0, 0], sizes = [8, 128], strides = [1, 1]} : vector<8x2304xf32> to vector<8x128xf32>
    %33 = vector.extract_strided_slice %28 {offsets = [0, 768], sizes = [8, 128], strides = [1, 1]} : vector<8x2304xf32> to vector<8x128xf32>
    %34 = vector.extract_strided_slice %28 {offsets = [0, 1536], sizes = [8, 128], strides = [1, 1]} : vector<8x2304xf32> to vector<8x128xf32>
    %35 = arith.truncf %32 : vector<8x128xf32> to vector<8x128xbf16>
    %36 = arith.truncf %33 : vector<8x128xf32> to vector<8x128xbf16>
    %cst_13 = arith.constant dense<0.000000e+00> : vector<8x8xf32>
    %37 = tpu.matmul %35, %36, %cst_13 {dimension_numbers = #tpu.dot_dimension_numbers<[1], [1], [0], [0], [0, 0, 1, 0], [], []>} : vector<8x128xbf16>, vector<8x128xbf16>, vector<8x8xf32> -> vector<8x8xf32>
    %cst_14 = arith.constant -1.000000e+30 : f32
    %38 = vector.broadcast %cst_14 : f32 to vector<8x8xf32>
    %39 = arith.select %31, %37, %38 : vector<8x8xi1>, vector<8x8xf32>
    %cst_15 = arith.constant dense<0xFF800000> : vector<8xf32>
    %40 = vector.multi_reduction <maximumf>, %39, %cst_15 [1] : vector<8x8xf32> to vector<8xf32>
    %41 = vector.shape_cast %40 : vector<8xf32> to vector<8x1xf32>
    %42 = vector.broadcast %41 : vector<8x1xf32> to vector<8x8xf32>
    %43 = arith.subf %39, %42 : vector<8x8xf32>
    %44 = math.exp %43 : vector<8x8xf32>
    %cst_16 = arith.constant dense<0.000000e+00> : vector<8xf32>
    %45 = vector.multi_reduction <add>, %44, %cst_16 [1] : vector<8x8xf32> to vector<8xf32>
    %46 = vector.shape_cast %45 : vector<8xf32> to vector<8x1xf32>
    %47 = tpu.reciprocal %46 {approx = true} : vector<8x1xf32> -> vector<8x1xf32>
    %48 = vector.broadcast %47 : vector<8x1xf32> to vector<8x8xf32>
    %49 = arith.mulf %44, %48 : vector<8x8xf32>
    %50 = arith.truncf %49 : vector<8x8xf32> to vector<8x8xbf16>
    %51 = arith.truncf %34 : vector<8x128xf32> to vector<8x128xbf16>
    %cst_17 = arith.constant dense<0.000000e+00> : vector<8x128xf32>
    %52 = tpu.matmul %50, %51, %cst_17 {dimension_numbers = #tpu.dot_dimension_numbers<[1], [0], [0], [1], [0, 0, 1, 1], [], []>} : vector<8x8xbf16>, vector<8x128xbf16>, vector<8x128xf32> -> vector<8x128xf32>
    %53 = vector.extract_strided_slice %28 {offsets = [0, 128], sizes = [8, 128], strides = [1, 1]} : vector<8x2304xf32> to vector<8x128xf32>
    %54 = vector.extract_strided_slice %28 {offsets = [0, 896], sizes = [8, 128], strides = [1, 1]} : vector<8x2304xf32> to vector<8x128xf32>
    %55 = vector.extract_strided_slice %28 {offsets = [0, 1664], sizes = [8, 128], strides = [1, 1]} : vector<8x2304xf32> to vector<8x128xf32>
    %56 = arith.truncf %53 : vector<8x128xf32> to vector<8x128xbf16>
    %57 = arith.truncf %54 : vector<8x128xf32> to vector<8x128xbf16>
    %cst_18 = arith.constant dense<0.000000e+00> : vector<8x8xf32>
    %58 = tpu.matmul %56, %57, %cst_18 {dimension_numbers = #tpu.dot_dimension_numbers<[1], [1], [0], [0], [0, 0, 1, 0], [], []>} : vector<8x128xbf16>, vector<8x128xbf16>, vector<8x8xf32> -> vector<8x8xf32>
    %cst_19 = arith.constant -1.000000e+30 : f32
    %59 = vector.broadcast %cst_19 : f32 to vector<8x8xf32>
    %60 = arith.select %31, %58, %59 : vector<8x8xi1>, vector<8x8xf32>
    %cst_20 = arith.constant dense<0xFF800000> : vector<8xf32>
    %61 = vector.multi_reduction <maximumf>, %60, %cst_20 [1] : vector<8x8xf32> to vector<8xf32>
    %62 = vector.shape_cast %61 : vector<8xf32> to vector<8x1xf32>
    %63 = vector.broadcast %62 : vector<8x1xf32> to vector<8x8xf32>
    %64 = arith.subf %60, %63 : vector<8x8xf32>
    %65 = math.exp %64 : vector<8x8xf32>
    %cst_21 = arith.constant dense<0.000000e+00> : vector<8xf32>
    %66 = vector.multi_reduction <add>, %65, %cst_21 [1] : vector<8x8xf32> to vector<8xf32>
    %67 = vector.shape_cast %66 : vector<8xf32> to vector<8x1xf32>
    %68 = tpu.reciprocal %67 {approx = true} : vector<8x1xf32> -> vector<8x1xf32>
    %69 = vector.broadcast %68 : vector<8x1xf32> to vector<8x8xf32>
    %70 = arith.mulf %65, %69 : vector<8x8xf32>
    %71 = arith.truncf %70 : vector<8x8xf32> to vector<8x8xbf16>
    %72 = arith.truncf %55 : vector<8x128xf32> to vector<8x128xbf16>
    %cst_22 = arith.constant dense<0.000000e+00> : vector<8x128xf32>
    %73 = tpu.matmul %71, %72, %cst_22 {dimension_numbers = #tpu.dot_dimension_numbers<[1], [0], [0], [1], [0, 0, 1, 1], [], []>} : vector<8x8xbf16>, vector<8x128xbf16>, vector<8x128xf32> -> vector<8x128xf32>
    %74 = vector.extract_strided_slice %28 {offsets = [0, 256], sizes = [8, 128], strides = [1, 1]} : vector<8x2304xf32> to vector<8x128xf32>
    %75 = vector.extract_strided_slice %28 {offsets = [0, 1024], sizes = [8, 128], strides = [1, 1]} : vector<8x2304xf32> to vector<8x128xf32>
    %76 = vector.extract_strided_slice %28 {offsets = [0, 1792], sizes = [8, 128], strides = [1, 1]} : vector<8x2304xf32> to vector<8x128xf32>
    %77 = arith.truncf %74 : vector<8x128xf32> to vector<8x128xbf16>
    %78 = arith.truncf %75 : vector<8x128xf32> to vector<8x128xbf16>
    %cst_23 = arith.constant dense<0.000000e+00> : vector<8x8xf32>
    %79 = tpu.matmul %77, %78, %cst_23 {dimension_numbers = #tpu.dot_dimension_numbers<[1], [1], [0], [0], [0, 0, 1, 0], [], []>} : vector<8x128xbf16>, vector<8x128xbf16>, vector<8x8xf32> -> vector<8x8xf32>
    %cst_24 = arith.constant -1.000000e+30 : f32
    %80 = vector.broadcast %cst_24 : f32 to vector<8x8xf32>
    %81 = arith.select %31, %79, %80 : vector<8x8xi1>, vector<8x8xf32>
    %cst_25 = arith.constant dense<0xFF800000> : vector<8xf32>
    %82 = vector.multi_reduction <maximumf>, %81, %cst_25 [1] : vector<8x8xf32> to vector<8xf32>
    %83 = vector.shape_cast %82 : vector<8xf32> to vector<8x1xf32>
    %84 = vector.broadcast %83 : vector<8x1xf32> to vector<8x8xf32>
    %85 = arith.subf %81, %84 : vector<8x8xf32>
    %86 = math.exp %85 : vector<8x8xf32>
    %cst_26 = arith.constant dense<0.000000e+00> : vector<8xf32>
    %87 = vector.multi_reduction <add>, %86, %cst_26 [1] : vector<8x8xf32> to vector<8xf32>
    %88 = vector.shape_cast %87 : vector<8xf32> to vector<8x1xf32>
    %89 = tpu.reciprocal %88 {approx = true} : vector<8x1xf32> -> vector<8x1xf32>
    %90 = vector.broadcast %89 : vector<8x1xf32> to vector<8x8xf32>
    %91 = arith.mulf %86, %90 : vector<8x8xf32>
    %92 = arith.truncf %91 : vector<8x8xf32> to vector<8x8xbf16>
    %93 = arith.truncf %76 : vector<8x128xf32> to vector<8x128xbf16>
    %cst_27 = arith.constant dense<0.000000e+00> : vector<8x128xf32>
    %94 = tpu.matmul %92, %93, %cst_27 {dimension_numbers = #tpu.dot_dimension_numbers<[1], [0], [0], [1], [0, 0, 1, 1], [], []>} : vector<8x8xbf16>, vector<8x128xbf16>, vector<8x128xf32> -> vector<8x128xf32>
    %95 = vector.extract_strided_slice %28 {offsets = [0, 384], sizes = [8, 128], strides = [1, 1]} : vector<8x2304xf32> to vector<8x128xf32>
    %96 = vector.extract_strided_slice %28 {offsets = [0, 1152], sizes = [8, 128], strides = [1, 1]} : vector<8x2304xf32> to vector<8x128xf32>
    %97 = vector.extract_strided_slice %28 {offsets = [0, 1920], sizes = [8, 128], strides = [1, 1]} : vector<8x2304xf32> to vector<8x128xf32>
    %98 = arith.truncf %95 : vector<8x128xf32> to vector<8x128xbf16>
    %99 = arith.truncf %96 : vector<8x128xf32> to vector<8x128xbf16>
    %cst_28 = arith.constant dense<0.000000e+00> : vector<8x8xf32>
    %100 = tpu.matmul %98, %99, %cst_28 {dimension_numbers = #tpu.dot_dimension_numbers<[1], [1], [0], [0], [0, 0, 1, 0], [], []>} : vector<8x128xbf16>, vector<8x128xbf16>, vector<8x8xf32> -> vector<8x8xf32>
    %cst_29 = arith.constant -1.000000e+30 : f32
    %101 = vector.broadcast %cst_29 : f32 to vector<8x8xf32>
    %102 = arith.select %31, %100, %101 : vector<8x8xi1>, vector<8x8xf32>
    %cst_30 = arith.constant dense<0xFF800000> : vector<8xf32>
    %103 = vector.multi_reduction <maximumf>, %102, %cst_30 [1] : vector<8x8xf32> to vector<8xf32>
    %104 = vector.shape_cast %103 : vector<8xf32> to vector<8x1xf32>
    %105 = vector.broadcast %104 : vector<8x1xf32> to vector<8x8xf32>
    %106 = arith.subf %102, %105 : vector<8x8xf32>
    %107 = math.exp %106 : vector<8x8xf32>
    %cst_31 = arith.constant dense<0.000000e+00> : vector<8xf32>
    %108 = vector.multi_reduction <add>, %107, %cst_31 [1] : vector<8x8xf32> to vector<8xf32>
    %109 = vector.shape_cast %108 : vector<8xf32> to vector<8x1xf32>
    %110 = tpu.reciprocal %109 {approx = true} : vector<8x1xf32> -> vector<8x1xf32>
    %111 = vector.broadcast %110 : vector<8x1xf32> to vector<8x8xf32>
    %112 = arith.mulf %107, %111 : vector<8x8xf32>
    %113 = arith.truncf %112 : vector<8x8xf32> to vector<8x8xbf16>
    %114 = arith.truncf %97 : vector<8x128xf32> to vector<8x128xbf16>
    %cst_32 = arith.constant dense<0.000000e+00> : vector<8x128xf32>
    %115 = tpu.matmul %113, %114, %cst_32 {dimension_numbers = #tpu.dot_dimension_numbers<[1], [0], [0], [1], [0, 0, 1, 1], [], []>} : vector<8x8xbf16>, vector<8x128xbf16>, vector<8x128xf32> -> vector<8x128xf32>
    %116 = vector.extract_strided_slice %28 {offsets = [0, 512], sizes = [8, 128], strides = [1, 1]} : vector<8x2304xf32> to vector<8x128xf32>
    %117 = vector.extract_strided_slice %28 {offsets = [0, 1280], sizes = [8, 128], strides = [1, 1]} : vector<8x2304xf32> to vector<8x128xf32>
    %118 = vector.extract_strided_slice %28 {offsets = [0, 2048], sizes = [8, 128], strides = [1, 1]} : vector<8x2304xf32> to vector<8x128xf32>
    %119 = arith.truncf %116 : vector<8x128xf32> to vector<8x128xbf16>
    %120 = arith.truncf %117 : vector<8x128xf32> to vector<8x128xbf16>
    %cst_33 = arith.constant dense<0.000000e+00> : vector<8x8xf32>
    %121 = tpu.matmul %119, %120, %cst_33 {dimension_numbers = #tpu.dot_dimension_numbers<[1], [1], [0], [0], [0, 0, 1, 0], [], []>} : vector<8x128xbf16>, vector<8x128xbf16>, vector<8x8xf32> -> vector<8x8xf32>
    %cst_34 = arith.constant -1.000000e+30 : f32
    %122 = vector.broadcast %cst_34 : f32 to vector<8x8xf32>
    %123 = arith.select %31, %121, %122 : vector<8x8xi1>, vector<8x8xf32>
    %cst_35 = arith.constant dense<0xFF800000> : vector<8xf32>
    %124 = vector.multi_reduction <maximumf>, %123, %cst_35 [1] : vector<8x8xf32> to vector<8xf32>
    %125 = vector.shape_cast %124 : vector<8xf32> to vector<8x1xf32>
    %126 = vector.broadcast %125 : vector<8x1xf32> to vector<8x8xf32>
    %127 = arith.subf %123, %126 : vector<8x8xf32>
    %128 = math.exp %127 : vector<8x8xf32>
    %cst_36 = arith.constant dense<0.000000e+00> : vector<8xf32>
    %129 = vector.multi_reduction <add>, %128, %cst_36 [1] : vector<8x8xf32> to vector<8xf32>
    %130 = vector.shape_cast %129 : vector<8xf32> to vector<8x1xf32>
    %131 = tpu.reciprocal %130 {approx = true} : vector<8x1xf32> -> vector<8x1xf32>
    %132 = vector.broadcast %131 : vector<8x1xf32> to vector<8x8xf32>
    %133 = arith.mulf %128, %132 : vector<8x8xf32>
    %134 = arith.truncf %133 : vector<8x8xf32> to vector<8x8xbf16>
    %135 = arith.truncf %118 : vector<8x128xf32> to vector<8x128xbf16>
    %cst_37 = arith.constant dense<0.000000e+00> : vector<8x128xf32>
    %136 = tpu.matmul %134, %135, %cst_37 {dimension_numbers = #tpu.dot_dimension_numbers<[1], [0], [0], [1], [0, 0, 1, 1], [], []>} : vector<8x8xbf16>, vector<8x128xbf16>, vector<8x128xf32> -> vector<8x128xf32>
    %137 = vector.extract_strided_slice %28 {offsets = [0, 640], sizes = [8, 128], strides = [1, 1]} : vector<8x2304xf32> to vector<8x128xf32>
    %138 = vector.extract_strided_slice %28 {offsets = [0, 1408], sizes = [8, 128], strides = [1, 1]} : vector<8x2304xf32> to vector<8x128xf32>
    %139 = vector.extract_strided_slice %28 {offsets = [0, 2176], sizes = [8, 128], strides = [1, 1]} : vector<8x2304xf32> to vector<8x128xf32>
    %140 = arith.truncf %137 : vector<8x128xf32> to vector<8x128xbf16>
    %141 = arith.truncf %138 : vector<8x128xf32> to vector<8x128xbf16>
    %cst_38 = arith.constant dense<0.000000e+00> : vector<8x8xf32>
    %142 = tpu.matmul %140, %141, %cst_38 {dimension_numbers = #tpu.dot_dimension_numbers<[1], [1], [0], [0], [0, 0, 1, 0], [], []>} : vector<8x128xbf16>, vector<8x128xbf16>, vector<8x8xf32> -> vector<8x8xf32>
    %cst_39 = arith.constant -1.000000e+30 : f32
    %143 = vector.broadcast %cst_39 : f32 to vector<8x8xf32>
    %144 = arith.select %31, %142, %143 : vector<8x8xi1>, vector<8x8xf32>
    %cst_40 = arith.constant dense<0xFF800000> : vector<8xf32>
    %145 = vector.multi_reduction <maximumf>, %144, %cst_40 [1] : vector<8x8xf32> to vector<8xf32>
    %146 = vector.shape_cast %145 : vector<8xf32> to vector<8x1xf32>
    %147 = vector.broadcast %146 : vector<8x1xf32> to vector<8x8xf32>
    %148 = arith.subf %144, %147 : vector<8x8xf32>
    %149 = math.exp %148 : vector<8x8xf32>
    %cst_41 = arith.constant dense<0.000000e+00> : vector<8xf32>
    %150 = vector.multi_reduction <add>, %149, %cst_41 [1] : vector<8x8xf32> to vector<8xf32>
    %151 = vector.shape_cast %150 : vector<8xf32> to vector<8x1xf32>
    %152 = tpu.reciprocal %151 {approx = true} : vector<8x1xf32> -> vector<8x1xf32>
    %153 = vector.broadcast %152 : vector<8x1xf32> to vector<8x8xf32>
    %154 = arith.mulf %149, %153 : vector<8x8xf32>
    %155 = arith.truncf %154 : vector<8x8xf32> to vector<8x8xbf16>
    %156 = arith.truncf %139 : vector<8x128xf32> to vector<8x128xbf16>
    %cst_42 = arith.constant dense<0.000000e+00> : vector<8x128xf32>
    %157 = tpu.matmul %155, %156, %cst_42 {dimension_numbers = #tpu.dot_dimension_numbers<[1], [0], [0], [1], [0, 0, 1, 1], [], []>} : vector<8x8xbf16>, vector<8x128xbf16>, vector<8x128xf32> -> vector<8x128xf32>
    %158 = tpu.concatenate %52, %73, %94, %115, %136, %157 in 1 : vector<8x128xf32>, vector<8x128xf32>, vector<8x128xf32>, vector<8x128xf32>, vector<8x128xf32>, vector<8x128xf32> -> vector<8x768xf32>
    %159 = arith.truncf %158 : vector<8x768xf32> to vector<8x768xbf16>
    %c0_43 = arith.constant 0 : index
    %c0_44 = arith.constant 0 : index
    %160 = vector.load %arg5[%c0_43, %c0_44] : memref<768x480xbf16, #tpu.memory_space<vmem>>, vector<768x480xbf16>
    %cst_45 = arith.constant dense<0.000000e+00> : vector<8x480xf32>
    %161 = tpu.matmul %159, %160, %cst_45 {dimension_numbers = #tpu.dot_dimension_numbers<[1], [0], [0], [1], [0, 0, 1, 1], [], []>} : vector<8x768xbf16>, vector<768x480xbf16>, vector<8x480xf32> -> vector<8x480xf32>
    %c0_46 = arith.constant 0 : index
    %c0_47 = arith.constant 0 : index
    %162 = vector.load %arg6[%c0_46, %c0_47] : memref<1x480xf32, #tpu.memory_space<vmem>>, vector<1x480xf32>
    %163 = vector.broadcast %162 : vector<1x480xf32> to vector<8x480xf32>
    %164 = arith.addf %161, %163 : vector<8x480xf32>
    %165 = arith.addf %1, %164 : vector<8x480xf32>
    %c0_48 = arith.constant 0 : index
    %c0_49 = arith.constant 0 : index
    %166 = vector.load %arg7[%c0_48, %c0_49] : memref<1x480xf32, #tpu.memory_space<vmem>>, vector<1x480xf32>
    %c0_50 = arith.constant 0 : index
    %c0_51 = arith.constant 0 : index
    %167 = vector.load %arg8[%c0_50, %c0_51] : memref<1x480xf32, #tpu.memory_space<vmem>>, vector<1x480xf32>
    %cst_52 = arith.constant dense<0.000000e+00> : vector<8xf32>
    %168 = vector.multi_reduction <add>, %165, %cst_52 [1] : vector<8x480xf32> to vector<8xf32>
    %169 = vector.shape_cast %168 : vector<8xf32> to vector<8x1xf32>
    %cst_53 = arith.constant 4.800000e+02 : f32
    %170 = vector.broadcast %cst_53 : f32 to vector<8x1xf32>
    %171 = arith.divf %169, %170 : vector<8x1xf32>
    %172 = vector.broadcast %171 : vector<8x1xf32> to vector<8x480xf32>
    %173 = arith.subf %165, %172 : vector<8x480xf32>
    %174 = arith.mulf %173, %173 : vector<8x480xf32>
    %cst_54 = arith.constant dense<0.000000e+00> : vector<8xf32>
    %175 = vector.multi_reduction <add>, %174, %cst_54 [1] : vector<8x480xf32> to vector<8xf32>
    %176 = vector.shape_cast %175 : vector<8xf32> to vector<8x1xf32>
    %cst_55 = arith.constant 4.800000e+02 : f32
    %177 = vector.broadcast %cst_55 : f32 to vector<8x1xf32>
    %178 = arith.divf %176, %177 : vector<8x1xf32>
    %179 = vector.broadcast %171 : vector<8x1xf32> to vector<8x480xf32>
    %180 = arith.subf %165, %179 : vector<8x480xf32>
    %cst_56 = arith.constant 9.99999974E-6 : f32
    %181 = vector.broadcast %cst_56 : f32 to vector<8x1xf32>
    %182 = arith.addf %178, %181 : vector<8x1xf32>
    %183 = math.rsqrt %182 : vector<8x1xf32>
    %184 = vector.broadcast %183 : vector<8x1xf32> to vector<8x480xf32>
    %185 = arith.mulf %180, %184 : vector<8x480xf32>
    %186 = vector.broadcast %166 : vector<1x480xf32> to vector<8x480xf32>
    %187 = arith.mulf %185, %186 : vector<8x480xf32>
    %188 = vector.broadcast %167 : vector<1x480xf32> to vector<8x480xf32>
    %189 = arith.addf %187, %188 : vector<8x480xf32>
    %190 = arith.truncf %189 : vector<8x480xf32> to vector<8x480xbf16>
    %c0_57 = arith.constant 0 : index
    %c0_58 = arith.constant 0 : index
    %191 = vector.load %arg9[%c0_57, %c0_58] : memref<480x480xbf16, #tpu.memory_space<vmem>>, vector<480x480xbf16>
    %cst_59 = arith.constant dense<0.000000e+00> : vector<8x480xf32>
    %192 = tpu.matmul %190, %191, %cst_59 {dimension_numbers = #tpu.dot_dimension_numbers<[1], [0], [0], [1], [0, 0, 1, 1], [], []>} : vector<8x480xbf16>, vector<480x480xbf16>, vector<8x480xf32> -> vector<8x480xf32>
    %c0_60 = arith.constant 0 : index
    %c0_61 = arith.constant 0 : index
    %193 = vector.load %arg10[%c0_60, %c0_61] : memref<1x480xf32, #tpu.memory_space<vmem>>, vector<1x480xf32>
    %194 = vector.broadcast %193 : vector<1x480xf32> to vector<8x480xf32>
    %195 = arith.addf %192, %194 : vector<8x480xf32>
    %cst_62 = arith.constant 0.000000e+00 : f32
    %196 = vector.broadcast %cst_62 : f32 to vector<8x480xf32>
    %197 = arith.maximumf %195, %196 : vector<8x480xf32>
    %198 = arith.truncf %197 : vector<8x480xf32> to vector<8x480xbf16>
    %c0_63 = arith.constant 0 : index
    %c0_64 = arith.constant 0 : index
    %199 = vector.load %arg11[%c0_63, %c0_64] : memref<480x480xbf16, #tpu.memory_space<vmem>>, vector<480x480xbf16>
    %cst_65 = arith.constant dense<0.000000e+00> : vector<8x480xf32>
    %200 = tpu.matmul %198, %199, %cst_65 {dimension_numbers = #tpu.dot_dimension_numbers<[1], [0], [0], [1], [0, 0, 1, 1], [], []>} : vector<8x480xbf16>, vector<480x480xbf16>, vector<8x480xf32> -> vector<8x480xf32>
    %c0_66 = arith.constant 0 : index
    %c0_67 = arith.constant 0 : index
    %201 = vector.load %arg12[%c0_66, %c0_67] : memref<1x480xf32, #tpu.memory_space<vmem>>, vector<1x480xf32>
    %202 = vector.broadcast %201 : vector<1x480xf32> to vector<8x480xf32>
    %203 = arith.addf %200, %202 : vector<8x480xf32>
    %204 = arith.addf %165, %203 : vector<8x480xf32>
    %205 = vector.shape_cast %204 : vector<8x480xf32> to vector<1x8x480xf32>
    %c0_68 = arith.constant 0 : index
    %c0_69 = arith.constant 0 : index
    %c0_70 = arith.constant 0 : index
    %206 = vector.load %arg13[%c0_68, %c0_69, %c0_70] : memref<1x8x480xf32, #tpu.memory_space<vmem>>, vector<1x8x480xf32>
    tpu.vector_store %arg13[%c0_68, %c0_69, %c0_70], %205 {strides = array<i32>} : memref<1x8x480xf32, #tpu.memory_space<vmem>>, vector<1x8x480xf32>,
    return
  }
  func.func @transform_0(%arg0: i32) -> (i32, i32, i32) {
    %c0_i32 = arith.constant 0 : i32
    %c0_i32_0 = arith.constant 0 : i32
    %c0_i32_1 = arith.constant 0 : i32
    return %arg0, %c0_i32, %c0_i32_0 : i32, i32, i32
  }
  func.func @transform_1(%arg0: i32) -> (i32, i32) {
    %c0_i32 = arith.constant 0 : i32
    %c0_i32_0 = arith.constant 0 : i32
    %c0_i32_1 = arith.constant 0 : i32
    return %c0_i32, %c0_i32_0 : i32, i32
  }
  func.func @transform_2(%arg0: i32) -> (i32, i32) {
    %c0_i32 = arith.constant 0 : i32
    %c0_i32_0 = arith.constant 0 : i32
    %c0_i32_1 = arith.constant 0 : i32
    return %c0_i32, %c0_i32_0 : i32, i32
  }
  func.func @transform_3(%arg0: i32) -> (i32, i32) {
    %c0_i32 = arith.constant 0 : i32
    %c0_i32_0 = arith.constant 0 : i32
    %c0_i32_1 = arith.constant 0 : i32
    return %c0_i32, %c0_i32_0 : i32, i32
  }
  func.func @transform_4(%arg0: i32) -> (i32, i32) {
    %c0_i32 = arith.constant 0 : i32
    %c0_i32_0 = arith.constant 0 : i32
    %c0_i32_1 = arith.constant 0 : i32
    return %c0_i32, %c0_i32_0 : i32, i32
  }
  func.func @transform_5(%arg0: i32) -> (i32, i32) {
    %c0_i32 = arith.constant 0 : i32
    %c0_i32_0 = arith.constant 0 : i32
    %c0_i32_1 = arith.constant 0 : i32
    return %c0_i32, %c0_i32_0 : i32, i32
  }
  func.func @transform_6(%arg0: i32) -> (i32, i32) {
    %c0_i32 = arith.constant 0 : i32
    %c0_i32_0 = arith.constant 0 : i32
    %c0_i32_1 = arith.constant 0 : i32
    return %c0_i32, %c0_i32_0 : i32, i32
  }
  func.func @transform_7(%arg0: i32) -> (i32, i32) {
    %c0_i32 = arith.constant 0 : i32
    %c0_i32_0 = arith.constant 0 : i32
    %c0_i32_1 = arith.constant 0 : i32
    return %c0_i32, %c0_i32_0 : i32, i32
  }
  func.func @transform_8(%arg0: i32) -> (i32, i32) {
    %c0_i32 = arith.constant 0 : i32
    %c0_i32_0 = arith.constant 0 : i32
    %c0_i32_1 = arith.constant 0 : i32
    return %c0_i32, %c0_i32_0 : i32, i32
  }
  func.func @transform_9(%arg0: i32) -> (i32, i32) {
    %c0_i32 = arith.constant 0 : i32
    %c0_i32_0 = arith.constant 0 : i32
    %c0_i32_1 = arith.constant 0 : i32
    return %c0_i32, %c0_i32_0 : i32, i32
  }
  func.func @transform_10(%arg0: i32) -> (i32, i32) {
    %c0_i32 = arith.constant 0 : i32
    %c0_i32_0 = arith.constant 0 : i32
    %c0_i32_1 = arith.constant 0 : i32
    return %c0_i32, %c0_i32_0 : i32, i32
  }
  func.func @transform_11(%arg0: i32) -> (i32, i32) {
    %c0_i32 = arith.constant 0 : i32
    %c0_i32_0 = arith.constant 0 : i32
    %c0_i32_1 = arith.constant 0 : i32
    return %c0_i32, %c0_i32_0 : i32, i32
  }
  func.func @transform_12(%arg0: i32) -> (i32, i32, i32) {
    %c0_i32 = arith.constant 0 : i32
    %c0_i32_0 = arith.constant 0 : i32
    %c0_i32_1 = arith.constant 0 : i32
    return %arg0, %c0_i32, %c0_i32_0 : i32, i32, i32
  }
}

</mosaic_0001>

<bundles_post_ra>
// kernel: block_forward.1
= control target key start
LH: loop header
LB: loop body
LE: loop exit
PB: predicated region body
PF: predicated region fallthrough
CT: control target
= control target key end

     0   :  { %s13241_s0 = inlined_call_operand.hbm [shape: f32[2,8,480], index: 0, kind: input, shape index: {}]   ;;  %s13242_s1 = inlined_call_operand.hbm [shape: f32[1,480], index: 1, kind: input, shape index: {}]   ;;  %s13243_s2 = inlined_call_operand.hbm [shape: f32[1,480], index: 2, kind: input, shape index: {}]   ;;  %s13244_s3 = inlined_call_operand.hbm [shape: bf16[480,2304], index: 3, kind: input, shape index: {}]   ;;  %s13245_s4 = inlined_call_operand.vmem [shape: bf16[768,480], index: 4, kind: input, shape index: {}]   ;;  %s13246_s5 = inlined_call_operand.hbm [shape: f32[1,480], index: 5, kind: input, shape index: {}]   ;;  %s13247_s6 = inlined_call_operand.hbm [shape: f32[1,480], index: 6, kind: input, shape index: {}]   ;;  %s13248_s7 = inlined_call_operand.hbm [shape: f32[1,480], index: 7, kind: input, shape index: {}]   ;;  %s13249_s8 = inlined_call_operand.hbm [shape: bf16[480,480], index: 8, kind: input, shape index: {}]   ;;  %s13250_s9 = inlined_call_operand.hbm [shape: f32[1,480], index: 9, kind: input, shape index: {}]   ;;  %s13251_s10 = inlined_call_operand.hbm [shape: bf16[480,480], index: 10, kind: input, shape index: {}]   ;;  %s13252_s11 = inlined_call_operand.hbm [shape: f32[1,480], index: 11, kind: input, shape index: {}]   ;;  %s13253_s12 = inlined_call_operand.hbm [shape: f32[2,8,480], index: 12, kind: output, shape index: {}]  }
   0x1   :  { %13258 = sst [smem:[#allocation28_spill]] %s13242_s1 }
   0x2   :  { %13259 = sst [smem:[#allocation29_spill]] %s13243_s2 }
   0x3   :  { %13260 = sst [smem:[#allocation30_spill]] %s13244_s3 }
   0x4   :  { %13261 = sst [smem:[#allocation31_spill]] %s13246_s5 }
   0x5   :  { %13262 = sst [smem:[#allocation32_spill]] %s13247_s6 }
   0x6   :  { %13263 = sst [smem:[#allocation33_spill]] %s13248_s7 }
   0x7   :  { %13264 = sst [smem:[#allocation34_spill]] %s13249_s8 }
   0x8   :  { %17 = vsyncpa [#allocation3], 0 }
   0x9   :  { %19 = vsyncpa [#allocation3 + $0x1], 0 }
   0xa   :  { %20 = vsyncpa [#allocation6], 0 }
   0xb   :  { %21 = vsyncpa [#allocation9], 0 }
   0xc   :  { %22 = vsyncpa [#allocation12], 0 }
   0xd   :  { %23 = vsyncpa [#allocation15], 0 }
   0xe   :  { %24 = vsyncpa [#allocation18], 0 }
   0xf   :  { %25 = vsyncpa [#allocation4], 0 }
  0x10   :  { %27 = vsyncpa [#allocation4 + $0x1], 0  ;;  %s12003_s21 = smov 0   ;;  %s12005_s22 = smov 0  }
  0x11   :  { %s12007_s23 = smov 0   ;;  %s12009_s24 = smov 0  }
  0x12 LB: > { %s11920_s25 = smov [#allocation5]   ;;  %s12024_s27 = sadd.s32 4294967295, %s11918_s24   ;;  %s11918_s24 = sphi %s12009_s24, %s13301_s24   ;;  %s11914_s23 = sphi %s12007_s23, %s13300_s23   ;;  %s11910_s22 = sphi %s12005_s22, %s13299_s22   ;;  %s11906_s21 = sphi %s12003_s21, %s13298_s21  }
  0x13   : > { %s334_s26 = sshll.u32 %s11920_s25, 4  ;;  %p8781_p0 = scmp.ge.s32.totalorder %s11918_s24, 1  ;;  %s335_s26 = int_to_ptr.vmem [resolvable:$true] %s334_s26 }
  0x14   : > { %p13254_p1 = scmp.eq.s32.totalorder %s12024_s27, 0  ;;  %p321_p2 = scmp.lt.s32.totalorder %s11918_s24, 3 }
  0x15   : > { %s11921_s29 = smov [#allocation8]   ;;  %s11922_s14 = smov [#allocation11]  }
  0x16   : > { %p12029_p3 = pnand %p8781_p0, %p321_p2  ;;  %s355_s30 = sshll.u32 %s11921_s29, 4  ;;  %s12036_s30 = int_to_ptr.vmem [resolvable:$true] %s355_s30 }
  0x17   : > { %s383_s15 = sshll.u32 %s11922_s14, 4  ;;  %s11557_s17 = scalar_lea.vmem %s335_s26, 64  ;;  %s12044_s15 = int_to_ptr.vmem [resolvable:$true] %s383_s15 }
  0x18   : > { %s13265_s28 = scalar_select %p12029_p3, 1, 0 }
  0x19   : > { %p9947_p5 = pneg %p12029_p3  ;;  %p11558_p8 = scmp.ne.s32.totalorder %s335_s26, %s11557_s17 }
  0x1a   : > { %p11565_p11 = scmp.lt.s32.totalorder %s335_s26, %s335_s26  ;;  %p11566_p12 = scmp.lt.s32.totalorder %s11557_s17, %s11557_s17 }
  0x1b   : > { %p12040_p6 = pnand %p9947_p5, %p13254_p1 }
  0x1c   : > { %p11567_p13 = por %p11566_p12, %p11565_p11 }
  0x1d   : > { %p12048_p7 = pneg %p12040_p6 }
  0x1f   : > { %p11560_p9 = pnand %p11558_p8, %p12048_p7 }
  0x21   : > { %p11561_p10 = pneg %p11560_p9 }
  0x23   : > { %p11568_p0 = pnand %p11567_p13, %p11561_p10 }
  0x25   : > { %11571 = shalt.err (!%p11568_p0)
}
  0x26   : > { %s13268_s1 = sld [smem:[#allocation28_spill]]  ;;  %s11583_s20 = scalar_lea.vmem %s12036_s30, 69120 }
  0x27   : > { %p11584_p2 = scmp.ne.s32.totalorder %s12036_s30, %s11583_s20  ;;  %p11591_p9 = scmp.lt.s32.totalorder %s12036_s30, %s12036_s30 }
  0x28   : > { %p11592_p11 = scmp.lt.s32.totalorder %s11583_s20, %s11583_s20 }
  0x29   : > { %p11586_p5 = pnand %p11584_p2, %p12048_p7 }
  0x2a   : > { %p11593_p10 = por %p11592_p11, %p11591_p9 }
  0x2b   : > { %p11587_p8 = pneg %p11586_p5 }
  0x2c   : > { %9950 = dma.hbm_to_vmem [thread:$0]  (!%p12040_p6), %s13268_s1, 64, %s335_s26, [#allocation6]  }
  0x2d   : > { %p11594_p12 = pnand %p11593_p10, %p11587_p8 }
  0x2f   : > { %11597 = shalt.err (!%p11594_p12)
}
  0x30   : > { %s11923_s25 = smov 1152   ;;  %s11924_s29 = smov 72  }
  0x31   : > { %s13269_s3 = sld [smem:[#allocation30_spill]]  ;;  %s11609_s17 = scalar_lea.vmem %s12044_s15, 64 }
  0x32   : > { %p11610_p13 = scmp.ne.s32.totalorder %s12044_s15, %s11609_s17  ;;  %p11617_p5 = scmp.lt.s32.totalorder %s12044_s15, %s12044_s15 }
  0x33   : > { %p11618_p8 = scmp.lt.s32.totalorder %s11609_s17, %s11609_s17 }
  0x34   : > { %p11612_p0 = pnand %p11610_p13, %p12048_p7 }
  0x35   : > { %p11619_p9 = por %p11618_p8, %p11617_p5 }
  0x36   : > { %p11613_p2 = pneg %p11612_p0 }
  0x37   : > { %9956 = dma.hbm_to_vmem [thread:$0]  (!%p12040_p6), %s13269_s3, 69120, %s12036_s30, [#allocation9], %s11923_s25, %s11923_s25, %s11924_s29  }
  0x38   : > { %p11620_p11 = pnand %p11619_p9, %p11613_p2 }
  0x3a   : > { %11623 = shalt.err (!%p11620_p11)
}
  0x3b   : > { %s13270_s6 = sld [smem:[#allocation32_spill]]  ;;  %s11925_s30 = smov [#allocation14]  }
  0x3c   : > { %s404_s20 = sshll.u32 %s11925_s30, 4  ;;  %s405_s20 = int_to_ptr.vmem [resolvable:$true] %s404_s20 }
  0x3d   : > { %s11635_s25 = scalar_lea.vmem %s405_s20, 15360  ;;  %p11643_p0 = scmp.lt.s32.totalorder %s405_s20, %s405_s20 }
  0x3e   : > { %p11636_p10 = scmp.ne.s32.totalorder %s405_s20, %s11635_s25  ;;  %p11644_p5 = scmp.lt.s32.totalorder %s11635_s25, %s11635_s25 }
  0x40   : > { %p11638_p12 = pnand %p11636_p10, %p12048_p7  ;;  %p11645_p2 = por %p11644_p5, %p11643_p0 }
  0x41   : > { %9962 = dma.hbm_to_vmem [thread:$0]  (!%p12040_p6), %s13270_s6, 64, %s12044_s15, [#allocation12]  }
  0x42   : > { %p11639_p13 = pneg %p11638_p12 }
  0x44   : > { %p11646_p8 = pnand %p11645_p2, %p11639_p13 }
  0x46   : > { %11649 = shalt.err (!%p11646_p8)
}
  0x47   : > { %s11926_s29 = smov 256   ;;  %s11927_s26 = smov 16  }
  0x48   : > { %s13271_s8 = sld [smem:[#allocation34_spill]]  ;;  %s11928_s17 = smov [#allocation17]  }
  0x49   : > { %s428_s18 = sshll.u32 %s11928_s17, 4  ;;  %s11929_s19 = smov [#allocation7]   ;;  %s429_s18 = int_to_ptr.vmem [resolvable:$true] %s428_s18 }
  0x4a   : > { %s345_s30 = sshll.u32 %s11929_s19, 4  ;;  %s11661_s1 = scalar_lea.vmem %s429_s18, 15360  ;;  %s346_s30 = int_to_ptr.vmem [resolvable:$true] %s345_s30 }
  0x4b   : > { %p11662_p9 = scmp.ne.s32.totalorder %s429_s18, %s11661_s1  ;;  %p11669_p12 = scmp.lt.s32.totalorder %s429_s18, %s429_s18 }
  0x4c   : > { %p11670_p13 = scmp.lt.s32.totalorder %s11661_s1, %s11661_s1 }
  0x4d   : > { %p11664_p11 = pnand %p11662_p9, %p12048_p7 }
  0x4e   : > { %9968 = dma.hbm_to_vmem [thread:$0]  (!%p12040_p6), %s13271_s8, 15360, %s405_s20, [#allocation15], %s11926_s29, %s11926_s29, %s11927_s26  }
  0x4f   : > { %p11665_p10 = pneg %p11664_p11  ;;  %p11671_p0 = por %p11670_p13, %p11669_p12 }
  0x51   : > { %p11672_p5 = pnand %p11671_p0, %p11665_p10 }
  0x53   : > { %11675 = shalt.err (!%p11672_p5)
}
  0x54   : > { %9974 = dma.hbm_to_vmem [thread:$0]  (!%p12040_p6), %s13251_s10, 15360, %s429_s18, [#allocation18], %s11926_s29, %s11926_s29, %s11927_s26  }
  0x55   : > { %s11687_s14 = scalar_lea.vmem %s346_s30, 64  ;;  %p11695_p1 = scmp.lt.s32.totalorder %s346_s30, %s346_s30 }
  0x56   : > { %p11688_p2 = scmp.ne.s32.totalorder %s346_s30, %s11687_s14  ;;  %p11696_p9 = scmp.lt.s32.totalorder %s11687_s14, %s11687_s14 }
  0x58   : > { %p11690_p8 = pnand %p11688_p2, %p12048_p7  ;;  %p11697_p11 = por %p11696_p9, %p11695_p1 }
  0x5a   : > { %p11691_p4 = pneg %p11690_p8 }
  0x5c   : > { %p11698_p3 = pnand %p11697_p11, %p11691_p4 }
  0x5e   : > { %11701 = shalt.err (!%p11698_p3)
}
  0x5f   : > { %s13272_s2 = sld [smem:[#allocation29_spill]]  ;;  %s11930_s17 = smov [#allocation10]  }
  0x60   : > { %s372_s19 = sshll.u32 %s11930_s17, 4  ;;  %s11931_s29 = smov [#allocation13]   ;;  %s373_s19 = int_to_ptr.vmem [resolvable:$true] %s372_s19 }
  0x61   : > { %s394_s26 = sshll.u32 %s11931_s29, 4  ;;  %s11713_s18 = scalar_lea.vmem %s373_s19, 64  ;;  %s395_s26 = int_to_ptr.vmem [resolvable:$true] %s394_s26 }
  0x62   : > { %p11714_p10 = scmp.ne.s32.totalorder %s373_s19, %s11713_s18  ;;  %p11721_p4 = scmp.lt.s32.totalorder %s373_s19, %s373_s19 }
  0x63   : > { %p11722_p3 = scmp.lt.s32.totalorder %s11713_s18, %s11713_s18 }
  0x64   : > { %p11716_p12 = pnand %p11714_p10, %p12048_p7 }
  0x65   : > { %9953 = dma.hbm_to_vmem [thread:$0]  (!%p12040_p6), %s13272_s2, 64, %s346_s30, [#allocation6]  }
  0x66   : > { %p11717_p1 = pneg %p11716_p12  ;;  %p11723_p13 = por %p11722_p3, %p11721_p4 }
  0x68   : > { %p11724_p0 = pnand %p11723_p13, %p11717_p1 }
  0x6a   : > { %11727 = shalt.err (!%p11724_p0)
}
  0x6b   : > { %s13273_s5 = sld [smem:[#allocation31_spill]]  ;;  %s11739_s20 = scalar_lea.vmem %s395_s26, 64 }
  0x6c   : > { %p11740_p5 = scmp.ne.s32.totalorder %s395_s26, %s11739_s20  ;;  %p11747_p9 = scmp.lt.s32.totalorder %s395_s26, %s395_s26 }
  0x6d   : > { %p11748_p11 = scmp.lt.s32.totalorder %s11739_s20, %s11739_s20 }
  0x6e   : > { %p11742_p2 = pnand %p11740_p5, %p12048_p7 }
  0x6f   : > { %p11749_p10 = por %p11748_p11, %p11747_p9 }
  0x70   : > { %p11743_p8 = pneg %p11742_p2 }
  0x71   : > { %9959 = dma.hbm_to_vmem [thread:$0]  (!%p12040_p6), %s13273_s5, 64, %s373_s19, [#allocation9]  }
  0x72   : > { %p11750_p12 = pnand %p11749_p10, %p11743_p8 }
  0x74   : > { %11753 = shalt.err (!%p11750_p12)
}
  0x75   : > { %s13274_s7 = sld [smem:[#allocation33_spill]]  ;;  %s11932_s15 = smov [#allocation16]  }
  0x76   : > { %s418_s17 = sshll.u32 %s11932_s15, 4  ;;  %s11933_s19 = smov [#allocation19]   ;;  %s419_s17 = int_to_ptr.vmem [resolvable:$true] %s418_s17 }
  0x77   : > { %s442_s29 = sshll.u32 %s11933_s19, 4  ;;  %s11765_s18 = scalar_lea.vmem %s419_s17, 64  ;;  %s443_s29 = int_to_ptr.vmem [resolvable:$true] %s442_s29 }
  0x78   : > { %p11766_p1 = scmp.ne.s32.totalorder %s419_s17, %s11765_s18  ;;  %p11773_p13 = scmp.lt.s32.totalorder %s419_s17, %s419_s17 }
  0x79   : > { %p11774_p0 = scmp.lt.s32.totalorder %s11765_s18, %s11765_s18 }
  0x7a   : > { %p11768_p4 = pnand %p11766_p1, %p12048_p7 }
  0x7b   : > { %9965 = dma.hbm_to_vmem [thread:$0]  (!%p12040_p6), %s13274_s7, 64, %s395_s26, [#allocation12]  }
  0x7c   : > { %p11769_p3 = pneg %p11768_p4  ;;  %p11775_p5 = por %p11774_p0, %p11773_p13 }
  0x7e   : > { %p11776_p2 = pnand %p11775_p5, %p11769_p3 }
  0x80   : > { %11779 = shalt.err (!%p11776_p2)
}
  0x81   : > { %9971 = dma.hbm_to_vmem [thread:$0]  (!%p12040_p6), %s13250_s9, 64, %s419_s17, [#allocation15]  }
  0x82   : > { %s11791_s30 = scalar_lea.vmem %s443_s29, 64  ;;  %p11799_p10 = scmp.lt.s32.totalorder %s443_s29, %s443_s29 }
  0x83   : > { %p11792_p8 = scmp.ne.s32.totalorder %s443_s29, %s11791_s30  ;;  %p11800_p12 = scmp.lt.s32.totalorder %s11791_s30, %s11791_s30 }
  0x85   : > { %p11794_p9 = pnand %p11792_p8, %p12048_p7  ;;  %p11801_p1 = por %p11800_p12, %p11799_p10 }
  0x87   : > { %p11795_p11 = pneg %p11794_p9 }
  0x89   : > { %p11802_p4 = pnand %p11801_p1, %p11795_p11 }
  0x8b   : > { %11805 = shalt.err (!%p11802_p4)
}
  0x8c   : > { %9977 = dma.hbm_to_vmem [thread:$0]  (!%p12040_p6), %s13252_s11, 64, %s443_s29, [#allocation18]  }
  0x8d   : > { %s8780_s16 = sadd.s32 4294967294, %s11918_s24   ;;  %s12134_s13 = sadd.s32 1, %s11918_s24  }
  0x8e   : > { %s37_s1 = ssub.s32 %s11918_s24, %s12134_s13  ;;  %s40_s15 = sadd.s32 1, %s11914_s23 }
  0x8f   : > { %p38_p7 = scmp.eq.s32.totalorder %s37_s1, 0  ;;  %p47_p3 = scmp.ne.s32.totalorder %s11914_s23, %s11910_s22 }
  0x90   : > { %p48_p13 = scmp.eq.s32.totalorder %s11918_s24, 0  ;;  %p53_p0 = scmp.ne.s32.totalorder %s11910_s22, %s11906_s21 }
  0x91   : > { %s12145_s17 = scalar_select %p38_p7, %s11914_s23, %s40_s15  }
  0x92   : > { %p12147_p5 = por %p48_p13, %p47_p3  ;;  %p13276_p2 = scmp.eq.s32.totalorder %s12024_s27, 0 }
  0x93   : > { %p308_p8 = scmp.eq.s32.totalorder %s12024_s27, 1  ;;  %p314_p9 = scmp.eq.s32.totalorder %s8780_s16, 1 }
  0x94   : > { %p12153_p6 = por %p13276_p2, %p53_p0  ;;  %p9996_p11 = scmp.lt.s32.totalorder %s11918_s24, 2 }
  0x95   : > { %s453_s18 = sand.u32 1, %s11914_s23   ;;  %p12160_p10 = por %p308_p8, %p47_p3 }
  0x96   : > { %s13277_s29 = scalar_select %p12153_p6, 1, 0 }
  0x97   : > { %s13278_s25 = scalar_select %p12160_p10, 1, 0 }
  0x98   : > { %p12164_p12 = por %p314_p9, %p53_p0  ;;  %s8793_s30 = sshll.u32 %s453_s18, 5 }
  0x99   : > { %s9805_s20 = sshll.u32 %s11918_s24, 9  ;;  %s457_s16 = scalar_lea.vmem [#allocation2], %s8793_s30 }
  0x9a   : > { %s13279_s26 = scalar_select %p12164_p12, 1, 0 }
  0x9b   : > { %s12172_s15 = scalar_lea.hbm %s13241_s0, %s9805_s20  ;;  %s465_s2 = sshll.u32 %s457_s16, 4  ;;  %s466_s2 = int_to_ptr.vmem [resolvable:$true] %s465_s2 }
  0x9c   : > { %p12176_p1 = pnand %p9996_p11, %p12147_p5  ;;  %s454_s5 = scalar_lea.sflag [#allocation3], %s453_s18 }
  0x9d   : > { %s11806_s6 = scalar_lea.hbm %s12172_s15, 512  ;;  %s11811_s1 = scalar_lea.hbm %s13241_s0, 1024 }
  0x9e   : > { %p11807_p4 = scmp.ne.s32.totalorder %s12172_s15, %s11806_s6  ;;  %p11808_p7 = pneg %p12176_p1 }
  0x9f   : > { %p11812_p0 = scmp.lt.s32.totalorder %s12172_s15, %s13241_s0  ;;  %p11813_p5 = scmp.lt.s32.totalorder %s11811_s1, %s11806_s6 }
  0xa0   : > { %p11809_p3 = pnand %p11808_p7, %p11807_p4 }
  0xa1   : > { %p11814_p2 = por %p11813_p5, %p11812_p0 }
  0xa2   : > { %p11810_p13 = pneg %p11809_p3 }
  0xa4   : > { %p11815_p8 = pnand %p11814_p2, %p11810_p13 }
  0xa6   : > { %11818 = shalt.err (!%p11815_p8)
}
  0xa7   : > { %s11819_s19 = scalar_lea.vmem %s466_s2, 512  ;;  %s11934_s18 = smov [#allocation2]  }
  0xa8   : > { %p11820_p9 = scmp.ne.s32.totalorder %s466_s2, %s11819_s19  ;;  %s11824_s7 = sshll.u32 %s11934_s18, 4  ;;  %s11825_s7 = int_to_ptr.vmem [resolvable:$false] %s11824_s7 }
  0xa9   : > { %s11826_s8 = scalar_lea.vmem %s11825_s7, 1024  ;;  %p11827_p4 = scmp.lt.s32.totalorder %s466_s2, %s11825_s7 }
  0xaa   : > { %p11822_p11 = pnand %p11820_p9, %p11808_p7  ;;  %p11828_p3 = scmp.lt.s32.totalorder %s11826_s8, %s11819_s19 }
  0xac   : > { %p11823_p12 = pneg %p11822_p11  ;;  %p11829_p10 = por %p11828_p3, %p11827_p4 }
  0xae   : > { %p11830_p6 = pnand %p11829_p10, %p11823_p12 }
  0xb0   : > { %11833 = shalt.err (!%p11830_p6)
}
  0xb1   : > { %9981 = dma.hbm_to_vmem [thread:$0]  (!%p12176_p1), %s12172_s15, 512, %s466_s2, %s454_s5  }
  0xb2   : > { %p13281_p13 = scmp.ne.s32.totalorder %s13265_s28, 0 }
  0xb3   : > { %s12197_s6 = sand.u32 (!%p13281_p13), 1, %s11910_s22   ;;  %p13282_p6 = scmp.ne.s32.totalorder (!%p13281_p13), %s13277_s29, 0 }
  0xb4   : > { %474 = sbr.rel (%p13281_p13) target bundleno = 2930 (0xb72), region = 68  ;;  %s8797_s20 = sshll.u32 (!%p13281_p13), %s12197_s6, 5 }
  0xb5   : > { %s477_s7 = scalar_lea.sflag (!%p13281_p13), [#allocation3], %s12197_s6  ;;  %s12203_s8 = scalar_lea.vmem (!%p13281_p13), [#allocation2], %s8797_s20 }
  0xb9   : > { %11877 = dma.done.wait (%p13282_p6), %s477_s7, 512  }
  0xba   : > { %11879 = vsyncadd (%p13282_p6), %s477_s7, 4294966784  ;;  %p13283_p10 = scmp.eq.s32.totalorder %s12024_s27, 0 }
  0xbc   : > { %11881 = dma.done.wait (%p13283_p10), [#allocation6], 128   ;;  %p13284_p12 = pmov %p13283_p10 }
  0xbd   : > { %p13285_p1 = pmov %p13283_p10 }
  0xbe   : > { %11883 = vsyncadd (%p13284_p12), [#allocation6], 4294967168 }
  0xbf   : > { %11885 = dma.done.wait (%p13285_p1), [#allocation9], 69184   ;;  %p13286_p7 = pmov %p13285_p1 }
  0xc0   : > { %p13287_p0 = pmov %p13285_p1 }
  0xc1   : > { %11887 = vsyncadd (%p13286_p7), [#allocation9], 4294898112 }
  0xc2   : > { %11889 = dma.done.wait (%p13287_p0), [#allocation12], 128   ;;  %p13288_p5 = pmov %p13287_p0 }
  0xc3   : > { %p13289_p2 = pmov %p13287_p0 }
  0xc4   : > { %11891 = vsyncadd (%p13288_p5), [#allocation12], 4294967168 }
  0xc5   : > { %11893 = dma.done.wait (%p13289_p2), [#allocation15], 15424   ;;  %p13290_p8 = pmov %p13287_p0 }
  0xc6   : > { %p13291_p9 = pmov %p13287_p0 }
  0xc7   : > { %11895 = vsyncadd (%p13290_p8), [#allocation15], 4294951872 }
  0xc8   : > { %11897 = dma.done.wait (%p13291_p9), [#allocation18], 15424   ;;  %p13292_p11 = pmov %p13287_p0 }
  0xc9   : > { %vm570_vm0 = vcmask 785408   ;;  %v12230_v0 = vld [vmem:[%s12203_s8] sm:$0xff]  ;;  %v12233_v1 = vld [vmem:[%s12203_s8 + $0x8] sm:$0xff]  ;;  %v12236_v2 = vld [vmem:[%s12203_s8 + $0x10] sm:$0xff]  ;;  %vm11936_vm1 = vmmov 0   ;;  %vm4698_vm2 = vcmask 1043456  }
  0xca   : > { %11899 = vsyncadd (%p13292_p11), [#allocation18], 4294951872  ;;  %v12239_v3 = vld [vmem:[%s12203_s8 + $0x18] sm:$0xff]  ;;  %v568_v4 = vadd.f32 %v12233_v1, %v12230_v0  ;;  %v10059_v10 = vld [vmem:[#allocation8 + $0x364] ss:$72 sps:$4 sm:$0xff]   ;;  %vm4681_vm4 = vcmask 64512  }
  0xcb   : > { %v571_v5 = vsel %vm570_vm0, %v12239_v3, 0.0  ;;  %v10056_v8 = vld [vmem:[#allocation8 + $0x3f4] ss:$72 sps:$4 sm:$0xff]   ;;  %v10058_v9 = vld [vmem:[#allocation8 + $0x3f0] ss:$72 sps:$4 sm:$0xff]   ;;  %s9806_s1 = sshll.u32 %s12024_s27, 9 }
  0xcc   : > { %v569_v6 = vadd.f32 %v568_v4, %v12236_v2  ;;  %v10064_v11 = vld [vmem:[#allocation8 + $0xcf4] ss:$72 sps:$4 sm:$0xff]   ;;  %3895 = vmatprep.subr.bf16.mxu0 %v10056_v8  ;;  %v10067_v12 = vld [vmem:[#allocation8 + $0xcf0] ss:$72 sps:$4 sm:$0xff]   ;;  %v10061_v13 = vld [vmem:[#allocation8 + $0x360] ss:$72 sps:$4 sm:$0xff]   ;;  %s8613_s19 = scalar_lea.hbm %s13253_s12, %s9806_s1 }
  0xcd   : > { %3896 = vmatpush1.bf16.msra.mxu0 %v10058_v9  ;;  %3936 = vmatprep.subr.bf16.mxu1 %v10064_v11  ;;  %v10070_v14 = vld [vmem:[#allocation8 + $0xc64] ss:$72 sps:$4 sm:$0xff]   ;;  %v10062_v15 = vld [vmem:[#allocation8 + $0x2d4] ss:$72 sps:$4 sm:$0xff]   ;;  %v10073_v16 = vld [vmem:[#allocation8 + $0xc60] ss:$72 sps:$4 sm:$0xff]  }
  0xce   : > { %v572_v7 = vadd.f32 %v571_v5, %v569_v6  ;;  %3897 = vmatprep.subr.bf16.mxu0 %v10059_v10  ;;  %3937 = vmatpush1.bf16.msra.mxu1 %v10067_v12  ;;  %v10076_v17 = vld [vmem:[#allocation8 + $0xbd4] ss:$72 sps:$4 sm:$0xff]   ;;  %v10066_v18 = vld [vmem:[#allocation8 + $0x2d0] ss:$72 sps:$4 sm:$0xff]   ;;  %v10068_v19 = vld [vmem:[#allocation8 + $0x244] ss:$72 sps:$4 sm:$0xff]  }
  0xcf   : > { %3938 = vmatprep.subr.bf16.mxu1 %v10070_v14  ;;  %v10079_v20 = vld [vmem:[#allocation8 + $0xbd0] ss:$72 sps:$4 sm:$0xff]   ;;  %v10082_v21 = vld [vmem:[#allocation8 + $0xb44] ss:$72 sps:$4 sm:$0xff]   ;;  %v10072_v22 = vld [vmem:[#allocation8 + $0x240] ss:$72 sps:$4 sm:$0xff]  }
  0xd0   : > { %573 = vadd.xlane.f32.xlu0 %v572_v7  ;;  %v10074_v23 = vld [vmem:[#allocation8 + $0x1b4] ss:$72 sps:$4 sm:$0xff]   ;;  %v10085_v24 = vld [vmem:[#allocation8 + $0xb40] ss:$72 sps:$4 sm:$0xff]   ;;  %v10078_v26 = vld [vmem:[#allocation8 + $0x1b0] ss:$72 sps:$4 sm:$0xff]  }
  0xd1   : > { %3898 = vmatpush1.bf16.msra.mxu0 %v10061_v13  ;;  %v10088_v25 = vld [vmem:[#allocation8 + $0xab4] ss:$72 sps:$4 sm:$0xff]   ;;  %v10080_v27 = vld [vmem:[#allocation8 + $0x124] ss:$72 sps:$4 sm:$0xff]   ;;  %v10091_v28 = vld [vmem:[#allocation8 + $0xab0] ss:$72 sps:$4 sm:$0xff]  }
  0xd2   : > { %3899 = vmatprep.subr.bf16.mxu0 %v10062_v15  ;;  %3939 = vmatpush1.bf16.msra.mxu1 %v10073_v16  ;;  %v10094_v29 = vld [vmem:[#allocation8 + $0xa24] ss:$72 sps:$4 sm:$0xff]   ;;  %v10084_v30 = vld [vmem:[#allocation8 + $0x120] ss:$72 sps:$4 sm:$0xff]   ;;  %v10086_v31 = vld [vmem:[#allocation8 + $0x94] ss:$72 sps:$4 sm:$0xff]  }
  0xd3   : > { %3940 = vmatprep.subr.bf16.mxu1 %v10076_v17  ;;  %v10097_v32 = vld [vmem:[#allocation8 + $0xa20] ss:$72 sps:$4 sm:$0xff]   ;;  %v10100_v33 = vld [vmem:[#allocation8 + $0x994] ss:$72 sps:$4 sm:$0xff]   ;;  %v10090_v34 = vld [vmem:[#allocation8 + $0x90] ss:$72 sps:$4 sm:$0xff]  }
  0xd4   : > { %v10092_v35 = vld [vmem:[#allocation8 + $0x4] ss:$72 sps:$4 sm:$0xff]   ;;  %v10103_v36 = vld [vmem:[#allocation8 + $0x990] ss:$72 sps:$4 sm:$0xff]   ;;  %v10096_v38 = vld [vmem:[#allocation8] ss:$72 sps:$4 sm:$0xff]  }
  0xd5   : > { %3900 = vmatpush1.bf16.msra.mxu0 %v10066_v18  ;;  %v10106_v37 = vld [vmem:[#allocation8 + $0x904] ss:$72 sps:$4 sm:$0xff]   ;;  %v10098_v39 = vld [vmem:[#allocation8 + $0x874] ss:$72 sps:$4 sm:$0xff]   ;;  %v10109_v40 = vld [vmem:[#allocation8 + $0x900] ss:$72 sps:$4 sm:$0xff]  }
  0xd6   : > { %3901 = vmatprep.subr.bf16.mxu0 %v10068_v19  ;;  %3941 = vmatpush1.bf16.msra.mxu1 %v10079_v20  ;;  %v10102_v41 = vld [vmem:[#allocation8 + $0x870] ss:$72 sps:$4 sm:$0xff]   ;;  %v10104_v42 = vld [vmem:[#allocation8 + $0x7e4] ss:$72 sps:$4 sm:$0xff]   ;;  %v10108_v43 = vld [vmem:[#allocation8 + $0x7e0] ss:$72 sps:$4 sm:$0xff]  }
  0xd7   : > { %3942 = vmatprep.subr.bf16.mxu1 %v10082_v21  ;;  %v10110_v58 = vld [vmem:[#allocation8 + $0x754] ss:$72 sps:$4 sm:$0xff]   ;;  %v10114_v60 = vld [vmem:[#allocation8 + $0x750] ss:$72 sps:$4 sm:$0xff]   ;;  %v10116_v62 = vld [vmem:[#allocation8 + $0x6c4] ss:$72 sps:$4 sm:$0xff]  }
  0xd8   : > { %v10112_v59 = vld [vmem:[#allocation8 + $0x1054] ss:$72 sps:$4 sm:$0xff]   ;;  %v10115_v61 = vld [vmem:[#allocation8 + $0x1050] ss:$72 sps:$4 sm:$0xff]   ;;  %v10118_v63 = vld [vmem:[#allocation8 + $0xfc4] ss:$72 sps:$4 sm:$0xff]  }
  0xd9   : > { %3902 = vmatpush1.bf16.msra.mxu0 %v10072_v22  ;;  %v10126_v4 = vld [vmem:[#allocation8 + $0x630] ss:$72 sps:$4 sm:$0xff]   ;;  %v10128_v6 = vld [vmem:[#allocation8 + $0x5a4] ss:$72 sps:$4 sm:$0xff]   ;;  %v10132_v8 = vld [vmem:[#allocation8 + $0x5a0] ss:$72 sps:$4 sm:$0xff]  }
  0xda   : > { %3903 = vmatprep.subr.bf16.mxu0 %v10074_v23  ;;  %3943 = vmatpush1.bf16.msra.mxu1 %v10085_v24  ;;  %v10127_v5 = vld [vmem:[#allocation8 + $0xf30] ss:$72 sps:$4 sm:$0xff]   ;;  %v10130_v7 = vld [vmem:[#allocation8 + $0xea4] ss:$72 sps:$4 sm:$0xff]   ;;  %v10133_v9 = vld [vmem:[#allocation8 + $0xea0] ss:$72 sps:$4 sm:$0xff]   ;;  %v599_v23 = vlaneseq }
  0xdb   : > { %3944 = vmatprep.subr.bf16.mxu1 %v10088_v25  ;;  %v10134_v10 = vld [vmem:[#allocation8 + $0x514] ss:$72 sps:$4 sm:$0xff]   ;;  %v10138_v12 = vld [vmem:[#allocation8 + $0x510] ss:$72 sps:$4 sm:$0xff]   ;;  %v10140_v14 = vld [vmem:[#allocation8 + $0x484] ss:$72 sps:$4 sm:$0xff]  }
  0xdc   : > { %v10136_v11 = vld [vmem:[#allocation8 + $0xe14] ss:$72 sps:$4 sm:$0xff]   ;;  %v10139_v13 = vld [vmem:[#allocation8 + $0xe10] ss:$72 sps:$4 sm:$0xff]   ;;  %v10142_v15 = vld [vmem:[#allocation8 + $0xd84] ss:$72 sps:$4 sm:$0xff]  }
  0xdd   : > { %3904 = vmatpush1.bf16.msra.mxu0 %v10078_v26  ;;  %v10144_v16 = vld [vmem:[#allocation8 + $0x480] ss:$72 sps:$4 sm:$0xff]   ;;  %v10148_v18 = vld [vmem:[#allocation8 + $0x3fc] ss:$72 sps:$4 sm:$0xff]   ;;  %v12268_v24 = vshrl.u32 %v599_v23, 7  ;;  %s8601_s18 = scalar_lea.sflag [#allocation4], %s12197_s6 }
  0xde   : > { %3905 = vmatprep.subr.bf16.mxu0 %v10080_v27  ;;  %3945 = vmatpush1.bf16.msra.mxu1 %v10091_v28  ;;  %v10145_v17 = vld [vmem:[#allocation8 + $0xd80] ss:$72 sps:$4 sm:$0xff]   ;;  %v10151_v19 = vld [vmem:[#allocation8 + $0xcfc] ss:$72 sps:$4 sm:$0xff]   ;;  %p13295_p3 = scmp.ne.s32.totalorder %s13278_s25, 0  ;;  %s11937_s27 = smov [#allocation20]  }
  0xdf   : > { %3946 = vmatprep.subr.bf16.mxu1 %v10094_v29  ;;  %v12271_v25 = vsub.s32 1, %v12268_v24  ;;  %v12274_v26 = vsub.s32 3, %v12268_v24  ;;  %v12277_v27 = vsub.s32 0, %v12268_v24  ;;  %v12280_v28 = vsub.s32 2, %v12268_v24  ;;  %v566_v29 = vld [vmem:[#allocation5] sm:$0xf] }
  0xe0   : > { %s11838_s2 = sshll.u32 %s11937_s27, 4  ;;  %s11839_s2 = int_to_ptr.vmem [resolvable:$false] %s11838_s2 }
  0xe1   : > { %3906 = vmatpush1.bf16.msra.mxu0 %v10084_v30  ;;  %v567_v30 = vld [vmem:[#allocation7] sm:$0xf]  ;;  %s11840_s3 = scalar_lea.vmem %s11839_s2, 1024 }
  0xe2   : > { %3907 = vmatprep.subr.bf16.mxu0 %v10086_v31  ;;  %3947 = vmatpush1.bf16.msra.mxu1 %v10097_v32  ;;  %v606_v31 = vrot.slane %v566_v29, %v12271_v25  ;;  %v614_v32 = vrot.slane %v566_v29, %v12274_v26 }
  0xe3   : > { %3948 = vmatprep.subr.bf16.mxu1 %v10100_v33  ;;  %v602_v33 = vrot.slane %v566_v29, %v12277_v27 }
  0xe5   : > { %3908 = vmatpush1.bf16.msra.mxu0 %v10090_v34  ;;  %v610_v34 = vrot.slane %v566_v29, %v12280_v28  ;;  %v10199_v29 = vld [vmem:[#allocation8 + $0x105c] ss:$72 sps:$4 sm:$0xff]  }
  0xe6   : > { %3909 = vmatprep.subr.bf16.mxu0 %v10092_v35  ;;  %3949 = vmatpush1.bf16.msra.mxu1 %v10103_v36  ;;  %v631_v36 = vrot.slane %v567_v30, %v12271_v25 }
  0xe7   : > { %3950 = vmatprep.subr.bf16.mxu1 %v10106_v37  ;;  %v639_v37 = vrot.slane %v567_v30, %v12274_v26 }
  0xe9   : > { %3910 = vmatpush1.bf16.msra.mxu0 %v10096_v38  ;;  %v627_v38 = vrot.slane %v567_v30, %v12277_v27 }
  0xea   : > { %3911 = vmatprep.subr.bf16.mxu0 %v10098_v39  ;;  %3951 = vmatpush1.bf16.msra.mxu1 %v10109_v40  ;;  %v635_v39 = vrot.slane %v567_v30, %v12280_v28  ;;  %v10194_v30 = vld [vmem:[#allocation8 + $0x878] ss:$72 sps:$4 sm:$0xff]  }
  0xeb   : > { %3956 = vmatprep.subr.bf16.mxu1 %v10112_v59 }
  0xed   : > { %3912 = vmatpush2.bf16.msra.mxu0 %v10102_v41 }
  0xee   : > { %3913 = vmatprep.subr.bf16.mxu0 %v10104_v42  ;;  %3957 = vmatpush2.bf16.msra.mxu1 %v10115_v61  ;;  %v10155_v61 = vld [vmem:[#allocation8 + $0xc68] ss:$72 sps:$4 sm:$0xff]  }
  0xef   : > { %3958 = vmatprep.subr.bf16.mxu1 %v10118_v63  ;;  %v10163_v63 = vld [vmem:[#allocation8 + $0xbdc] ss:$72 sps:$4 sm:$0xff]  }
  0xf1   : > { %3914 = vmatpush2.bf16.msra.mxu0 %v10108_v43 }
  0xf2   : > { %3915 = vmatprep.subr.bf16.mxu0 %v10110_v58 }
  0xf5   : > { %3916 = vmatpush2.bf16.msra.mxu0 %v10114_v60  ;;  %v10152_v60 = vld [vmem:[#allocation8 + $0x368] ss:$72 sps:$4 sm:$0xff]  }
  0xf6   : > { %3917 = vmatprep.subr.bf16.mxu0 %v10116_v62  ;;  %v10160_v62 = vld [vmem:[#allocation8 + $0x2dc] ss:$72 sps:$4 sm:$0xff]  }
 0x159   : > { %v574_v44 = vpop.xlane.xlu0 %573 }
 0x15a   : > { %v576_v45 = vmul.f32 0.0020833334, %v574_v44 }
 0x15c   : > { %v12247_v46 = vsub.f32 %v12230_v0, %v576_v45  ;;  %v12250_v47 = vsub.f32 %v12233_v1, %v576_v45  ;;  %v12253_v48 = vsub.f32 %v12236_v2, %v576_v45  ;;  %v12256_v49 = vsub.f32 %v12239_v3, %v576_v45  ;;  %v10120_v0 = vld [vmem:[#allocation8 + $0x6c0] ss:$72 sps:$4 sm:$0xff]   ;;  %v10122_v2 = vld [vmem:[#allocation8 + $0x634] ss:$72 sps:$4 sm:$0xff]  }
 0x15d   : > { %v10121_v1 = vld [vmem:[#allocation8 + $0xfc0] ss:$72 sps:$4 sm:$0xff]   ;;  %v10124_v3 = vld [vmem:[#allocation8 + $0xf34] ss:$72 sps:$4 sm:$0xff]   ;;  %3918 = vmatpush2.bf16.msra.mxu0 %v10120_v0 }
 0x15e   : > { %v581_v50 = vmul.f32 %v12247_v46, %v12247_v46  ;;  %v582_v51 = vmul.f32 %v12250_v47, %v12250_v47  ;;  %v584_v52 = vmul.f32 %v12256_v49, %v12256_v49  ;;  %v583_v53 = vmul.f32 %v12253_v48, %v12253_v48  ;;  %3959 = vmatpush2.bf16.msra.mxu1 %v10121_v1  ;;  %v10158_v0 = vld [vmem:[#allocation8 + $0x2d8] ss:$72 sps:$4 sm:$0xff]  }
 0x15f   : > { %3919 = vmatprep.subr.bf16.mxu0 %v10122_v2  ;;  %3960 = vmatprep.subr.bf16.mxu1 %v10124_v3  ;;  %v10161_v1 = vld [vmem:[#allocation8 + $0xbd8] ss:$72 sps:$4 sm:$0xff]   ;;  %v10166_v2 = vld [vmem:[#allocation8 + $0x24c] ss:$72 sps:$4 sm:$0xff]  }
 0x160   : > { %v585_v54 = vadd.f32 %v582_v51, %v581_v50  ;;  %v587_v56 = vsel %vm570_vm0, %v584_v52, 0.0  ;;  %v10169_v3 = vld [vmem:[#allocation8 + $0xb4c] ss:$72 sps:$4 sm:$0xff]  }
 0x161   : > { %3920 = vmatpush2.bf16.msra.mxu0 %v10126_v4  ;;  %v10164_v4 = vld [vmem:[#allocation8 + $0x248] ss:$72 sps:$4 sm:$0xff]  }
 0x162   : > { %v586_v55 = vadd.f32 %v585_v54, %v583_v53  ;;  %3961 = vmatpush2.bf16.msra.mxu1 %v10127_v5  ;;  %3921 = vmatprep.subr.bf16.mxu0 %v10128_v6  ;;  %v10146_v54 = vld [vmem:[#allocation8 + $0x3f8] ss:$72 sps:$4 sm:$0xff]   ;;  %v10167_v5 = vld [vmem:[#allocation8 + $0xb48] ss:$72 sps:$4 sm:$0xff]   ;;  %v10172_v6 = vld [vmem:[#allocation8 + $0x1bc] ss:$72 sps:$4 sm:$0xff]  }
 0x163   : > { %3962 = vmatprep.subr.bf16.mxu1 %v10130_v7  ;;  %v10175_v7 = vld [vmem:[#allocation8 + $0xabc] ss:$72 sps:$4 sm:$0xff]  }
 0x164   : > { %v588_v57 = vadd.f32 %v587_v56, %v586_v55  ;;  %v10149_v55 = vld [vmem:[#allocation8 + $0xcf8] ss:$72 sps:$4 sm:$0xff]  }
 0x165   : > { %3922 = vmatpush2.bf16.msra.mxu0 %v10132_v8  ;;  %v10170_v8 = vld [vmem:[#allocation8 + $0x1b8] ss:$72 sps:$4 sm:$0xff]  }
 0x166   : > { %589 = vadd.xlane.f32.xlu0 %v588_v57  ;;  %3963 = vmatpush2.bf16.msra.mxu1 %v10133_v9  ;;  %v10173_v9 = vld [vmem:[#allocation8 + $0xab8] ss:$72 sps:$4 sm:$0xff]  }
 0x167   : > { %3923 = vmatprep.subr.bf16.mxu0 %v10134_v10  ;;  %3964 = vmatprep.subr.bf16.mxu1 %v10136_v11  ;;  %v10178_v10 = vld [vmem:[#allocation8 + $0x12c] ss:$72 sps:$4 sm:$0xff]  }
 0x168   : > { %v10181_v11 = vld [vmem:[#allocation8 + $0xa2c] ss:$72 sps:$4 sm:$0xff]  }
 0x169   : > { %3924 = vmatpush2.bf16.msra.mxu0 %v10138_v12  ;;  %v10176_v12 = vld [vmem:[#allocation8 + $0x128] ss:$72 sps:$4 sm:$0xff]  }
 0x16a   : > { %3965 = vmatpush2.bf16.msra.mxu1 %v10139_v13  ;;  %3925 = vmatprep.subr.bf16.mxu0 %v10140_v14  ;;  %v10179_v13 = vld [vmem:[#allocation8 + $0xa28] ss:$72 sps:$4 sm:$0xff]   ;;  %v10184_v14 = vld [vmem:[#allocation8 + $0x9c] ss:$72 sps:$4 sm:$0xff]  }
 0x16b   : > { %3966 = vmatprep.subr.bf16.mxu1 %v10142_v15  ;;  %v10187_v15 = vld [vmem:[#allocation8 + $0x99c] ss:$72 sps:$4 sm:$0xff]  }
 0x16d   : > { %3926 = vmatpush2.bf16.msra.mxu0 %v10144_v16  ;;  %v10182_v16 = vld [vmem:[#allocation8 + $0x98] ss:$72 sps:$4 sm:$0xff]  }
 0x16e   : > { %3967 = vmatpush2.bf16.msra.mxu1 %v10145_v17  ;;  %4018 = vmatprep.subr.bf16.mxu0 %v10151_v19  ;;  %v10185_v17 = vld [vmem:[#allocation8 + $0x998] ss:$72 sps:$4 sm:$0xff]   ;;  %v10193_v19 = vld [vmem:[#allocation8 + $0x90c] ss:$72 sps:$4 sm:$0xff]  }
 0x16f   : > { %3977 = vmatprep.subr.bf16.mxu1 %v10148_v18  ;;  %v10190_v18 = vld [vmem:[#allocation8 + $0xc] ss:$72 sps:$4 sm:$0xff]  }
 0x1ef   : > { %v590_v20 = vpop.xlane.xlu0 %589 }
 0x1f0   : > { %v591_v21 = vmul.f32 0.0020833334, %v590_v20  ;;  %v10188_v20 = vld [vmem:[#allocation8 + $0x8] ss:$72 sps:$4 sm:$0xff]  }
 0x1f2   : > { %v592_v22 = vadd.f32 1e-05, %v591_v21  ;;  %v10191_v21 = vld [vmem:[#allocation8 + $0x908] ss:$72 sps:$4 sm:$0xff]  }
 0x1f4   : > { %11514 = vrsqrt.f32 %v592_v22  ;;  %v10196_v22 = vld [vmem:[#allocation8 + $0x87c] ss:$72 sps:$4 sm:$0xff]  }
 0x201   : > { %v11515_v35 = vpop.eup %11514 }
 0x202   : > { %v595_v40 = vmul.f32 %v11515_v35, %v12250_v47  ;;  %v597_v41 = vmul.f32 %v11515_v35, %v12256_v49  ;;  %v594_v42 = vmul.f32 %v11515_v35, %v12247_v46  ;;  %v596_v43 = vmul.f32 %v11515_v35, %v12253_v48  ;;  %v10154_v46 = vld [vmem:[#allocation8 + $0x36c] ss:$72 sps:$4 sm:$0xff]   ;;  %v10203_v35 = vld [vmem:[#allocation8 + $0xfc8] ss:$72 sps:$4 sm:$0xff]  }
 0x203   : > { %v10157_v48 = vld [vmem:[#allocation8 + $0xc6c] ss:$72 sps:$4 sm:$0xff]  }
 0x204   : > { %v620_v44 = vmul.f32 %v606_v31, %v595_v40  ;;  %v622_v45 = vmul.f32 %v614_v32, %v597_v41  ;;  %v619_v50 = vmul.f32 %v602_v33, %v594_v42  ;;  %v621_v51 = vmul.f32 %v610_v34, %v596_v43  ;;  %v10197_v31 = vld [vmem:[#allocation8 + $0x1058] ss:$72 sps:$4 sm:$0xff]   ;;  %v10202_v32 = vld [vmem:[#allocation8 + $0x7ec] ss:$72 sps:$4 sm:$0xff]   ;;  %v10200_v34 = vld [vmem:[#allocation8 + $0x7e8] ss:$72 sps:$4 sm:$0xff]  }
 0x205   : > { %v10205_v33 = vld [vmem:[#allocation8 + $0xfcc] ss:$72 sps:$4 sm:$0xff]   ;;  %v10212_v42 = vld [vmem:[#allocation8 + $0x6c8] ss:$72 sps:$4 sm:$0xff]  }
 0x206   : > { %v645_v52 = vadd.f32 %v631_v36, %v620_v44  ;;  %v647_v53 = vadd.f32 %v639_v37, %v622_v45  ;;  %v644_v56 = vadd.f32 %v627_v38, %v619_v50  ;;  %v646_v57 = vadd.f32 %v635_v39, %v621_v51  ;;  %v10208_v36 = vld [vmem:[#allocation8 + $0x75c] ss:$72 sps:$4 sm:$0xff]   ;;  %v10206_v38 = vld [vmem:[#allocation8 + $0x758] ss:$72 sps:$4 sm:$0xff]   ;;  %v10214_v40 = vld [vmem:[#allocation8 + $0x6cc] ss:$72 sps:$4 sm:$0xff]  }
 0x207   : > { %v10211_v37 = vld [vmem:[#allocation8 + $0xf3c] ss:$72 sps:$4 sm:$0xff]   ;;  %v10209_v39 = vld [vmem:[#allocation8 + $0xf38] ss:$72 sps:$4 sm:$0xff]   ;;  %v10217_v41 = vld [vmem:[#allocation8 + $0xeac] ss:$72 sps:$4 sm:$0xff]  }
 0x208   : > { %v12294_v58 = vpack.c.bf16 %v645_v52, %v645_v52  ;;  %v12296_v59 = vpack.c.bf16 %v647_v53, %v647_v53  ;;  %v12298_v47 = vpack.c.bf16 %v644_v56, %v644_v56  ;;  %v12300_v49 = vpack.c.bf16 %v646_v57, %v646_v57  ;;  %v10215_v43 = vld [vmem:[#allocation8 + $0xea8] ss:$72 sps:$4 sm:$0xff]   ;;  %v10220_v44 = vld [vmem:[#allocation8 + $0x63c] ss:$72 sps:$4 sm:$0xff]   ;;  %v10218_v50 = vld [vmem:[#allocation8 + $0x638] ss:$72 sps:$4 sm:$0xff]  }
 0x209   : > { %v10223_v45 = vld [vmem:[#allocation8 + $0xe1c] ss:$72 sps:$4 sm:$0xff]   ;;  %v10221_v51 = vld [vmem:[#allocation8 + $0xe18] ss:$72 sps:$4 sm:$0xff]   ;;  %v10226_v52 = vld [vmem:[#allocation8 + $0x5ac] ss:$72 sps:$4 sm:$0xff]  }
 0x20a   : > { %3927 = vmatprep.mubr.bf16.mxu0 %v12294_v58  ;;  %9349 = vmatprep.mubr.msk.bf16.mxu1 %vm570_vm0, %v12296_v59  ;;  %v10229_v53 = vld [vmem:[#allocation8 + $0xd8c] ss:$72 sps:$4 sm:$0xff]   ;;  %v10232_v56 = vld [vmem:[#allocation8 + $0x51c] ss:$72 sps:$4 sm:$0xff]  }
 0x20b   : > { %3928 = vmatmul.mubr.bf16.vlgmr.msra.gmra.mxu0 %v12298_v47  ;;  %3969 = vmatmul.mubr.bf16.vlgmr.msra.gmra.mxu1 %v12300_v49  ;;  %v10235_v57 = vld [vmem:[#allocation8 + $0x404] ss:$72 sps:$4 sm:$0xff]  }
 0x20c   : > { %3978 = vmatpush1.bf16.msra.mxu1 %v10146_v54  ;;  %4019 = vmatpush1.bf16.msra.mxu0 %v10149_v55  ;;  %v10224_v54 = vld [vmem:[#allocation8 + $0x5a8] ss:$72 sps:$4 sm:$0xff]  }
 0x20d   : > { %4009 = vmatprep.mubr.bf16.mxu1 %v12294_v58  ;;  %9350 = vmatprep.mubr.msk.bf16.mxu0 %vm570_vm0, %v12296_v59  ;;  %v10227_v55 = vld [vmem:[#allocation8 + $0xd88] ss:$72 sps:$4 sm:$0xff]  }
 0x20e   : > { %3979 = vmatprep.subr.bf16.mxu1 %v10154_v46  ;;  %4020 = vmatprep.subr.bf16.mxu0 %v10157_v48  ;;  %v10230_v46 = vld [vmem:[#allocation8 + $0x518] ss:$72 sps:$4 sm:$0xff]  }
 0x20f   : > { %v10233_v48 = vld [vmem:[#allocation8 + $0x400] ss:$72 sps:$4 sm:$0xff]  }
 0x210   : > { %3980 = vmatpush1.bf16.msra.mxu1 %v10152_v60  ;;  %4021 = vmatpush1.bf16.msra.mxu0 %v10155_v61  ;;  %v10238_v60 = vld [vmem:[#allocation8 + $0x48c] ss:$72 sps:$4 sm:$0xff]  }
 0x211   : > { %3981 = vmatprep.subr.bf16.mxu1 %v10160_v62  ;;  %4022 = vmatprep.subr.bf16.mxu0 %v10163_v63  ;;  %v10241_v61 = vld [vmem:[#allocation8 + $0x374] ss:$72 sps:$4 sm:$0xff]   ;;  %v10236_v62 = vld [vmem:[#allocation8 + $0x488] ss:$72 sps:$4 sm:$0xff]  }
 0x212   : > { %v10239_v63 = vld [vmem:[#allocation8 + $0x370] ss:$72 sps:$4 sm:$0xff]  }
 0x214   : > { %3982 = vmatpush1.bf16.msra.mxu1 %v10158_v0  ;;  %4023 = vmatpush1.bf16.msra.mxu0 %v10161_v1  ;;  %v10244_v0 = vld [vmem:[#allocation8 + $0x2e4] ss:$72 sps:$4 sm:$0xff]  }
 0x215   : > { %3983 = vmatprep.subr.bf16.mxu1 %v10166_v2  ;;  %4024 = vmatprep.subr.bf16.mxu0 %v10169_v3  ;;  %v10247_v1 = vld [vmem:[#allocation8 + $0xd04] ss:$72 sps:$4 sm:$0xff]   ;;  %v10242_v2 = vld [vmem:[#allocation8 + $0x2e0] ss:$72 sps:$4 sm:$0xff]  }
 0x216   : > { %v10245_v3 = vld [vmem:[#allocation8 + $0xd00] ss:$72 sps:$4 sm:$0xff]  }
 0x218   : > { %3984 = vmatpush1.bf16.msra.mxu1 %v10164_v4  ;;  %4025 = vmatpush1.bf16.msra.mxu0 %v10167_v5  ;;  %v10250_v4 = vld [vmem:[#allocation8 + $0x254] ss:$72 sps:$4 sm:$0xff]   ;;  %v10248_v5 = vld [vmem:[#allocation8 + $0x250] ss:$72 sps:$4 sm:$0xff]  }
 0x219   : > { %3985 = vmatprep.subr.bf16.mxu1 %v10172_v6  ;;  %4026 = vmatprep.subr.bf16.mxu0 %v10175_v7  ;;  %v10251_v6 = vld [vmem:[#allocation8 + $0xc70] ss:$72 sps:$4 sm:$0xff]   ;;  %v10253_v7 = vld [vmem:[#allocation8 + $0xc74] ss:$72 sps:$4 sm:$0xff]  }
 0x21c   : > { %3986 = vmatpush1.bf16.msra.mxu1 %v10170_v8  ;;  %4027 = vmatpush1.bf16.msra.mxu0 %v10173_v9  ;;  %v10256_v8 = vld [vmem:[#allocation8 + $0x1c4] ss:$72 sps:$4 sm:$0xff]  }
 0x21d   : > { %3987 = vmatprep.subr.bf16.mxu1 %v10178_v10  ;;  %4028 = vmatprep.subr.bf16.mxu0 %v10181_v11  ;;  %v10259_v9 = vld [vmem:[#allocation8 + $0xbe4] ss:$72 sps:$4 sm:$0xff]   ;;  %v10254_v10 = vld [vmem:[#allocation8 + $0x1c0] ss:$72 sps:$4 sm:$0xff]  }
 0x21e   : > { %v10257_v11 = vld [vmem:[#allocation8 + $0xbe0] ss:$72 sps:$4 sm:$0xff]  }
 0x220   : > { %3988 = vmatpush1.bf16.msra.mxu1 %v10176_v12  ;;  %4029 = vmatpush1.bf16.msra.mxu0 %v10179_v13  ;;  %v10262_v12 = vld [vmem:[#allocation8 + $0x134] ss:$72 sps:$4 sm:$0xff]  }
 0x221   : > { %3989 = vmatprep.subr.bf16.mxu1 %v10184_v14  ;;  %4030 = vmatprep.subr.bf16.mxu0 %v10187_v15  ;;  %v10265_v13 = vld [vmem:[#allocation8 + $0xb54] ss:$72 sps:$4 sm:$0xff]   ;;  %v10260_v14 = vld [vmem:[#allocation8 + $0x130] ss:$72 sps:$4 sm:$0xff]  }
 0x222   : > { %v10263_v15 = vld [vmem:[#allocation8 + $0xb50] ss:$72 sps:$4 sm:$0xff]  }
 0x224   : > { %3990 = vmatpush1.bf16.msra.mxu1 %v10182_v16  ;;  %4031 = vmatpush1.bf16.msra.mxu0 %v10185_v17  ;;  %v10268_v16 = vld [vmem:[#allocation8 + $0xa4] ss:$72 sps:$4 sm:$0xff]  }
 0x225   : > { %3991 = vmatprep.subr.bf16.mxu1 %v10190_v18  ;;  %4032 = vmatprep.subr.bf16.mxu0 %v10193_v19  ;;  %v10271_v17 = vld [vmem:[#allocation8 + $0xac4] ss:$72 sps:$4 sm:$0xff]   ;;  %v10266_v18 = vld [vmem:[#allocation8 + $0xa0] ss:$72 sps:$4 sm:$0xff]  }
 0x226   : > { %v10269_v19 = vld [vmem:[#allocation8 + $0xac0] ss:$72 sps:$4 sm:$0xff]  }
 0x228   : > { %3992 = vmatpush1.bf16.msra.mxu1 %v10188_v20  ;;  %4033 = vmatpush1.bf16.msra.mxu0 %v10191_v21  ;;  %v10274_v20 = vld [vmem:[#allocation8 + $0x14] ss:$72 sps:$4 sm:$0xff]  }
 0x229   : > { %3993 = vmatprep.subr.bf16.mxu1 %v10196_v22  ;;  %4038 = vmatprep.subr.bf16.mxu0 %v10199_v29  ;;  %v10277_v21 = vld [vmem:[#allocation8 + $0xa34] ss:$72 sps:$4 sm:$0xff]   ;;  %v10272_v22 = vld [vmem:[#allocation8 + $0x10] ss:$72 sps:$4 sm:$0xff]  }
 0x22a   : > { %v10275_v29 = vld [vmem:[#allocation8 + $0xa30] ss:$72 sps:$4 sm:$0xff]  }
 0x22c   : > { %3994 = vmatpush2.bf16.msra.mxu1 %v10194_v30  ;;  %4039 = vmatpush2.bf16.msra.mxu0 %v10197_v31  ;;  %v10280_v30 = vld [vmem:[#allocation8 + $0x884] ss:$72 sps:$4 sm:$0xff]  }
 0x22d   : > { %3995 = vmatprep.subr.bf16.mxu1 %v10202_v32  ;;  %4040 = vmatprep.subr.bf16.mxu0 %v10205_v33  ;;  %v10283_v31 = vld [vmem:[#allocation8 + $0x9a4] ss:$72 sps:$4 sm:$0xff]   ;;  %v10278_v32 = vld [vmem:[#allocation8 + $0x880] ss:$72 sps:$4 sm:$0xff]  }
 0x22e   : > { %v10281_v33 = vld [vmem:[#allocation8 + $0x9a0] ss:$72 sps:$4 sm:$0xff]  }
 0x230   : > { %3996 = vmatpush2.bf16.msra.mxu1 %v10200_v34  ;;  %4041 = vmatpush2.bf16.msra.mxu0 %v10203_v35  ;;  %v10286_v34 = vld [vmem:[#allocation8 + $0x7f4] ss:$72 sps:$4 sm:$0xff]  }
 0x231   : > { %3997 = vmatprep.subr.bf16.mxu1 %v10208_v36  ;;  %4042 = vmatprep.subr.bf16.mxu0 %v10211_v37  ;;  %v10289_v35 = vld [vmem:[#allocation8 + $0x914] ss:$72 sps:$4 sm:$0xff]   ;;  %v10284_v36 = vld [vmem:[#allocation8 + $0x7f0] ss:$72 sps:$4 sm:$0xff]  }
 0x232   : > { %v10287_v37 = vld [vmem:[#allocation8 + $0x910] ss:$72 sps:$4 sm:$0xff]  }
 0x234   : > { %3998 = vmatpush2.bf16.msra.mxu1 %v10206_v38  ;;  %4043 = vmatpush2.bf16.msra.mxu0 %v10209_v39  ;;  %v10292_v38 = vld [vmem:[#allocation8 + $0x764] ss:$72 sps:$4 sm:$0xff]  }
 0x235   : > { %3999 = vmatprep.subr.bf16.mxu1 %v10214_v40  ;;  %4044 = vmatprep.subr.bf16.mxu0 %v10217_v41  ;;  %v10295_v39 = vld [vmem:[#allocation8 + $0x1064] ss:$72 sps:$4 sm:$0xff]   ;;  %v10290_v40 = vld [vmem:[#allocation8 + $0x760] ss:$72 sps:$4 sm:$0xff]  }
 0x236   : > { %v10293_v41 = vld [vmem:[#allocation8 + $0x1060] ss:$72 sps:$4 sm:$0xff]  }
 0x238   : > { %4000 = vmatpush2.bf16.msra.mxu1 %v10212_v42  ;;  %4045 = vmatpush2.bf16.msra.mxu0 %v10215_v43  ;;  %v10298_v42 = vld [vmem:[#allocation8 + $0x6d4] ss:$72 sps:$4 sm:$0xff]  }
 0x239   : > { %4001 = vmatprep.subr.bf16.mxu1 %v10220_v44  ;;  %4046 = vmatprep.subr.bf16.mxu0 %v10223_v45  ;;  %v10301_v43 = vld [vmem:[#allocation8 + $0xfd4] ss:$72 sps:$4 sm:$0xff]   ;;  %v10296_v44 = vld [vmem:[#allocation8 + $0x6d0] ss:$72 sps:$4 sm:$0xff]  }
 0x23a   : > { %v10299_v45 = vld [vmem:[#allocation8 + $0xfd0] ss:$72 sps:$4 sm:$0xff]  }
 0x23c   : > { %4002 = vmatpush2.bf16.msra.mxu1 %v10218_v50  ;;  %4047 = vmatpush2.bf16.msra.mxu0 %v10221_v51  ;;  %v10304_v50 = vld [vmem:[#allocation8 + $0x644] ss:$72 sps:$4 sm:$0xff]  }
 0x23d   : > { %4003 = vmatprep.subr.bf16.mxu1 %v10226_v52  ;;  %4048 = vmatprep.subr.bf16.mxu0 %v10229_v53  ;;  %v10307_v51 = vld [vmem:[#allocation8 + $0xf44] ss:$72 sps:$4 sm:$0xff]   ;;  %v10302_v52 = vld [vmem:[#allocation8 + $0x640] ss:$72 sps:$4 sm:$0xff]  }
 0x23e   : > { %v10305_v53 = vld [vmem:[#allocation8 + $0xf40] ss:$72 sps:$4 sm:$0xff]  }
 0x240   : > { %4004 = vmatpush2.bf16.msra.mxu1 %v10224_v54  ;;  %4049 = vmatpush2.bf16.msra.mxu0 %v10227_v55  ;;  %v10310_v54 = vld [vmem:[#allocation8 + $0x5b4] ss:$72 sps:$4 sm:$0xff]  }
 0x241   : > { %4005 = vmatprep.subr.bf16.mxu1 %v10232_v56  ;;  %4059 = vmatprep.subr.bf16.mxu0 %v10235_v57  ;;  %v10313_v55 = vld [vmem:[#allocation8 + $0xeb4] ss:$72 sps:$4 sm:$0xff]   ;;  %v10308_v56 = vld [vmem:[#allocation8 + $0x5b0] ss:$72 sps:$4 sm:$0xff]  }
 0x242   : > { %v10311_v57 = vld [vmem:[#allocation8 + $0xeb0] ss:$72 sps:$4 sm:$0xff]  }
 0x243   : > { %4051 = vmatmul.mubr.bf16.vlgmr.msra.gmra.mxu0 %v12300_v49 }
 0x244   : > { %4006 = vmatpush2.bf16.msra.mxu1 %v10230_v46  ;;  %4060 = vmatpush1.bf16.msra.mxu0 %v10233_v48  ;;  %v10316_v46 = vld [vmem:[#allocation8 + $0x524] ss:$72 sps:$4 sm:$0xff]  }
 0x245   : > { %4091 = vmatprep.mubr.bf16.mxu0 %v12294_v58  ;;  %4007 = vmatprep.subr.bf16.mxu1 %v10238_v60  ;;  %v10319_v48 = vld [vmem:[#allocation8 + $0xe24] ss:$72 sps:$4 sm:$0xff]   ;;  %v10314_v60 = vld [vmem:[#allocation8 + $0x520] ss:$72 sps:$4 sm:$0xff]  }
 0x246   : > { %4061 = vmatprep.subr.bf16.mxu0 %v10241_v61  ;;  %v10317_v61 = vld [vmem:[#allocation8 + $0xe20] ss:$72 sps:$4 sm:$0xff]  }
 0x248   : > { %4008 = vmatpush2.bf16.msra.mxu1 %v10236_v62  ;;  %4062 = vmatpush1.bf16.msra.mxu0 %v10239_v63  ;;  %v10322_v62 = vld [vmem:[#allocation8 + $0x494] ss:$72 sps:$4 sm:$0xff]  }
 0x249   : > { %4063 = vmatprep.subr.bf16.mxu0 %v10244_v0  ;;  %4100 = vmatprep.subr.bf16.mxu1 %v10247_v1  ;;  %v10325_v63 = vld [vmem:[#allocation8 + $0xd94] ss:$72 sps:$4 sm:$0xff]   ;;  %v10320_v0 = vld [vmem:[#allocation8 + $0x490] ss:$72 sps:$4 sm:$0xff]  }
 0x24a   : > { %v10323_v1 = vld [vmem:[#allocation8 + $0xd90] ss:$72 sps:$4 sm:$0xff]  }
 0x24b   : > { %4010 = vmatmul.mubr.bf16.vlgmr.msra.gmra.mxu1 %v12298_v47 }
 0x24c   : > { %4064 = vmatpush1.bf16.msra.mxu0 %v10242_v2  ;;  %4101 = vmatpush1.bf16.msra.mxu1 %v10245_v3  ;;  %v10328_v2 = vld [vmem:[#allocation8 + $0x40c] ss:$72 sps:$4 sm:$0xff]  }
 0x24d   : > { %9351 = vmatprep.mubr.msk.bf16.mxu1 %vm570_vm0, %v12296_v59  ;;  %4065 = vmatprep.subr.bf16.mxu0 %v10250_v4  ;;  %v10331_v3 = vld [vmem:[#allocation8 + $0xd0c] ss:$72 sps:$4 sm:$0xff]   ;;  %v10326_v4 = vld [vmem:[#allocation8 + $0x408] ss:$72 sps:$4 sm:$0xff]  }
 0x24e   : > { %4102 = vmatprep.subr.bf16.mxu1 %v10253_v7  ;;  %v10337_v7 = vld [vmem:[#allocation8 + $0xc7c] ss:$72 sps:$4 sm:$0xff]  }
 0x250   : > { %4066 = vmatpush1.bf16.msra.mxu0 %v10248_v5  ;;  %4103 = vmatpush1.bf16.msra.mxu1 %v10251_v6  ;;  %v10329_v5 = vld [vmem:[#allocation8 + $0xd08] ss:$72 sps:$4 sm:$0xff]   ;;  %v10334_v6 = vld [vmem:[#allocation8 + $0x37c] ss:$72 sps:$4 sm:$0xff]  }
 0x251   : > { %4067 = vmatprep.subr.bf16.mxu0 %v10256_v8  ;;  %4104 = vmatprep.subr.bf16.mxu1 %v10259_v9  ;;  %v10332_v8 = vld [vmem:[#allocation8 + $0x378] ss:$72 sps:$4 sm:$0xff]  }
 0x252   : > { %v10335_v9 = vld [vmem:[#allocation8 + $0xc78] ss:$72 sps:$4 sm:$0xff]  }
 0x254   : > { %4068 = vmatpush1.bf16.msra.mxu0 %v10254_v10  ;;  %4105 = vmatpush1.bf16.msra.mxu1 %v10257_v11  ;;  %v10340_v10 = vld [vmem:[#allocation8 + $0x2ec] ss:$72 sps:$4 sm:$0xff]  }
 0x255   : > { %4069 = vmatprep.subr.bf16.mxu0 %v10262_v12  ;;  %4106 = vmatprep.subr.bf16.mxu1 %v10265_v13  ;;  %v10343_v11 = vld [vmem:[#allocation8 + $0xbec] ss:$72 sps:$4 sm:$0xff]   ;;  %v10338_v12 = vld [vmem:[#allocation8 + $0x2e8] ss:$72 sps:$4 sm:$0xff]  }
 0x256   : > { %v10341_v13 = vld [vmem:[#allocation8 + $0xbe8] ss:$72 sps:$4 sm:$0xff]  }
 0x258   : > { %4070 = vmatpush1.bf16.msra.mxu0 %v10260_v14  ;;  %4107 = vmatpush1.bf16.msra.mxu1 %v10263_v15  ;;  %v10346_v14 = vld [vmem:[#allocation8 + $0x25c] ss:$72 sps:$4 sm:$0xff]  }
 0x259   : > { %4071 = vmatprep.subr.bf16.mxu0 %v10268_v16  ;;  %4108 = vmatprep.subr.bf16.mxu1 %v10271_v17  ;;  %v10349_v15 = vld [vmem:[#allocation8 + $0xb5c] ss:$72 sps:$4 sm:$0xff]   ;;  %v10344_v16 = vld [vmem:[#allocation8 + $0x258] ss:$72 sps:$4 sm:$0xff]  }
 0x25a   : > { %v10347_v17 = vld [vmem:[#allocation8 + $0xb58] ss:$72 sps:$4 sm:$0xff]  }
 0x25c   : > { %4072 = vmatpush1.bf16.msra.mxu0 %v10266_v18  ;;  %4109 = vmatpush1.bf16.msra.mxu1 %v10269_v19  ;;  %v10352_v18 = vld [vmem:[#allocation8 + $0x1cc] ss:$72 sps:$4 sm:$0xff]  }
 0x25d   : > { %4073 = vmatprep.subr.bf16.mxu0 %v10274_v20  ;;  %4110 = vmatprep.subr.bf16.mxu1 %v10277_v21  ;;  %v10355_v19 = vld [vmem:[#allocation8 + $0xacc] ss:$72 sps:$4 sm:$0xff]   ;;  %v10350_v20 = vld [vmem:[#allocation8 + $0x1c8] ss:$72 sps:$4 sm:$0xff]  }
 0x25e   : > { %v10353_v21 = vld [vmem:[#allocation8 + $0xac8] ss:$72 sps:$4 sm:$0xff]  }
 0x260   : > { %4074 = vmatpush1.bf16.msra.mxu0 %v10272_v22  ;;  %4111 = vmatpush1.bf16.msra.mxu1 %v10275_v29  ;;  %v10358_v22 = vld [vmem:[#allocation8 + $0x13c] ss:$72 sps:$4 sm:$0xff]  }
 0x261   : > { %4075 = vmatprep.subr.bf16.mxu0 %v10280_v30  ;;  %4112 = vmatprep.subr.bf16.mxu1 %v10283_v31  ;;  %v10361_v29 = vld [vmem:[#allocation8 + $0xa3c] ss:$72 sps:$4 sm:$0xff]   ;;  %v10356_v30 = vld [vmem:[#allocation8 + $0x138] ss:$72 sps:$4 sm:$0xff]  }
 0x262   : > { %v10359_v31 = vld [vmem:[#allocation8 + $0xa38] ss:$72 sps:$4 sm:$0xff]  }
 0x264   : > { %4076 = vmatpush2.bf16.msra.mxu0 %v10278_v32  ;;  %4113 = vmatpush1.bf16.msra.mxu1 %v10281_v33  ;;  %v10364_v32 = vld [vmem:[#allocation8 + $0xac] ss:$72 sps:$4 sm:$0xff]  }
 0x265   : > { %4077 = vmatprep.subr.bf16.mxu0 %v10286_v34  ;;  %4114 = vmatprep.subr.bf16.mxu1 %v10289_v35  ;;  %v10367_v33 = vld [vmem:[#allocation8 + $0x9ac] ss:$72 sps:$4 sm:$0xff]   ;;  %v10362_v34 = vld [vmem:[#allocation8 + $0xa8] ss:$72 sps:$4 sm:$0xff]  }
 0x266   : > { %v10365_v35 = vld [vmem:[#allocation8 + $0x9a8] ss:$72 sps:$4 sm:$0xff]  }
 0x268   : > { %4078 = vmatpush2.bf16.msra.mxu0 %v10284_v36  ;;  %4115 = vmatpush1.bf16.msra.mxu1 %v10287_v37  ;;  %v10370_v36 = vld [vmem:[#allocation8 + $0x1c] ss:$72 sps:$4 sm:$0xff]  }
 0x269   : > { %4079 = vmatprep.subr.bf16.mxu0 %v10292_v38  ;;  %4120 = vmatprep.subr.bf16.mxu1 %v10295_v39  ;;  %v10373_v37 = vld [vmem:[#allocation8 + $0x91c] ss:$72 sps:$4 sm:$0xff]   ;;  %v10368_v38 = vld [vmem:[#allocation8 + $0x18] ss:$72 sps:$4 sm:$0xff]  }
 0x26a   : > { %v10371_v39 = vld [vmem:[#allocation8 + $0x918] ss:$72 sps:$4 sm:$0xff]  }
 0x26c   : > { %4080 = vmatpush2.bf16.msra.mxu0 %v10290_v40  ;;  %4121 = vmatpush2.bf16.msra.mxu1 %v10293_v41  ;;  %v10376_v40 = vld [vmem:[#allocation8 + $0x88c] ss:$72 sps:$4 sm:$0xff]  }
 0x26d   : > { %4081 = vmatprep.subr.bf16.mxu0 %v10298_v42  ;;  %4122 = vmatprep.subr.bf16.mxu1 %v10301_v43  ;;  %v10379_v41 = vld [vmem:[#allocation8 + $0x106c] ss:$72 sps:$4 sm:$0xff]   ;;  %v10374_v42 = vld [vmem:[#allocation8 + $0x888] ss:$72 sps:$4 sm:$0xff]  }
 0x26e   : > { %v10377_v43 = vld [vmem:[#allocation8 + $0x1068] ss:$72 sps:$4 sm:$0xff]  }
 0x270   : > { %4082 = vmatpush2.bf16.msra.mxu0 %v10296_v44  ;;  %4123 = vmatpush2.bf16.msra.mxu1 %v10299_v45  ;;  %v10382_v44 = vld [vmem:[#allocation8 + $0x7fc] ss:$72 sps:$4 sm:$0xff]  }
 0x271   : > { %4083 = vmatprep.subr.bf16.mxu0 %v10304_v50  ;;  %4124 = vmatprep.subr.bf16.mxu1 %v10307_v51  ;;  %v10385_v45 = vld [vmem:[#allocation8 + $0xfdc] ss:$72 sps:$4 sm:$0xff]   ;;  %v10380_v50 = vld [vmem:[#allocation8 + $0x7f8] ss:$72 sps:$4 sm:$0xff]  }
 0x272   : > { %v10383_v51 = vld [vmem:[#allocation8 + $0xfd8] ss:$72 sps:$4 sm:$0xff]  }
 0x274   : > { %4084 = vmatpush2.bf16.msra.mxu0 %v10302_v52  ;;  %4125 = vmatpush2.bf16.msra.mxu1 %v10305_v53  ;;  %v10388_v52 = vld [vmem:[#allocation8 + $0x76c] ss:$72 sps:$4 sm:$0xff]  }
 0x275   : > { %4085 = vmatprep.subr.bf16.mxu0 %v10310_v54  ;;  %4126 = vmatprep.subr.bf16.mxu1 %v10313_v55  ;;  %v10391_v53 = vld [vmem:[#allocation8 + $0xf4c] ss:$72 sps:$4 sm:$0xff]   ;;  %v10386_v54 = vld [vmem:[#allocation8 + $0x768] ss:$72 sps:$4 sm:$0xff]  }
 0x276   : > { %v10389_v55 = vld [vmem:[#allocation8 + $0xf48] ss:$72 sps:$4 sm:$0xff]  }
 0x278   : > { %4086 = vmatpush2.bf16.msra.mxu0 %v10308_v56  ;;  %4127 = vmatpush2.bf16.msra.mxu1 %v10311_v57  ;;  %v10394_v56 = vld [vmem:[#allocation8 + $0x6dc] ss:$72 sps:$4 sm:$0xff]  }
 0x279   : > { %4087 = vmatprep.subr.bf16.mxu0 %v10316_v46  ;;  %4128 = vmatprep.subr.bf16.mxu1 %v10319_v48  ;;  %v10397_v57 = vld [vmem:[#allocation8 + $0xebc] ss:$72 sps:$4 sm:$0xff]   ;;  %v10392_v46 = vld [vmem:[#allocation8 + $0x6d8] ss:$72 sps:$4 sm:$0xff]  }
 0x27a   : > { %v10395_v48 = vld [vmem:[#allocation8 + $0xeb8] ss:$72 sps:$4 sm:$0xff]  }
 0x27c   : > { %4088 = vmatpush2.bf16.msra.mxu0 %v10314_v60  ;;  %4129 = vmatpush2.bf16.msra.mxu1 %v10317_v61  ;;  %v10400_v60 = vld [vmem:[#allocation8 + $0x64c] ss:$72 sps:$4 sm:$0xff]  }
 0x27d   : > { %4089 = vmatprep.subr.bf16.mxu0 %v10322_v62  ;;  %4130 = vmatprep.subr.bf16.mxu1 %v10325_v63  ;;  %v10403_v61 = vld [vmem:[#allocation8 + $0xe2c] ss:$72 sps:$4 sm:$0xff]   ;;  %v10398_v62 = vld [vmem:[#allocation8 + $0x648] ss:$72 sps:$4 sm:$0xff]  }
 0x27e   : > { %v10401_v63 = vld [vmem:[#allocation8 + $0xe28] ss:$72 sps:$4 sm:$0xff]  }
 0x280   : > { %4090 = vmatpush2.bf16.msra.mxu0 %v10320_v0  ;;  %4131 = vmatpush2.bf16.msra.mxu1 %v10323_v1  ;;  %v10406_v0 = vld [vmem:[#allocation8 + $0x5bc] ss:$72 sps:$4 sm:$0xff]  }
 0x281   : > { %4141 = vmatprep.subr.bf16.mxu1 %v10328_v2  ;;  %4182 = vmatprep.subr.bf16.mxu0 %v10331_v3  ;;  %v10409_v1 = vld [vmem:[#allocation8 + $0xd9c] ss:$72 sps:$4 sm:$0xff]   ;;  %v10404_v2 = vld [vmem:[#allocation8 + $0x5b8] ss:$72 sps:$4 sm:$0xff]  }
 0x282   : > { %v10407_v3 = vld [vmem:[#allocation8 + $0xd98] ss:$72 sps:$4 sm:$0xff]  }
 0x283   : > { %4092 = vmatmul.mubr.bf16.vlgmr.msra.gmra.mxu0 %v12298_v47  ;;  %4133 = vmatmul.mubr.bf16.vlgmr.msra.gmra.mxu1 %v12300_v49 }
 0x284   : > { %4142 = vmatpush1.bf16.msra.mxu1 %v10326_v4  ;;  %4173 = vmatprep.mubr.bf16.mxu1 %v12294_v58  ;;  %v10412_v4 = vld [vmem:[#allocation8 + $0x52c] ss:$72 sps:$4 sm:$0xff]  }
 0x285   : > { %4183 = vmatpush1.bf16.msra.mxu0 %v10329_v5  ;;  %9352 = vmatprep.mubr.msk.bf16.mxu0 %vm570_vm0, %v12296_v59  ;;  %v10415_v5 = vld [vmem:[#allocation8 + $0x414] ss:$72 sps:$4 sm:$0xff]  }
 0x286   : > { %4143 = vmatprep.subr.bf16.mxu1 %v10334_v6  ;;  %4184 = vmatprep.subr.bf16.mxu0 %v10337_v7  ;;  %v10410_v6 = vld [vmem:[#allocation8 + $0x528] ss:$72 sps:$4 sm:$0xff]  }
 0x287   : > { %v10413_v7 = vld [vmem:[#allocation8 + $0x410] ss:$72 sps:$4 sm:$0xff]  }
 0x288   : > { %4144 = vmatpush1.bf16.msra.mxu1 %v10332_v8  ;;  %v10418_v8 = vld [vmem:[#allocation8 + $0x49c] ss:$72 sps:$4 sm:$0xff]  }
 0x289   : > { %4185 = vmatpush1.bf16.msra.mxu0 %v10335_v9  ;;  %4145 = vmatprep.subr.bf16.mxu1 %v10340_v10  ;;  %v10421_v9 = vld [vmem:[#allocation8 + $0x384] ss:$72 sps:$4 sm:$0xff]   ;;  %v10416_v10 = vld [vmem:[#allocation8 + $0x498] ss:$72 sps:$4 sm:$0xff]  }
 0x28a   : > { %4186 = vmatprep.subr.bf16.mxu0 %v10343_v11  ;;  %v10419_v11 = vld [vmem:[#allocation8 + $0x380] ss:$72 sps:$4 sm:$0xff]  }
 0x28c   : > { %4146 = vmatpush1.bf16.msra.mxu1 %v10338_v12  ;;  %v10427_v12 = vld [vmem:[#allocation8 + $0xd14] ss:$72 sps:$4 sm:$0xff]  }
 0x28d   : > { %4187 = vmatpush1.bf16.msra.mxu0 %v10341_v13  ;;  %4147 = vmatprep.subr.bf16.mxu1 %v10346_v14  ;;  %v10424_v13 = vld [vmem:[#allocation8 + $0x2f4] ss:$72 sps:$4 sm:$0xff]   ;;  %v10425_v14 = vld [vmem:[#allocation8 + $0xd10] ss:$72 sps:$4 sm:$0xff]  }
 0x28e   : > { %4188 = vmatprep.subr.bf16.mxu0 %v10349_v15  ;;  %v10422_v15 = vld [vmem:[#allocation8 + $0x2f0] ss:$72 sps:$4 sm:$0xff]  }
 0x290   : > { %4148 = vmatpush1.bf16.msra.mxu1 %v10344_v16  ;;  %v10433_v16 = vld [vmem:[#allocation8 + $0xc84] ss:$72 sps:$4 sm:$0xff]  }
 0x291   : > { %4189 = vmatpush1.bf16.msra.mxu0 %v10347_v17  ;;  %4149 = vmatprep.subr.bf16.mxu1 %v10352_v18  ;;  %v10430_v17 = vld [vmem:[#allocation8 + $0x264] ss:$72 sps:$4 sm:$0xff]   ;;  %v10431_v18 = vld [vmem:[#allocation8 + $0xc80] ss:$72 sps:$4 sm:$0xff]  }
 0x292   : > { %4190 = vmatprep.subr.bf16.mxu0 %v10355_v19  ;;  %v10428_v19 = vld [vmem:[#allocation8 + $0x260] ss:$72 sps:$4 sm:$0xff]  }
 0x294   : > { %4150 = vmatpush1.bf16.msra.mxu1 %v10350_v20  ;;  %v10439_v20 = vld [vmem:[#allocation8 + $0xbf4] ss:$72 sps:$4 sm:$0xff]  }
 0x295   : > { %4191 = vmatpush1.bf16.msra.mxu0 %v10353_v21  ;;  %4151 = vmatprep.subr.bf16.mxu1 %v10358_v22  ;;  %v10436_v21 = vld [vmem:[#allocation8 + $0x1d4] ss:$72 sps:$4 sm:$0xff]   ;;  %v10437_v22 = vld [vmem:[#allocation8 + $0xbf0] ss:$72 sps:$4 sm:$0xff]  }
 0x296   : > { %4192 = vmatprep.subr.bf16.mxu0 %v10361_v29  ;;  %v10434_v29 = vld [vmem:[#allocation8 + $0x1d0] ss:$72 sps:$4 sm:$0xff]  }
 0x298   : > { %4152 = vmatpush1.bf16.msra.mxu1 %v10356_v30  ;;  %v10445_v30 = vld [vmem:[#allocation8 + $0xb64] ss:$72 sps:$4 sm:$0xff]  }
 0x299   : > { %4193 = vmatpush1.bf16.msra.mxu0 %v10359_v31  ;;  %4153 = vmatprep.subr.bf16.mxu1 %v10364_v32  ;;  %v10442_v31 = vld [vmem:[#allocation8 + $0x144] ss:$72 sps:$4 sm:$0xff]  }
 0x29a   : > { %4194 = vmatprep.subr.bf16.mxu0 %v10367_v33 }
 0x29c   : > { %4154 = vmatpush1.bf16.msra.mxu1 %v10362_v34 }
 0x29d   : > { %4195 = vmatpush1.bf16.msra.mxu0 %v10365_v35  ;;  %4155 = vmatprep.subr.bf16.mxu1 %v10370_v36  ;;  %v10443_v35 = vld [vmem:[#allocation8 + $0xb60] ss:$72 sps:$4 sm:$0xff]  }
 0x29e   : > { %4196 = vmatprep.subr.bf16.mxu0 %v10373_v37 }
 0x2a0   : > { %4156 = vmatpush1.bf16.msra.mxu1 %v10368_v38  ;;  %v10440_v38 = vld [vmem:[#allocation8 + $0x140] ss:$72 sps:$4 sm:$0xff]  }
 0x2a1   : > { %4197 = vmatpush1.bf16.msra.mxu0 %v10371_v39  ;;  %4157 = vmatprep.subr.bf16.mxu1 %v10376_v40  ;;  %v10451_v39 = vld [vmem:[#allocation8 + $0xad4] ss:$72 sps:$4 sm:$0xff]  }
 0x2a2   : > { %4202 = vmatprep.subr.bf16.mxu0 %v10379_v41  ;;  %v10448_v41 = vld [vmem:[#allocation8 + $0xb4] ss:$72 sps:$4 sm:$0xff]  }
 0x2a4   : > { %4158 = vmatpush2.bf16.msra.mxu1 %v10374_v42 }
 0x2a5   : > { %4203 = vmatpush2.bf16.msra.mxu0 %v10377_v43  ;;  %4159 = vmatprep.subr.bf16.mxu1 %v10382_v44  ;;  %v10449_v44 = vld [vmem:[#allocation8 + $0xad0] ss:$72 sps:$4 sm:$0xff]  }
 0x2a6   : > { %4204 = vmatprep.subr.bf16.mxu0 %v10385_v45 }
 0x2a8   : > { %4160 = vmatpush2.bf16.msra.mxu1 %v10380_v50 }
 0x2a9   : > { %4205 = vmatpush2.bf16.msra.mxu0 %v10383_v51  ;;  %4161 = vmatprep.subr.bf16.mxu1 %v10388_v52  ;;  %v10446_v51 = vld [vmem:[#allocation8 + $0xb0] ss:$72 sps:$4 sm:$0xff]   ;;  %v10457_v52 = vld [vmem:[#allocation8 + $0xa44] ss:$72 sps:$4 sm:$0xff]  }
 0x2aa   : > { %4206 = vmatprep.subr.bf16.mxu0 %v10391_v53  ;;  %v10454_v53 = vld [vmem:[#allocation8 + $0x24] ss:$72 sps:$4 sm:$0xff]  }
 0x2ac   : > { %4162 = vmatpush2.bf16.msra.mxu1 %v10386_v54  ;;  %v10455_v54 = vld [vmem:[#allocation8 + $0xa40] ss:$72 sps:$4 sm:$0xff]  }
 0x2ad   : > { %4207 = vmatpush2.bf16.msra.mxu0 %v10389_v55  ;;  %4163 = vmatprep.subr.bf16.mxu1 %v10394_v56  ;;  %v10452_v55 = vld [vmem:[#allocation8 + $0x20] ss:$72 sps:$4 sm:$0xff]   ;;  %v10463_v56 = vld [vmem:[#allocation8 + $0x9b4] ss:$72 sps:$4 sm:$0xff]  }
 0x2ae   : > { %4208 = vmatprep.subr.bf16.mxu0 %v10397_v57  ;;  %v10460_v57 = vld [vmem:[#allocation8 + $0x894] ss:$72 sps:$4 sm:$0xff]  }
 0x2b0   : > { %4164 = vmatpush2.bf16.msra.mxu1 %v10392_v46  ;;  %v10461_v46 = vld [vmem:[#allocation8 + $0x9b0] ss:$72 sps:$4 sm:$0xff]  }
 0x2b1   : > { %4209 = vmatpush2.bf16.msra.mxu0 %v10395_v48  ;;  %4165 = vmatprep.subr.bf16.mxu1 %v10400_v60  ;;  %v10458_v48 = vld [vmem:[#allocation8 + $0x890] ss:$72 sps:$4 sm:$0xff]   ;;  %v10469_v60 = vld [vmem:[#allocation8 + $0x924] ss:$72 sps:$4 sm:$0xff]  }
 0x2b2   : > { %4210 = vmatprep.subr.bf16.mxu0 %v10403_v61  ;;  %v10466_v61 = vld [vmem:[#allocation8 + $0x804] ss:$72 sps:$4 sm:$0xff]  }
 0x2b4   : > { %4166 = vmatpush2.bf16.msra.mxu1 %v10398_v62  ;;  %v10467_v62 = vld [vmem:[#allocation8 + $0x920] ss:$72 sps:$4 sm:$0xff]  }
 0x2b5   : > { %4211 = vmatpush2.bf16.msra.mxu0 %v10401_v63  ;;  %4167 = vmatprep.subr.bf16.mxu1 %v10406_v0  ;;  %v10464_v63 = vld [vmem:[#allocation8 + $0x800] ss:$72 sps:$4 sm:$0xff]   ;;  %v10475_v0 = vld [vmem:[#allocation8 + $0x1074] ss:$72 sps:$4 sm:$0xff]  }
 0x2b6   : > { %4212 = vmatprep.subr.bf16.mxu0 %v10409_v1  ;;  %v10472_v1 = vld [vmem:[#allocation8 + $0x774] ss:$72 sps:$4 sm:$0xff]  }
 0x2b8   : > { %4168 = vmatpush2.bf16.msra.mxu1 %v10404_v2  ;;  %v10473_v2 = vld [vmem:[#allocation8 + $0x1070] ss:$72 sps:$4 sm:$0xff]  }
 0x2b9   : > { %4213 = vmatpush2.bf16.msra.mxu0 %v10407_v3  ;;  %4169 = vmatprep.subr.bf16.mxu1 %v10412_v4  ;;  %v10470_v3 = vld [vmem:[#allocation8 + $0x770] ss:$72 sps:$4 sm:$0xff]   ;;  %v10481_v4 = vld [vmem:[#allocation8 + $0xfe4] ss:$72 sps:$4 sm:$0xff]  }
 0x2ba   : > { %4223 = vmatprep.subr.bf16.mxu0 %v10415_v5  ;;  %v10478_v5 = vld [vmem:[#allocation8 + $0x6e4] ss:$72 sps:$4 sm:$0xff]  }
 0x2bc   : > { %4215 = vmatmul.mubr.bf16.vlgmr.msra.gmra.mxu0 %v12300_v49  ;;  %4170 = vmatpush2.bf16.msra.mxu1 %v10410_v6  ;;  %v10479_v6 = vld [vmem:[#allocation8 + $0xfe0] ss:$72 sps:$4 sm:$0xff]  }
 0x2bd   : > { %4224 = vmatpush1.bf16.msra.mxu0 %v10413_v7  ;;  %4255 = vmatprep.mubr.bf16.mxu0 %v12294_v58  ;;  %v10476_v7 = vld [vmem:[#allocation8 + $0x6e0] ss:$72 sps:$4 sm:$0xff]  }
 0x2be   : > { %4171 = vmatprep.subr.bf16.mxu1 %v10418_v8  ;;  %4225 = vmatprep.subr.bf16.mxu0 %v10421_v9  ;;  %v10487_v8 = vld [vmem:[#allocation8 + $0xf54] ss:$72 sps:$4 sm:$0xff]  }
 0x2bf   : > { %v10484_v9 = vld [vmem:[#allocation8 + $0x654] ss:$72 sps:$4 sm:$0xff]  }
 0x2c0   : > { %4172 = vmatpush2.bf16.msra.mxu1 %v10416_v10  ;;  %v10485_v10 = vld [vmem:[#allocation8 + $0xf50] ss:$72 sps:$4 sm:$0xff]  }
 0x2c1   : > { %4226 = vmatpush1.bf16.msra.mxu0 %v10419_v11  ;;  %4264 = vmatprep.subr.bf16.mxu1 %v10427_v12  ;;  %v10482_v11 = vld [vmem:[#allocation8 + $0x650] ss:$72 sps:$4 sm:$0xff]   ;;  %v10493_v12 = vld [vmem:[#allocation8 + $0xec4] ss:$72 sps:$4 sm:$0xff]  }
 0x2c2   : > { %4227 = vmatprep.subr.bf16.mxu0 %v10424_v13  ;;  %v10490_v13 = vld [vmem:[#allocation8 + $0x5c4] ss:$72 sps:$4 sm:$0xff]  }
 0x2c3   : > { %4174 = vmatmul.mubr.bf16.vlgmr.msra.gmra.mxu1 %v12298_v47 }
 0x2c4   : > { %4265 = vmatpush1.bf16.msra.mxu1 %v10425_v14  ;;  %9353 = vmatprep.mubr.msk.bf16.mxu1 %vm570_vm0, %v12296_v59  ;;  %v10491_v14 = vld [vmem:[#allocation8 + $0xec0] ss:$72 sps:$4 sm:$0xff]  }
 0x2c5   : > { %4228 = vmatpush1.bf16.msra.mxu0 %v10422_v15  ;;  %4266 = vmatprep.subr.bf16.mxu1 %v10433_v16  ;;  %v10488_v15 = vld [vmem:[#allocation8 + $0x5c0] ss:$72 sps:$4 sm:$0xff]   ;;  %v10499_v16 = vld [vmem:[#allocation8 + $0xe34] ss:$72 sps:$4 sm:$0xff]  }
 0x2c6   : > { %4229 = vmatprep.subr.bf16.mxu0 %v10430_v17  ;;  %v10496_v17 = vld [vmem:[#allocation8 + $0x534] ss:$72 sps:$4 sm:$0xff]  }
 0x2c8   : > { %4267 = vmatpush1.bf16.msra.mxu1 %v10431_v18  ;;  %v10497_v18 = vld [vmem:[#allocation8 + $0xe30] ss:$72 sps:$4 sm:$0xff]  }
 0x2c9   : > { %4230 = vmatpush1.bf16.msra.mxu0 %v10428_v19  ;;  %4268 = vmatprep.subr.bf16.mxu1 %v10439_v20  ;;  %v10494_v19 = vld [vmem:[#allocation8 + $0x530] ss:$72 sps:$4 sm:$0xff]   ;;  %v10505_v20 = vld [vmem:[#allocation8 + $0xda4] ss:$72 sps:$4 sm:$0xff]  }
 0x2ca   : > { %4231 = vmatprep.subr.bf16.mxu0 %v10436_v21  ;;  %v10502_v21 = vld [vmem:[#allocation8 + $0x4a4] ss:$72 sps:$4 sm:$0xff]  }
 0x2cb   : > { %v3929_v32 = vpop.f32.mrf.mxu0  ;;  %v3970_v33 = vpop.f32.mrf.mxu1 }
 0x2cc   : > { %v12325_v34 = vadd.f32 %v3970_v33, %v3929_v32  ;;  %4269 = vmatpush1.bf16.msra.mxu1 %v10437_v22  ;;  %v10503_v22 = vld [vmem:[#allocation8 + $0xda0] ss:$72 sps:$4 sm:$0xff]  }
 0x2cd   : > { %4232 = vmatpush1.bf16.msra.mxu0 %v10434_v29  ;;  %v3931_v36 = vpop.f32.mrf.mxu0  ;;  %v3972_v37 = vpop.f32.mrf.mxu1  ;;  %4270 = vmatprep.subr.bf16.mxu1 %v10445_v30  ;;  %v10500_v29 = vld [vmem:[#allocation8 + $0x4a0] ss:$72 sps:$4 sm:$0xff]   ;;  %v10508_v30 = vld [vmem:[#allocation8 + $0x41c] ss:$72 sps:$4 sm:$0xff]  }
 0x2ce   : > { %v12327_v40 = vadd.f32 %v3972_v37, %v3931_v36  ;;  %4233 = vmatprep.subr.bf16.mxu0 %v10442_v31  ;;  %v10511_v31 = vld [vmem:[#allocation8 + $0xd1c] ss:$72 sps:$4 sm:$0xff]   ;;  %v10506_v32 = vld [vmem:[#allocation8 + $0x418] ss:$72 sps:$4 sm:$0xff]   ;;  %v10517_v36 = vld [vmem:[#allocation8 + $0xc8c] ss:$72 sps:$4 sm:$0xff]  }
 0x2cf   : > { %v3933_v42 = vpop.f32.mrf.mxu0  ;;  %v3974_v43 = vpop.f32.mrf.mxu1  ;;  %v10509_v33 = vld [vmem:[#allocation8 + $0xd18] ss:$72 sps:$4 sm:$0xff]   ;;  %v10512_v37 = vld [vmem:[#allocation8 + $0x388] ss:$72 sps:$4 sm:$0xff]  }
 0x2d0   : > { %4271 = vmatpush1.bf16.msra.mxu1 %v10443_v35  ;;  %v10514_v35 = vld [vmem:[#allocation8 + $0x38c] ss:$72 sps:$4 sm:$0xff]   ;;  %v10518_v42 = vld [vmem:[#allocation8 + $0x2f8] ss:$72 sps:$4 sm:$0xff]  }
 0x2d1   : > { %4234 = vmatpush1.bf16.msra.mxu0 %v10440_v38  ;;  %v3934_v45 = vpop.f32.mrf.mxu0  ;;  %v3975_v50 = vpop.f32.mrf.mxu1  ;;  %4272 = vmatprep.subr.bf16.mxu1 %v10451_v39  ;;  %v10515_v38 = vld [vmem:[#allocation8 + $0xc88] ss:$72 sps:$4 sm:$0xff]   ;;  %v10520_v39 = vld [vmem:[#allocation8 + $0x2fc] ss:$72 sps:$4 sm:$0xff]   ;;  %v10521_v43 = vld [vmem:[#allocation8 + $0xbf8] ss:$72 sps:$4 sm:$0xff]  }
 0x2d2   : > { %4235 = vmatprep.subr.bf16.mxu0 %v10448_v41  ;;  %v10523_v41 = vld [vmem:[#allocation8 + $0xbfc] ss:$72 sps:$4 sm:$0xff]   ;;  %v10529_v45 = vld [vmem:[#allocation8 + $0xb6c] ss:$72 sps:$4 sm:$0xff]  }
 0x2d4   : > { %4273 = vmatpush1.bf16.msra.mxu1 %v10449_v44  ;;  %v10526_v44 = vld [vmem:[#allocation8 + $0x26c] ss:$72 sps:$4 sm:$0xff]  }
 0x2d5   : > { %4236 = vmatpush1.bf16.msra.mxu0 %v10446_v51  ;;  %4274 = vmatprep.subr.bf16.mxu1 %v10457_v52  ;;  %v10524_v51 = vld [vmem:[#allocation8 + $0x268] ss:$72 sps:$4 sm:$0xff]  }
 0x2d6   : > { %4237 = vmatprep.subr.bf16.mxu0 %v10454_v53  ;;  %v10527_v53 = vld [vmem:[#allocation8 + $0xb68] ss:$72 sps:$4 sm:$0xff]  }
 0x2d8   : > { %4275 = vmatpush1.bf16.msra.mxu1 %v10455_v54  ;;  %v10532_v54 = vld [vmem:[#allocation8 + $0x1dc] ss:$72 sps:$4 sm:$0xff]  }
 0x2d9   : > { %4238 = vmatpush1.bf16.msra.mxu0 %v10452_v55  ;;  %4276 = vmatprep.subr.bf16.mxu1 %v10463_v56  ;;  %v10535_v55 = vld [vmem:[#allocation8 + $0xadc] ss:$72 sps:$4 sm:$0xff]  }
 0x2da   : > { %4239 = vmatprep.subr.bf16.mxu0 %v10460_v57  ;;  %v10530_v57 = vld [vmem:[#allocation8 + $0x1d8] ss:$72 sps:$4 sm:$0xff]  }
 0x2dc   : > { %4277 = vmatpush1.bf16.msra.mxu1 %v10461_v46 }
 0x2dd   : > { %4240 = vmatpush2.bf16.msra.mxu0 %v10458_v48  ;;  %4278 = vmatprep.subr.bf16.mxu1 %v10469_v60  ;;  %v10533_v48 = vld [vmem:[#allocation8 + $0xad8] ss:$72 sps:$4 sm:$0xff]   ;;  %v10538_v60 = vld [vmem:[#allocation8 + $0x14c] ss:$72 sps:$4 sm:$0xff]  }
 0x2de   : > { %4241 = vmatprep.subr.bf16.mxu0 %v10466_v61  ;;  %v10541_v61 = vld [vmem:[#allocation8 + $0xa4c] ss:$72 sps:$4 sm:$0xff]  }
 0x2e0   : > { %4279 = vmatpush1.bf16.msra.mxu1 %v10467_v62 }
 0x2e1   : > { %4242 = vmatpush2.bf16.msra.mxu0 %v10464_v63  ;;  %4284 = vmatprep.subr.bf16.mxu1 %v10475_v0  ;;  %v10536_v0 = vld [vmem:[#allocation8 + $0x148] ss:$72 sps:$4 sm:$0xff]  }
 0x2e2   : > { %4243 = vmatprep.subr.bf16.mxu0 %v10472_v1 }
 0x2e4   : > { %4285 = vmatpush2.bf16.msra.mxu1 %v10473_v2  ;;  %v10539_v2 = vld [vmem:[#allocation8 + $0xa48] ss:$72 sps:$4 sm:$0xff]  }
 0x2e5   : > { %4244 = vmatpush2.bf16.msra.mxu0 %v10470_v3  ;;  %4286 = vmatprep.subr.bf16.mxu1 %v10481_v4  ;;  %v10544_v3 = vld [vmem:[#allocation8 + $0xbc] ss:$72 sps:$4 sm:$0xff]  }
 0x2e6   : > { %4245 = vmatprep.subr.bf16.mxu0 %v10478_v5  ;;  %v10547_v5 = vld [vmem:[#allocation8 + $0x9bc] ss:$72 sps:$4 sm:$0xff]  }
 0x2e8   : > { %4287 = vmatpush2.bf16.msra.mxu1 %v10479_v6 }
 0x2e9   : > { %4246 = vmatpush2.bf16.msra.mxu0 %v10476_v7  ;;  %4288 = vmatprep.subr.bf16.mxu1 %v10487_v8  ;;  %v10542_v7 = vld [vmem:[#allocation8 + $0xb8] ss:$72 sps:$4 sm:$0xff]  }
 0x2ea   : > { %4247 = vmatprep.subr.bf16.mxu0 %v10484_v9  ;;  %v10545_v9 = vld [vmem:[#allocation8 + $0x9b8] ss:$72 sps:$4 sm:$0xff]  }
 0x2ec   : > { %4289 = vmatpush2.bf16.msra.mxu1 %v10485_v10  ;;  %v10550_v10 = vld [vmem:[#allocation8 + $0x2c] ss:$72 sps:$4 sm:$0xff]  }
 0x2ed   : > { %4248 = vmatpush2.bf16.msra.mxu0 %v10482_v11  ;;  %4290 = vmatprep.subr.bf16.mxu1 %v10493_v12  ;;  %v10553_v11 = vld [vmem:[#allocation8 + $0x92c] ss:$72 sps:$4 sm:$0xff]   ;;  %v10548_v12 = vld [vmem:[#allocation8 + $0x28] ss:$72 sps:$4 sm:$0xff]  }
 0x2ee   : > { %4249 = vmatprep.subr.bf16.mxu0 %v10490_v13  ;;  %v10551_v13 = vld [vmem:[#allocation8 + $0x928] ss:$72 sps:$4 sm:$0xff]  }
 0x2f0   : > { %4291 = vmatpush2.bf16.msra.mxu1 %v10491_v14  ;;  %v10556_v14 = vld [vmem:[#allocation8 + $0x89c] ss:$72 sps:$4 sm:$0xff]  }
 0x2f1   : > { %4250 = vmatpush2.bf16.msra.mxu0 %v10488_v15  ;;  %4292 = vmatprep.subr.bf16.mxu1 %v10499_v16  ;;  %v10559_v15 = vld [vmem:[#allocation8 + $0x107c] ss:$72 sps:$4 sm:$0xff]   ;;  %v10554_v16 = vld [vmem:[#allocation8 + $0x898] ss:$72 sps:$4 sm:$0xff]  }
 0x2f2   : > { %4251 = vmatprep.subr.bf16.mxu0 %v10496_v17  ;;  %v10557_v17 = vld [vmem:[#allocation8 + $0x1078] ss:$72 sps:$4 sm:$0xff]  }
 0x2f4   : > { %4293 = vmatpush2.bf16.msra.mxu1 %v10497_v18  ;;  %v10562_v18 = vld [vmem:[#allocation8 + $0x80c] ss:$72 sps:$4 sm:$0xff]  }
 0x2f5   : > { %4252 = vmatpush2.bf16.msra.mxu0 %v10494_v19  ;;  %4294 = vmatprep.subr.bf16.mxu1 %v10505_v20  ;;  %v10565_v19 = vld [vmem:[#allocation8 + $0xfec] ss:$72 sps:$4 sm:$0xff]   ;;  %v10560_v20 = vld [vmem:[#allocation8 + $0x808] ss:$72 sps:$4 sm:$0xff]  }
 0x2f6   : > { %4253 = vmatprep.subr.bf16.mxu0 %v10502_v21  ;;  %v10563_v21 = vld [vmem:[#allocation8 + $0xfe8] ss:$72 sps:$4 sm:$0xff]  }
 0x2f8   : > { %4295 = vmatpush2.bf16.msra.mxu1 %v10503_v22  ;;  %v10568_v22 = vld [vmem:[#allocation8 + $0x77c] ss:$72 sps:$4 sm:$0xff]  }
 0x2f9   : > { %4254 = vmatpush2.bf16.msra.mxu0 %v10500_v29  ;;  %4305 = vmatprep.subr.bf16.mxu1 %v10508_v30  ;;  %v10571_v29 = vld [vmem:[#allocation8 + $0xf5c] ss:$72 sps:$4 sm:$0xff]   ;;  %v10566_v30 = vld [vmem:[#allocation8 + $0x778] ss:$72 sps:$4 sm:$0xff]  }
 0x2fa   : > { %4346 = vmatprep.subr.bf16.mxu0 %v10511_v31  ;;  %v10569_v31 = vld [vmem:[#allocation8 + $0xf58] ss:$72 sps:$4 sm:$0xff]  }
 0x2fb   : > { %4297 = vmatmul.mubr.bf16.vlgmr.msra.gmra.mxu1 %v12300_v49 }
 0x2fc   : > { %4256 = vmatmul.mubr.bf16.vlgmr.msra.gmra.mxu0 %v12298_v47  ;;  %4306 = vmatpush1.bf16.msra.mxu1 %v10506_v32  ;;  %v10574_v32 = vld [vmem:[#allocation8 + $0x6ec] ss:$72 sps:$4 sm:$0xff]  }
 0x2fd   : > { %4337 = vmatprep.mubr.bf16.mxu1 %v12294_v58  ;;  %4347 = vmatpush1.bf16.msra.mxu0 %v10509_v33  ;;  %v10577_v33 = vld [vmem:[#allocation8 + $0xecc] ss:$72 sps:$4 sm:$0xff]  }
 0x2fe   : > { %9354 = vmatprep.mubr.msk.bf16.mxu0 %vm570_vm0, %v12296_v59  ;;  %4307 = vmatprep.subr.bf16.mxu1 %v10514_v35  ;;  %v10572_v35 = vld [vmem:[#allocation8 + $0x6e8] ss:$72 sps:$4 sm:$0xff]  }
 0x2ff   : > { %4348 = vmatprep.subr.bf16.mxu0 %v10517_v36  ;;  %v10575_v36 = vld [vmem:[#allocation8 + $0xec8] ss:$72 sps:$4 sm:$0xff]  }
 0x300   : > { %4308 = vmatpush1.bf16.msra.mxu1 %v10512_v37  ;;  %v10580_v37 = vld [vmem:[#allocation8 + $0x65c] ss:$72 sps:$4 sm:$0xff]  }
 0x301   : > { %4349 = vmatpush1.bf16.msra.mxu0 %v10515_v38  ;;  %4309 = vmatprep.subr.bf16.mxu1 %v10520_v39  ;;  %v10583_v38 = vld [vmem:[#allocation8 + $0xe3c] ss:$72 sps:$4 sm:$0xff]   ;;  %v10578_v39 = vld [vmem:[#allocation8 + $0x658] ss:$72 sps:$4 sm:$0xff]  }
 0x302   : > { %4350 = vmatprep.subr.bf16.mxu0 %v10523_v41  ;;  %v10581_v41 = vld [vmem:[#allocation8 + $0xe38] ss:$72 sps:$4 sm:$0xff]  }
 0x303   : > { %v4052_v50 = vpop.f32.mrf.mxu0 }
 0x304   : > { %4310 = vmatpush1.bf16.msra.mxu1 %v10518_v42  ;;  %v10586_v42 = vld [vmem:[#allocation8 + $0x5cc] ss:$72 sps:$4 sm:$0xff]  }
 0x305   : > { %4351 = vmatpush1.bf16.msra.mxu0 %v10521_v43  ;;  %v4054_v52 = vpop.f32.mrf.mxu0  ;;  %4311 = vmatprep.subr.bf16.mxu1 %v10526_v44  ;;  %v10589_v43 = vld [vmem:[#allocation8 + $0xdac] ss:$72 sps:$4 sm:$0xff]   ;;  %v10584_v44 = vld [vmem:[#allocation8 + $0x5c8] ss:$72 sps:$4 sm:$0xff]  }
 0x306   : > { %4352 = vmatprep.subr.bf16.mxu0 %v10529_v45  ;;  %v10587_v45 = vld [vmem:[#allocation8 + $0xda8] ss:$72 sps:$4 sm:$0xff]  }
 0x307   : > { %v4056_v56 = vpop.f32.mrf.mxu0 }
 0x308   : > { %4312 = vmatpush1.bf16.msra.mxu1 %v10524_v51  ;;  %v10595_v51 = vld [vmem:[#allocation8 + $0x424] ss:$72 sps:$4 sm:$0xff]   ;;  %v10596_v56 = vld [vmem:[#allocation8 + $0x4a8] ss:$72 sps:$4 sm:$0xff]  }
 0x309   : > { %4353 = vmatpush1.bf16.msra.mxu0 %v10527_v53  ;;  %v4057_v46 = vpop.f32.mrf.mxu0  ;;  %4313 = vmatprep.subr.bf16.mxu1 %v10532_v54  ;;  %v10593_v53 = vld [vmem:[#allocation8 + $0x420] ss:$72 sps:$4 sm:$0xff]   ;;  %v10598_v54 = vld [vmem:[#allocation8 + $0x4ac] ss:$72 sps:$4 sm:$0xff]  }
 0x30a   : > { %4354 = vmatprep.subr.bf16.mxu0 %v10535_v55  ;;  %v10601_v55 = vld [vmem:[#allocation8 + $0x394] ss:$72 sps:$4 sm:$0xff]   ;;  %v10607_v46 = vld [vmem:[#allocation8 + $0xd24] ss:$72 sps:$4 sm:$0xff]  }
 0x30b   : > { %v4011_v62 = vpop.f32.mrf.mxu1 }
 0x30c   : > { %v12334_v63 = vadd.f32 %v4052_v50, %v4011_v62  ;;  %4314 = vmatpush1.bf16.msra.mxu1 %v10530_v57  ;;  %v10592_v50 = vld [vmem:[#allocation8 + $0x53c] ss:$72 sps:$4 sm:$0xff]   ;;  %v10599_v57 = vld [vmem:[#allocation8 + $0x390] ss:$72 sps:$4 sm:$0xff]  }
 0x30d   : > { %4355 = vmatpush1.bf16.msra.mxu0 %v10533_v48  ;;  %v4013_v1 = vpop.f32.mrf.mxu1  ;;  %4315 = vmatprep.subr.bf16.mxu1 %v10538_v60  ;;  %v10604_v48 = vld [vmem:[#allocation8 + $0x304] ss:$72 sps:$4 sm:$0xff]   ;;  %v10605_v60 = vld [vmem:[#allocation8 + $0xd20] ss:$72 sps:$4 sm:$0xff]   ;;  %v10613_v62 = vld [vmem:[#allocation8 + $0xc94] ss:$72 sps:$4 sm:$0xff]  }
 0x30e   : > { %v12336_v4 = vadd.f32 %v4054_v52, %v4013_v1  ;;  %4356 = vmatprep.subr.bf16.mxu0 %v10541_v61  ;;  %v10590_v52 = vld [vmem:[#allocation8 + $0x538] ss:$72 sps:$4 sm:$0xff]  }
 0x30f   : > { %v4015_v6 = vpop.f32.mrf.mxu1  ;;  %v10602_v61 = vld [vmem:[#allocation8 + $0x300] ss:$72 sps:$4 sm:$0xff]   ;;  %v10611_v1 = vld [vmem:[#allocation8 + $0xc90] ss:$72 sps:$4 sm:$0xff]  }
 0x310   : > { %4316 = vmatpush1.bf16.msra.mxu1 %v10536_v0  ;;  %v10610_v0 = vld [vmem:[#allocation8 + $0x274] ss:$72 sps:$4 sm:$0xff]   ;;  %v10617_v6 = vld [vmem:[#allocation8 + $0xc00] ss:$72 sps:$4 sm:$0xff]  }
 0x311   : > { %4357 = vmatpush1.bf16.msra.mxu0 %v10539_v2  ;;  %v4016_v8 = vpop.f32.mrf.mxu1  ;;  %4317 = vmatprep.subr.bf16.mxu1 %v10544_v3  ;;  %v10608_v2 = vld [vmem:[#allocation8 + $0x270] ss:$72 sps:$4 sm:$0xff]   ;;  %v10619_v3 = vld [vmem:[#allocation8 + $0xc04] ss:$72 sps:$4 sm:$0xff]  }
 0x312   : > { %4358 = vmatprep.subr.bf16.mxu0 %v10547_v5  ;;  %v10616_v5 = vld [vmem:[#allocation8 + $0x1e4] ss:$72 sps:$4 sm:$0xff]   ;;  %v10625_v8 = vld [vmem:[#allocation8 + $0xb74] ss:$72 sps:$4 sm:$0xff]  }
 0x314   : > { %4318 = vmatpush1.bf16.msra.mxu1 %v10542_v7  ;;  %v10614_v7 = vld [vmem:[#allocation8 + $0x1e0] ss:$72 sps:$4 sm:$0xff]  }
 0x315   : > { %4359 = vmatpush1.bf16.msra.mxu0 %v10545_v9  ;;  %4319 = vmatprep.subr.bf16.mxu1 %v10550_v10  ;;  %v10622_v9 = vld [vmem:[#allocation8 + $0x154] ss:$72 sps:$4 sm:$0xff]  }
 0x316   : > { %4360 = vmatprep.subr.bf16.mxu0 %v10553_v11 }
 0x318   : > { %4320 = vmatpush1.bf16.msra.mxu1 %v10548_v12 }
 0x319   : > { %4361 = vmatpush1.bf16.msra.mxu0 %v10551_v13  ;;  %4321 = vmatprep.subr.bf16.mxu1 %v10556_v14  ;;  %v10623_v13 = vld [vmem:[#allocation8 + $0xb70] ss:$72 sps:$4 sm:$0xff]  }
 0x31a   : > { %4366 = vmatprep.subr.bf16.mxu0 %v10559_v15 }
 0x31c   : > { %4322 = vmatpush2.bf16.msra.mxu1 %v10554_v16  ;;  %v10620_v16 = vld [vmem:[#allocation8 + $0x150] ss:$72 sps:$4 sm:$0xff]  }
 0x31d   : > { %4367 = vmatpush2.bf16.msra.mxu0 %v10557_v17  ;;  %4323 = vmatprep.subr.bf16.mxu1 %v10562_v18  ;;  %v10631_v17 = vld [vmem:[#allocation8 + $0xae4] ss:$72 sps:$4 sm:$0xff]  }
 0x31e   : > { %4368 = vmatprep.subr.bf16.mxu0 %v10565_v19  ;;  %v10628_v19 = vld [vmem:[#allocation8 + $0xc4] ss:$72 sps:$4 sm:$0xff]  }
 0x320   : > { %4324 = vmatpush2.bf16.msra.mxu1 %v10560_v20 }
 0x321   : > { %4369 = vmatpush2.bf16.msra.mxu0 %v10563_v21  ;;  %4325 = vmatprep.subr.bf16.mxu1 %v10568_v22  ;;  %v10629_v22 = vld [vmem:[#allocation8 + $0xae0] ss:$72 sps:$4 sm:$0xff]  }
 0x322   : > { %4370 = vmatprep.subr.bf16.mxu0 %v10571_v29 }
 0x324   : > { %4326 = vmatpush2.bf16.msra.mxu1 %v10566_v30 }
 0x325   : > { %4371 = vmatpush2.bf16.msra.mxu0 %v10569_v31  ;;  %4327 = vmatprep.subr.bf16.mxu1 %v10574_v32  ;;  %v10626_v31 = vld [vmem:[#allocation8 + $0xc0] ss:$72 sps:$4 sm:$0xff]   ;;  %v10637_v32 = vld [vmem:[#allocation8 + $0xa54] ss:$72 sps:$4 sm:$0xff]  }
 0x326   : > { %4372 = vmatprep.subr.bf16.mxu0 %v10577_v33  ;;  %v10634_v33 = vld [vmem:[#allocation8 + $0x34] ss:$72 sps:$4 sm:$0xff]  }
 0x328   : > { %4328 = vmatpush2.bf16.msra.mxu1 %v10572_v35  ;;  %v10635_v35 = vld [vmem:[#allocation8 + $0xa50] ss:$72 sps:$4 sm:$0xff]  }
 0x329   : > { %4373 = vmatpush2.bf16.msra.mxu0 %v10575_v36  ;;  %4329 = vmatprep.subr.bf16.mxu1 %v10580_v37  ;;  %v10632_v36 = vld [vmem:[#allocation8 + $0x30] ss:$72 sps:$4 sm:$0xff]   ;;  %v10643_v37 = vld [vmem:[#allocation8 + $0x9c4] ss:$72 sps:$4 sm:$0xff]  }
 0x32a   : > { %4374 = vmatprep.subr.bf16.mxu0 %v10583_v38  ;;  %v10640_v38 = vld [vmem:[#allocation8 + $0x8a4] ss:$72 sps:$4 sm:$0xff]  }
 0x32c   : > { %4330 = vmatpush2.bf16.msra.mxu1 %v10578_v39  ;;  %v10641_v39 = vld [vmem:[#allocation8 + $0x9c0] ss:$72 sps:$4 sm:$0xff]  }
 0x32d   : > { %4375 = vmatpush2.bf16.msra.mxu0 %v10581_v41  ;;  %4331 = vmatprep.subr.bf16.mxu1 %v10586_v42  ;;  %v10638_v41 = vld [vmem:[#allocation8 + $0x8a0] ss:$72 sps:$4 sm:$0xff]   ;;  %v10649_v42 = vld [vmem:[#allocation8 + $0x934] ss:$72 sps:$4 sm:$0xff]  }
 0x32e   : > { %4376 = vmatprep.subr.bf16.mxu0 %v10589_v43  ;;  %v10646_v43 = vld [vmem:[#allocation8 + $0x814] ss:$72 sps:$4 sm:$0xff]  }
 0x330   : > { %4332 = vmatpush2.bf16.msra.mxu1 %v10584_v44  ;;  %v10647_v44 = vld [vmem:[#allocation8 + $0x930] ss:$72 sps:$4 sm:$0xff]  }
 0x331   : > { %4377 = vmatpush2.bf16.msra.mxu0 %v10587_v45  ;;  %4333 = vmatprep.subr.bf16.mxu1 %v10592_v50  ;;  %v10644_v45 = vld [vmem:[#allocation8 + $0x810] ss:$72 sps:$4 sm:$0xff]   ;;  %v10655_v50 = vld [vmem:[#allocation8 + $0x1084] ss:$72 sps:$4 sm:$0xff]  }
 0x332   : > { %4387 = vmatprep.subr.bf16.mxu0 %v10595_v51  ;;  %v10652_v51 = vld [vmem:[#allocation8 + $0x784] ss:$72 sps:$4 sm:$0xff]  }
 0x334   : > { %4379 = vmatmul.mubr.bf16.vlgmr.msra.gmra.mxu0 %v12300_v49  ;;  %4334 = vmatpush2.bf16.msra.mxu1 %v10590_v52  ;;  %v10653_v52 = vld [vmem:[#allocation8 + $0x1080] ss:$72 sps:$4 sm:$0xff]  }
 0x335   : > { %4388 = vmatpush1.bf16.msra.mxu0 %v10593_v53  ;;  %4419 = vmatprep.mubr.bf16.mxu0 %v12294_v58  ;;  %v10650_v53 = vld [vmem:[#allocation8 + $0x780] ss:$72 sps:$4 sm:$0xff]  }
 0x336   : > { %4335 = vmatprep.subr.bf16.mxu1 %v10598_v54  ;;  %4389 = vmatprep.subr.bf16.mxu0 %v10601_v55  ;;  %v10661_v54 = vld [vmem:[#allocation8 + $0xff4] ss:$72 sps:$4 sm:$0xff]  }
 0x337   : > { %v10658_v55 = vld [vmem:[#allocation8 + $0x6f4] ss:$72 sps:$4 sm:$0xff]  }
 0x338   : > { %4336 = vmatpush2.bf16.msra.mxu1 %v10596_v56  ;;  %v10659_v56 = vld [vmem:[#allocation8 + $0xff0] ss:$72 sps:$4 sm:$0xff]  }
 0x339   : > { %4390 = vmatpush1.bf16.msra.mxu0 %v10599_v57  ;;  %4428 = vmatprep.subr.bf16.mxu1 %v10607_v46  ;;  %v10656_v57 = vld [vmem:[#allocation8 + $0x6f0] ss:$72 sps:$4 sm:$0xff]   ;;  %v10667_v46 = vld [vmem:[#allocation8 + $0xf64] ss:$72 sps:$4 sm:$0xff]  }
 0x33a   : > { %4391 = vmatprep.subr.bf16.mxu0 %v10604_v48  ;;  %v10664_v48 = vld [vmem:[#allocation8 + $0x664] ss:$72 sps:$4 sm:$0xff]  }
 0x33b   : > { %4338 = vmatmul.mubr.bf16.vlgmr.msra.gmra.mxu1 %v12298_v47 }
 0x33c   : > { %4429 = vmatpush1.bf16.msra.mxu1 %v10605_v60  ;;  %9355 = vmatprep.mubr.msk.bf16.mxu1 %vm570_vm0, %v12296_v59  ;;  %v10665_v60 = vld [vmem:[#allocation8 + $0xf60] ss:$72 sps:$4 sm:$0xff]  }
 0x33d   : > { %4392 = vmatpush1.bf16.msra.mxu0 %v10602_v61  ;;  %4430 = vmatprep.subr.bf16.mxu1 %v10613_v62  ;;  %v10662_v61 = vld [vmem:[#allocation8 + $0x660] ss:$72 sps:$4 sm:$0xff]   ;;  %v10673_v62 = vld [vmem:[#allocation8 + $0xed4] ss:$72 sps:$4 sm:$0xff]  }
 0x33e   : > { %4393 = vmatprep.subr.bf16.mxu0 %v10610_v0  ;;  %v10670_v0 = vld [vmem:[#allocation8 + $0x5d4] ss:$72 sps:$4 sm:$0xff]  }
 0x340   : > { %4431 = vmatpush1.bf16.msra.mxu1 %v10611_v1  ;;  %v10671_v1 = vld [vmem:[#allocation8 + $0xed0] ss:$72 sps:$4 sm:$0xff]  }
 0x341   : > { %4394 = vmatpush1.bf16.msra.mxu0 %v10608_v2  ;;  %4432 = vmatprep.subr.bf16.mxu1 %v10619_v3  ;;  %v10668_v2 = vld [vmem:[#allocation8 + $0x5d0] ss:$72 sps:$4 sm:$0xff]   ;;  %v10679_v3 = vld [vmem:[#allocation8 + $0xe44] ss:$72 sps:$4 sm:$0xff]  }
 0x342   : > { %4395 = vmatprep.subr.bf16.mxu0 %v10616_v5  ;;  %v10676_v5 = vld [vmem:[#allocation8 + $0x544] ss:$72 sps:$4 sm:$0xff]  }
 0x343   : > { %v4093_v10 = vpop.f32.mrf.mxu0  ;;  %v4134_v11 = vpop.f32.mrf.mxu1 }
 0x344   : > { %v12343_v12 = vadd.f32 %v4134_v11, %v4093_v10  ;;  %4433 = vmatpush1.bf16.msra.mxu1 %v10617_v6  ;;  %v10677_v6 = vld [vmem:[#allocation8 + $0xe40] ss:$72 sps:$4 sm:$0xff]   ;;  %v10683_v10 = vld [vmem:[#allocation8 + $0xdb0] ss:$72 sps:$4 sm:$0xff]  }
 0x345   : > { %4396 = vmatpush1.bf16.msra.mxu0 %v10614_v7  ;;  %v4095_v14 = vpop.f32.mrf.mxu0  ;;  %v4136_v15 = vpop.f32.mrf.mxu1  ;;  %4434 = vmatprep.subr.bf16.mxu1 %v10625_v8  ;;  %v10674_v7 = vld [vmem:[#allocation8 + $0x540] ss:$72 sps:$4 sm:$0xff]   ;;  %v10685_v8 = vld [vmem:[#allocation8 + $0xdb4] ss:$72 sps:$4 sm:$0xff]   ;;  %v10680_v11 = vld [vmem:[#allocation8 + $0x4b0] ss:$72 sps:$4 sm:$0xff]  }
 0x346   : > { %v12345_v18 = vadd.f32 %v4136_v15, %v4095_v14  ;;  %4397 = vmatprep.subr.bf16.mxu0 %v10622_v9  ;;  %v10682_v9 = vld [vmem:[#allocation8 + $0x4b4] ss:$72 sps:$4 sm:$0xff]   ;;  %v10686_v15 = vld [vmem:[#allocation8 + $0x428] ss:$72 sps:$4 sm:$0xff]  }
 0x347   : > { %v4097_v20 = vpop.f32.mrf.mxu0  ;;  %v4138_v21 = vpop.f32.mrf.mxu1  ;;  %v10691_v14 = vld [vmem:[#allocation8 + $0xd2c] ss:$72 sps:$4 sm:$0xff]  }
 0x348   : > { %4435 = vmatpush1.bf16.msra.mxu1 %v10623_v13  ;;  %v10688_v13 = vld [vmem:[#allocation8 + $0x42c] ss:$72 sps:$4 sm:$0xff]   ;;  %v10692_v20 = vld [vmem:[#allocation8 + $0x398] ss:$72 sps:$4 sm:$0xff]  }
 0x349   : > { %4398 = vmatpush1.bf16.msra.mxu0 %v10620_v16  ;;  %v4098_v29 = vpop.f32.mrf.mxu0  ;;  %v4139_v30 = vpop.f32.mrf.mxu1  ;;  %4436 = vmatprep.subr.bf16.mxu1 %v10631_v17  ;;  %v10689_v16 = vld [vmem:[#allocation8 + $0xd28] ss:$72 sps:$4 sm:$0xff]   ;;  %v10694_v17 = vld [vmem:[#allocation8 + $0x39c] ss:$72 sps:$4 sm:$0xff]   ;;  %v10695_v21 = vld [vmem:[#allocation8 + $0xc98] ss:$72 sps:$4 sm:$0xff]  }
 0x34a   : > { %4399 = vmatprep.subr.bf16.mxu0 %v10628_v19  ;;  %v10697_v19 = vld [vmem:[#allocation8 + $0xc9c] ss:$72 sps:$4 sm:$0xff]   ;;  %v10703_v29 = vld [vmem:[#allocation8 + $0xc0c] ss:$72 sps:$4 sm:$0xff]   ;;  %v10698_v30 = vld [vmem:[#allocation8 + $0x308] ss:$72 sps:$4 sm:$0xff]  }
 0x34c   : > { %4437 = vmatpush1.bf16.msra.mxu1 %v10629_v22  ;;  %v10700_v22 = vld [vmem:[#allocation8 + $0x30c] ss:$72 sps:$4 sm:$0xff]  }
 0x34d   : > { %4400 = vmatpush1.bf16.msra.mxu0 %v10626_v31  ;;  %4438 = vmatprep.subr.bf16.mxu1 %v10637_v32  ;;  %v10701_v31 = vld [vmem:[#allocation8 + $0xc08] ss:$72 sps:$4 sm:$0xff]   ;;  %v10706_v32 = vld [vmem:[#allocation8 + $0x27c] ss:$72 sps:$4 sm:$0xff]  }
 0x34e   : > { %4401 = vmatprep.subr.bf16.mxu0 %v10634_v33  ;;  %v10709_v33 = vld [vmem:[#allocation8 + $0xb7c] ss:$72 sps:$4 sm:$0xff]  }
 0x350   : > { %4439 = vmatpush1.bf16.msra.mxu1 %v10635_v35 }
 0x351   : > { %4402 = vmatpush1.bf16.msra.mxu0 %v10632_v36  ;;  %4440 = vmatprep.subr.bf16.mxu1 %v10643_v37  ;;  %v10704_v36 = vld [vmem:[#allocation8 + $0x278] ss:$72 sps:$4 sm:$0xff]  }
 0x352   : > { %4403 = vmatprep.subr.bf16.mxu0 %v10640_v38  ;;  %v10707_v37 = vld [vmem:[#allocation8 + $0xb78] ss:$72 sps:$4 sm:$0xff]   ;;  %v10712_v38 = vld [vmem:[#allocation8 + $0x1ec] ss:$72 sps:$4 sm:$0xff]  }
 0x354   : > { %4441 = vmatpush1.bf16.msra.mxu1 %v10641_v39 }
 0x355   : > { %4404 = vmatpush2.bf16.msra.mxu0 %v10638_v41  ;;  %4442 = vmatprep.subr.bf16.mxu1 %v10649_v42  ;;  %v10715_v41 = vld [vmem:[#allocation8 + $0xaec] ss:$72 sps:$4 sm:$0xff]  }
 0x356   : > { %4405 = vmatprep.subr.bf16.mxu0 %v10646_v43  ;;  %v10710_v43 = vld [vmem:[#allocation8 + $0x1e8] ss:$72 sps:$4 sm:$0xff]  }
 0x358   : > { %4443 = vmatpush1.bf16.msra.mxu1 %v10647_v44  ;;  %v10713_v44 = vld [vmem:[#allocation8 + $0xae8] ss:$72 sps:$4 sm:$0xff]  }
 0x359   : > { %4406 = vmatpush2.bf16.msra.mxu0 %v10644_v45  ;;  %4448 = vmatprep.subr.bf16.mxu1 %v10655_v50  ;;  %v10718_v45 = vld [vmem:[#allocation8 + $0x15c] ss:$72 sps:$4 sm:$0xff]  }
 0x35a   : > { %4407 = vmatprep.subr.bf16.mxu0 %v10652_v51  ;;  %v10721_v51 = vld [vmem:[#allocation8 + $0xa5c] ss:$72 sps:$4 sm:$0xff]  }
 0x35c   : > { %4449 = vmatpush2.bf16.msra.mxu1 %v10653_v52 }
 0x35d   : > { %4408 = vmatpush2.bf16.msra.mxu0 %v10650_v53  ;;  %4450 = vmatprep.subr.bf16.mxu1 %v10661_v54  ;;  %v10716_v54 = vld [vmem:[#allocation8 + $0x158] ss:$72 sps:$4 sm:$0xff]  }
 0x35e   : > { %4409 = vmatprep.subr.bf16.mxu0 %v10658_v55 }
 0x360   : > { %4451 = vmatpush2.bf16.msra.mxu1 %v10659_v56  ;;  %v10719_v56 = vld [vmem:[#allocation8 + $0xa58] ss:$72 sps:$4 sm:$0xff]  }
 0x361   : > { %4410 = vmatpush2.bf16.msra.mxu0 %v10656_v57  ;;  %4452 = vmatprep.subr.bf16.mxu1 %v10667_v46  ;;  %v10724_v57 = vld [vmem:[#allocation8 + $0xcc] ss:$72 sps:$4 sm:$0xff]  }
 0x362   : > { %4411 = vmatprep.subr.bf16.mxu0 %v10664_v48  ;;  %v10727_v48 = vld [vmem:[#allocation8 + $0x9cc] ss:$72 sps:$4 sm:$0xff]  }
 0x364   : > { %4453 = vmatpush2.bf16.msra.mxu1 %v10665_v60 }
 0x365   : > { %4412 = vmatpush2.bf16.msra.mxu0 %v10662_v61  ;;  %4454 = vmatprep.subr.bf16.mxu1 %v10673_v62  ;;  %v10722_v61 = vld [vmem:[#allocation8 + $0xc8] ss:$72 sps:$4 sm:$0xff]  }
 0x366   : > { %4413 = vmatprep.subr.bf16.mxu0 %v10670_v0  ;;  %v10725_v0 = vld [vmem:[#allocation8 + $0x9c8] ss:$72 sps:$4 sm:$0xff]  }
 0x368   : > { %4455 = vmatpush2.bf16.msra.mxu1 %v10671_v1  ;;  %v10730_v1 = vld [vmem:[#allocation8 + $0x3c] ss:$72 sps:$4 sm:$0xff]  }
 0x369   : > { %4414 = vmatpush2.bf16.msra.mxu0 %v10668_v2  ;;  %4456 = vmatprep.subr.bf16.mxu1 %v10679_v3  ;;  %v10733_v2 = vld [vmem:[#allocation8 + $0x93c] ss:$72 sps:$4 sm:$0xff]   ;;  %v10728_v3 = vld [vmem:[#allocation8 + $0x38] ss:$72 sps:$4 sm:$0xff]  }
 0x36a   : > { %4415 = vmatprep.subr.bf16.mxu0 %v10676_v5  ;;  %v10731_v5 = vld [vmem:[#allocation8 + $0x938] ss:$72 sps:$4 sm:$0xff]  }
 0x36c   : > { %4457 = vmatpush2.bf16.msra.mxu1 %v10677_v6  ;;  %v10736_v6 = vld [vmem:[#allocation8 + $0x8ac] ss:$72 sps:$4 sm:$0xff]  }
 0x36d   : > { %4416 = vmatpush2.bf16.msra.mxu0 %v10674_v7  ;;  %4458 = vmatprep.subr.bf16.mxu1 %v10685_v8  ;;  %v10739_v7 = vld [vmem:[#allocation8 + $0x108c] ss:$72 sps:$4 sm:$0xff]   ;;  %v10734_v8 = vld [vmem:[#allocation8 + $0x8a8] ss:$72 sps:$4 sm:$0xff]  }
 0x36e   : > { %4417 = vmatprep.subr.bf16.mxu0 %v10682_v9  ;;  %v10737_v9 = vld [vmem:[#allocation8 + $0x1088] ss:$72 sps:$4 sm:$0xff]  }
 0x370   : > { %4459 = vmatpush2.bf16.msra.mxu1 %v10683_v10  ;;  %v10742_v10 = vld [vmem:[#allocation8 + $0x81c] ss:$72 sps:$4 sm:$0xff]  }
 0x371   : > { %4418 = vmatpush2.bf16.msra.mxu0 %v10680_v11  ;;  %4469 = vmatprep.subr.bf16.mxu1 %v10688_v13  ;;  %v10745_v11 = vld [vmem:[#allocation8 + $0xffc] ss:$72 sps:$4 sm:$0xff]   ;;  %v10740_v13 = vld [vmem:[#allocation8 + $0x818] ss:$72 sps:$4 sm:$0xff]  }
 0x372   : > { %4510 = vmatprep.subr.bf16.mxu0 %v10691_v14  ;;  %v10743_v14 = vld [vmem:[#allocation8 + $0xff8] ss:$72 sps:$4 sm:$0xff]  }
 0x373   : > { %4461 = vmatmul.mubr.bf16.vlgmr.msra.gmra.mxu1 %v12300_v49 }
 0x374   : > { %4420 = vmatmul.mubr.bf16.vlgmr.msra.gmra.mxu0 %v12298_v47  ;;  %4470 = vmatpush1.bf16.msra.mxu1 %v10686_v15  ;;  %v10748_v15 = vld [vmem:[#allocation8 + $0x78c] ss:$72 sps:$4 sm:$0xff]  }
 0x375   : > { %4501 = vmatprep.mubr.bf16.mxu1 %v12294_v58  ;;  %4511 = vmatpush1.bf16.msra.mxu0 %v10689_v16  ;;  %v10751_v16 = vld [vmem:[#allocation8 + $0xf6c] ss:$72 sps:$4 sm:$0xff]  }
 0x376   : > { %9356 = vmatprep.mubr.msk.bf16.mxu0 %vm570_vm0, %v12296_v59  ;;  %4471 = vmatprep.subr.bf16.mxu1 %v10694_v17  ;;  %v10746_v17 = vld [vmem:[#allocation8 + $0x788] ss:$72 sps:$4 sm:$0xff]  }
 0x377   : > { %4512 = vmatprep.subr.bf16.mxu0 %v10697_v19  ;;  %v10749_v19 = vld [vmem:[#allocation8 + $0xf68] ss:$72 sps:$4 sm:$0xff]  }
 0x378   : > { %4472 = vmatpush1.bf16.msra.mxu1 %v10692_v20  ;;  %v10754_v20 = vld [vmem:[#allocation8 + $0x6fc] ss:$72 sps:$4 sm:$0xff]  }
 0x379   : > { %4513 = vmatpush1.bf16.msra.mxu0 %v10695_v21  ;;  %4473 = vmatprep.subr.bf16.mxu1 %v10700_v22  ;;  %v10757_v21 = vld [vmem:[#allocation8 + $0xedc] ss:$72 sps:$4 sm:$0xff]   ;;  %v10752_v22 = vld [vmem:[#allocation8 + $0x6f8] ss:$72 sps:$4 sm:$0xff]  }
 0x37a   : > { %4514 = vmatprep.subr.bf16.mxu0 %v10703_v29  ;;  %v10755_v29 = vld [vmem:[#allocation8 + $0xed8] ss:$72 sps:$4 sm:$0xff]  }
 0x37c   : > { %v4216_v35 = vpop.f32.mrf.mxu0  ;;  %4474 = vmatpush1.bf16.msra.mxu1 %v10698_v30  ;;  %v10760_v30 = vld [vmem:[#allocation8 + $0x66c] ss:$72 sps:$4 sm:$0xff]  }
 0x37d   : > { %4515 = vmatpush1.bf16.msra.mxu0 %v10701_v31  ;;  %4475 = vmatprep.subr.bf16.mxu1 %v10706_v32  ;;  %v10763_v31 = vld [vmem:[#allocation8 + $0xe4c] ss:$72 sps:$4 sm:$0xff]   ;;  %v10758_v32 = vld [vmem:[#allocation8 + $0x668] ss:$72 sps:$4 sm:$0xff]  }
 0x37e   : > { %v4218_v39 = vpop.f32.mrf.mxu0  ;;  %4516 = vmatprep.subr.bf16.mxu0 %v10709_v33  ;;  %v10761_v33 = vld [vmem:[#allocation8 + $0xe48] ss:$72 sps:$4 sm:$0xff]  }
 0x380   : > { %v4220_v42 = vpop.f32.mrf.mxu0  ;;  %4476 = vmatpush1.bf16.msra.mxu1 %v10704_v36  ;;  %v10769_v36 = vld [vmem:[#allocation8 + $0xdbc] ss:$72 sps:$4 sm:$0xff]  }
 0x381   : > { %4517 = vmatpush1.bf16.msra.mxu0 %v10707_v37  ;;  %4477 = vmatprep.subr.bf16.mxu1 %v10712_v38  ;;  %v10764_v37 = vld [vmem:[#allocation8 + $0x5d8] ss:$72 sps:$4 sm:$0xff]   ;;  %v10770_v42 = vld [vmem:[#allocation8 + $0x548] ss:$72 sps:$4 sm:$0xff]  }
 0x382   : > { %v4221_v50 = vpop.f32.mrf.mxu0  ;;  %4518 = vmatprep.subr.bf16.mxu0 %v10715_v41  ;;  %v10767_v38 = vld [vmem:[#allocation8 + $0xdb8] ss:$72 sps:$4 sm:$0xff]   ;;  %v10775_v41 = vld [vmem:[#allocation8 + $0x434] ss:$72 sps:$4 sm:$0xff]  }
 0x383   : > { %v4175_v52 = vpop.f32.mrf.mxu1  ;;  %v10776_v50 = vld [vmem:[#allocation8 + $0x4b8] ss:$72 sps:$4 sm:$0xff]  }
 0x384   : > { %v12352_v53 = vadd.f32 %v4216_v35, %v4175_v52  ;;  %4478 = vmatpush1.bf16.msra.mxu1 %v10710_v43  ;;  %v10766_v35 = vld [vmem:[#allocation8 + $0x5dc] ss:$72 sps:$4 sm:$0xff]   ;;  %v10773_v43 = vld [vmem:[#allocation8 + $0x430] ss:$72 sps:$4 sm:$0xff]  }
 0x385   : > { %4519 = vmatpush1.bf16.msra.mxu0 %v10713_v44  ;;  %v4177_v55 = vpop.f32.mrf.mxu1  ;;  %4479 = vmatprep.subr.bf16.mxu1 %v10718_v45  ;;  %v10778_v44 = vld [vmem:[#allocation8 + $0x4bc] ss:$72 sps:$4 sm:$0xff]  }
 0x386   : > { %v12354_v46 = vadd.f32 %v4218_v39, %v4177_v55  ;;  %4520 = vmatprep.subr.bf16.mxu0 %v10721_v51  ;;  %v10772_v39 = vld [vmem:[#allocation8 + $0x54c] ss:$72 sps:$4 sm:$0xff]   ;;  %v10779_v51 = vld [vmem:[#allocation8 + $0x3a0] ss:$72 sps:$4 sm:$0xff]   ;;  %v10785_v55 = vld [vmem:[#allocation8 + $0xd30] ss:$72 sps:$4 sm:$0xff]  }
 0x387   : > { %v4179_v60 = vpop.f32.mrf.mxu1  ;;  %v10781_v45 = vld [vmem:[#allocation8 + $0x3a4] ss:$72 sps:$4 sm:$0xff]   ;;  %v10787_v52 = vld [vmem:[#allocation8 + $0xd34] ss:$72 sps:$4 sm:$0xff]  }
 0x388   : > { %4480 = vmatpush1.bf16.msra.mxu1 %v10716_v54  ;;  %v10784_v54 = vld [vmem:[#allocation8 + $0x314] ss:$72 sps:$4 sm:$0xff]   ;;  %v10788_v60 = vld [vmem:[#allocation8 + $0x280] ss:$72 sps:$4 sm:$0xff]  }
 0x389   : > { %4521 = vmatpush1.bf16.msra.mxu0 %v10719_v56  ;;  %v4180_v62 = vpop.f32.mrf.mxu1  ;;  %4481 = vmatprep.subr.bf16.mxu1 %v10724_v57  ;;  %v10782_v56 = vld [vmem:[#allocation8 + $0x310] ss:$72 sps:$4 sm:$0xff]   ;;  %v10793_v57 = vld [vmem:[#allocation8 + $0xca4] ss:$72 sps:$4 sm:$0xff]  }
 0x38a   : > { %4522 = vmatprep.subr.bf16.mxu0 %v10727_v48  ;;  %v10790_v48 = vld [vmem:[#allocation8 + $0x284] ss:$72 sps:$4 sm:$0xff]   ;;  %v10796_v62 = vld [vmem:[#allocation8 + $0x1f4] ss:$72 sps:$4 sm:$0xff]  }
 0x38c   : > { %4482 = vmatpush1.bf16.msra.mxu1 %v10722_v61  ;;  %v10799_v61 = vld [vmem:[#allocation8 + $0xc14] ss:$72 sps:$4 sm:$0xff]  }
 0x38d   : > { %4523 = vmatpush1.bf16.msra.mxu0 %v10725_v0  ;;  %4483 = vmatprep.subr.bf16.mxu1 %v10730_v1  ;;  %v10797_v0 = vld [vmem:[#allocation8 + $0xc10] ss:$72 sps:$4 sm:$0xff]  }
 0x38e   : > { %4524 = vmatprep.subr.bf16.mxu0 %v10733_v2  ;;  %v10794_v1 = vld [vmem:[#allocation8 + $0x1f0] ss:$72 sps:$4 sm:$0xff]   ;;  %v10805_v2 = vld [vmem:[#allocation8 + $0xb84] ss:$72 sps:$4 sm:$0xff]  }
 0x390   : > { %4484 = vmatpush1.bf16.msra.mxu1 %v10728_v3  ;;  %v10802_v3 = vld [vmem:[#allocation8 + $0x164] ss:$72 sps:$4 sm:$0xff]  }
 0x391   : > { %4525 = vmatpush1.bf16.msra.mxu0 %v10731_v5  ;;  %4485 = vmatprep.subr.bf16.mxu1 %v10736_v6 }
 0x392   : > { %4530 = vmatprep.subr.bf16.mxu0 %v10739_v7 }
 0x394   : > { %4486 = vmatpush2.bf16.msra.mxu1 %v10734_v8  ;;  %v10800_v8 = vld [vmem:[#allocation8 + $0x160] ss:$72 sps:$4 sm:$0xff]  }
 0x395   : > { %4531 = vmatpush2.bf16.msra.mxu0 %v10737_v9  ;;  %4487 = vmatprep.subr.bf16.mxu1 %v10742_v10  ;;  %v10811_v9 = vld [vmem:[#allocation8 + $0xaf4] ss:$72 sps:$4 sm:$0xff]  }
 0x396   : > { %4532 = vmatprep.subr.bf16.mxu0 %v10745_v11  ;;  %v10808_v11 = vld [vmem:[#allocation8 + $0xd4] ss:$72 sps:$4 sm:$0xff]  }
 0x398   : > { %4488 = vmatpush2.bf16.msra.mxu1 %v10740_v13 }
 0x399   : > { %4533 = vmatpush2.bf16.msra.mxu0 %v10743_v14  ;;  %4489 = vmatprep.subr.bf16.mxu1 %v10748_v15 }
 0x39a   : > { %4534 = vmatprep.subr.bf16.mxu0 %v10751_v16  ;;  %v10809_v16 = vld [vmem:[#allocation8 + $0xaf0] ss:$72 sps:$4 sm:$0xff]  }
 0x39c   : > { %4490 = vmatpush2.bf16.msra.mxu1 %v10746_v17 }
 0x39d   : > { %4535 = vmatpush2.bf16.msra.mxu0 %v10749_v19  ;;  %4491 = vmatprep.subr.bf16.mxu1 %v10754_v20  ;;  %v10806_v19 = vld [vmem:[#allocation8 + $0xd0] ss:$72 sps:$4 sm:$0xff]   ;;  %v10817_v20 = vld [vmem:[#allocation8 + $0xa64] ss:$72 sps:$4 sm:$0xff]  }
 0x39e   : > { %4536 = vmatprep.subr.bf16.mxu0 %v10757_v21 }
 0x3a0   : > { %4492 = vmatpush2.bf16.msra.mxu1 %v10752_v22  ;;  %v10814_v22 = vld [vmem:[#allocation8 + $0x44] ss:$72 sps:$4 sm:$0xff]  }
 0x3a1   : > { %4537 = vmatpush2.bf16.msra.mxu0 %v10755_v29  ;;  %4493 = vmatprep.subr.bf16.mxu1 %v10760_v30  ;;  %v10815_v29 = vld [vmem:[#allocation8 + $0xa60] ss:$72 sps:$4 sm:$0xff]  }
 0x3a2   : > { %4538 = vmatprep.subr.bf16.mxu0 %v10763_v31  ;;  %v10812_v30 = vld [vmem:[#allocation8 + $0x40] ss:$72 sps:$4 sm:$0xff]   ;;  %v10823_v31 = vld [vmem:[#allocation8 + $0x9d4] ss:$72 sps:$4 sm:$0xff]  }
 0x3a4   : > { %4494 = vmatpush2.bf16.msra.mxu1 %v10758_v32  ;;  %v10820_v32 = vld [vmem:[#allocation8 + $0x8b4] ss:$72 sps:$4 sm:$0xff]  }
 0x3a5   : > { %4539 = vmatpush2.bf16.msra.mxu0 %v10761_v33  ;;  %4495 = vmatprep.subr.bf16.mxu1 %v10766_v35  ;;  %v10821_v33 = vld [vmem:[#allocation8 + $0x9d0] ss:$72 sps:$4 sm:$0xff]  }
 0x3a6   : > { %4540 = vmatprep.subr.bf16.mxu0 %v10769_v36  ;;  %v10818_v35 = vld [vmem:[#allocation8 + $0x8b0] ss:$72 sps:$4 sm:$0xff]   ;;  %v10829_v36 = vld [vmem:[#allocation8 + $0x944] ss:$72 sps:$4 sm:$0xff]  }
 0x3a8   : > { %4496 = vmatpush2.bf16.msra.mxu1 %v10764_v37  ;;  %v10826_v37 = vld [vmem:[#allocation8 + $0x824] ss:$72 sps:$4 sm:$0xff]  }
 0x3a9   : > { %4541 = vmatpush2.bf16.msra.mxu0 %v10767_v38  ;;  %4497 = vmatprep.subr.bf16.mxu1 %v10772_v39  ;;  %v10827_v38 = vld [vmem:[#allocation8 + $0x940] ss:$72 sps:$4 sm:$0xff]  }
 0x3aa   : > { %4551 = vmatprep.subr.bf16.mxu0 %v10775_v41  ;;  %v10824_v39 = vld [vmem:[#allocation8 + $0x820] ss:$72 sps:$4 sm:$0xff]   ;;  %v10835_v41 = vld [vmem:[#allocation8 + $0x1094] ss:$72 sps:$4 sm:$0xff]  }
 0x3ac   : > { %4543 = vmatmul.mubr.bf16.vlgmr.msra.gmra.mxu0 %v12300_v49  ;;  %4498 = vmatpush2.bf16.msra.mxu1 %v10770_v42  ;;  %v10832_v42 = vld [vmem:[#allocation8 + $0x794] ss:$72 sps:$4 sm:$0xff]  }
 0x3ad   : > { %4552 = vmatpush1.bf16.msra.mxu0 %v10773_v43  ;;  %4583 = vmatprep.mubr.bf16.mxu0 %v12294_v58  ;;  %v10791_v58 = vld [vmem:[#allocation8 + $0xca0] ss:$72 sps:$4 sm:$0xff]   ;;  %v10833_v43 = vld [vmem:[#allocation8 + $0x1090] ss:$72 sps:$4 sm:$0xff]  }
 0x3ae   : > { %4499 = vmatprep.subr.bf16.mxu1 %v10778_v44  ;;  %4553 = vmatprep.subr.bf16.mxu0 %v10781_v45  ;;  %v10830_v44 = vld [vmem:[#allocation8 + $0x790] ss:$72 sps:$4 sm:$0xff]   ;;  %v10841_v45 = vld [vmem:[#allocation8 + $0x1004] ss:$72 sps:$4 sm:$0xff]  }
 0x3b0   : > { %4500 = vmatpush2.bf16.msra.mxu1 %v10776_v50  ;;  %v10838_v50 = vld [vmem:[#allocation8 + $0x704] ss:$72 sps:$4 sm:$0xff]  }
 0x3b1   : > { %4554 = vmatpush1.bf16.msra.mxu0 %v10779_v51  ;;  %4592 = vmatprep.subr.bf16.mxu1 %v10787_v52  ;;  %v10839_v51 = vld [vmem:[#allocation8 + $0x1000] ss:$72 sps:$4 sm:$0xff]  }
 0x3b2   : > { %4555 = vmatprep.subr.bf16.mxu0 %v10784_v54  ;;  %v10836_v52 = vld [vmem:[#allocation8 + $0x700] ss:$72 sps:$4 sm:$0xff]   ;;  %v10847_v54 = vld [vmem:[#allocation8 + $0xf74] ss:$72 sps:$4 sm:$0xff]  }
 0x3b3   : > { %4502 = vmatmul.mubr.bf16.vlgmr.msra.gmra.mxu1 %v12298_v47 }
 0x3b4   : > { %4593 = vmatpush1.bf16.msra.mxu1 %v10785_v55  ;;  %9357 = vmatprep.mubr.msk.bf16.mxu1 %vm570_vm0, %v12296_v59  ;;  %v10803_v59 = vld [vmem:[#allocation8 + $0xb80] ss:$72 sps:$4 sm:$0xff]   ;;  %v10844_v55 = vld [vmem:[#allocation8 + $0x674] ss:$72 sps:$4 sm:$0xff]  }
 0x3b5   : > { %4556 = vmatpush1.bf16.msra.mxu0 %v10782_v56  ;;  %4594 = vmatprep.subr.bf16.mxu1 %v10793_v57  ;;  %v10845_v56 = vld [vmem:[#allocation8 + $0xf70] ss:$72 sps:$4 sm:$0xff]  }
 0x3b6   : > { %4557 = vmatprep.subr.bf16.mxu0 %v10790_v48  ;;  %v10842_v57 = vld [vmem:[#allocation8 + $0x670] ss:$72 sps:$4 sm:$0xff]   ;;  %v10853_v48 = vld [vmem:[#allocation8 + $0xee4] ss:$72 sps:$4 sm:$0xff]  }
 0x3b8   : > { %4595 = vmatpush1.bf16.msra.mxu1 %v10791_v58  ;;  %v10850_v58 = vld [vmem:[#allocation8 + $0x5e4] ss:$72 sps:$4 sm:$0xff]  }
 0x3b9   : > { %4558 = vmatpush1.bf16.msra.mxu0 %v10788_v60  ;;  %4596 = vmatprep.subr.bf16.mxu1 %v10799_v61  ;;  %v10851_v60 = vld [vmem:[#allocation8 + $0xee0] ss:$72 sps:$4 sm:$0xff]  }
 0x3ba   : > { %4559 = vmatprep.subr.bf16.mxu0 %v10796_v62  ;;  %v10848_v61 = vld [vmem:[#allocation8 + $0x5e0] ss:$72 sps:$4 sm:$0xff]   ;;  %v10859_v62 = vld [vmem:[#allocation8 + $0xe54] ss:$72 sps:$4 sm:$0xff]  }
 0x3bb   : > { %v12361_v5 = vpop.f32.mrf.mxu1 }
 0x3bc   : > { %v12363_v6 = vpop.f32.mrf.mxu0  ;;  %4597 = vmatpush1.bf16.msra.mxu1 %v10797_v0  ;;  %v10856_v0 = vld [vmem:[#allocation8 + $0x554] ss:$72 sps:$4 sm:$0xff]  }
 0x3bd   : > { %4560 = vmatpush1.bf16.msra.mxu0 %v10794_v1  ;;  %v4300_v7 = vpop.f32.mrf.mxu1  ;;  %4598 = vmatprep.subr.bf16.mxu1 %v10805_v2  ;;  %v10857_v1 = vld [vmem:[#allocation8 + $0xe50] ss:$72 sps:$4 sm:$0xff]  }
 0x3be   : > { %v4259_v10 = vpop.f32.mrf.mxu0  ;;  %4561 = vmatprep.subr.bf16.mxu0 %v10802_v3  ;;  %v10854_v2 = vld [vmem:[#allocation8 + $0x550] ss:$72 sps:$4 sm:$0xff]   ;;  %v10865_v3 = vld [vmem:[#allocation8 + $0xdc4] ss:$72 sps:$4 sm:$0xff]  }
 0x3bf   : > { %v12365_v13 = vadd.f32 %v4300_v7, %v4259_v10  ;;  %v4302_v14 = vpop.f32.mrf.mxu1  ;;  %v10863_v7 = vld [vmem:[#allocation8 + $0xdc0] ss:$72 sps:$4 sm:$0xff]   ;;  %v4639_v10 = vpack.c.bf16 %v12352_v53, %v12352_v53  ;;  %v4743_v53 = vpack.c.bf16 %v12354_v46, %v12354_v46 }
 0x3c0   : > { %v4261_v15 = vpop.f32.mrf.mxu0  ;;  %4599 = vmatpush1.bf16.msra.mxu1 %v10803_v59  ;;  %v10862_v59 = vld [vmem:[#allocation8 + $0x4c4] ss:$72 sps:$4 sm:$0xff]  }
 0x3c1   : > { %4562 = vmatpush1.bf16.msra.mxu0 %v10800_v8  ;;  %v4303_v17 = vpop.f32.mrf.mxu1  ;;  %4600 = vmatprep.subr.bf16.mxu1 %v10811_v9  ;;  %v10860_v8 = vld [vmem:[#allocation8 + $0x4c0] ss:$72 sps:$4 sm:$0xff]   ;;  %v11935_v9 = vmov 0.0  }
 0x3c2   : > { %v4262_v21 = vpop.f32.mrf.mxu0  ;;  %4563 = vmatprep.subr.bf16.mxu0 %v10808_v11  ;;  %v4638_v11 = vpack.c.bf16 %v12325_v34, %v12325_v34 }
 0x3c3   : > { %v4947_v21 = vpack.c.bf16 %v12365_v13, %v12365_v13  ;;  %v5048_v13 = vpack.c.bf16 %v12343_v12, %v12343_v12 }
 0x3c4   : > { %4601 = vmatpush1.bf16.msra.mxu1 %v10809_v16  ;;  %v4742_v16 = vpack.c.bf16 %v12327_v40, %v12327_v40 }
 0x3c5   : > { %4564 = vmatpush1.bf16.msra.mxu0 %v10806_v19  ;;  %4602 = vmatprep.subr.bf16.mxu1 %v10817_v20 }
 0x3c6   : > { %4565 = vmatprep.subr.bf16.mxu0 %v10814_v22  ;;  %v4946_v22 = vpack.c.bf16 %v12336_v4, %v12336_v4  ;;  %v5150_v4 = vpack.c.bf16 %v12345_v18, %v12345_v18 }
 0x3c8   : > { %4603 = vmatpush1.bf16.msra.mxu1 %v10815_v29 }
 0x3c9   : > { %4566 = vmatpush1.bf16.msra.mxu0 %v10812_v30  ;;  %4604 = vmatprep.subr.bf16.mxu1 %v10823_v31 }
 0x3ca   : > { %4567 = vmatprep.subr.bf16.mxu0 %v10820_v32 }
 0x3cc   : > { %4605 = vmatpush1.bf16.msra.mxu1 %v10821_v33 }
 0x3cd   : > { %4568 = vmatpush2.bf16.msra.mxu0 %v10818_v35  ;;  %4606 = vmatprep.subr.bf16.mxu1 %v10829_v36 }
 0x3ce   : > { %4569 = vmatprep.subr.bf16.mxu0 %v10826_v37 }
 0x3d0   : > { %4607 = vmatpush1.bf16.msra.mxu1 %v10827_v38 }
 0x3d1   : > { %4570 = vmatpush2.bf16.msra.mxu0 %v10824_v39  ;;  %4612 = vmatprep.subr.bf16.mxu1 %v10835_v41 }
 0x3d2   : > { %4571 = vmatprep.subr.bf16.mxu0 %v10832_v42 }
 0x3d4   : > { %4613 = vmatpush2.bf16.msra.mxu1 %v10833_v43 }
 0x3d5   : > { %4572 = vmatpush2.bf16.msra.mxu0 %v10830_v44  ;;  %4614 = vmatprep.subr.bf16.mxu1 %v10841_v45 }
 0x3d6   : > { %4573 = vmatprep.subr.bf16.mxu0 %v10838_v50 }
 0x3d8   : > { %4615 = vmatpush2.bf16.msra.mxu1 %v10839_v51 }
 0x3d9   : > { %4574 = vmatpush2.bf16.msra.mxu0 %v10836_v52  ;;  %4616 = vmatprep.subr.bf16.mxu1 %v10847_v54 }
 0x3da   : > { %4575 = vmatprep.subr.bf16.mxu0 %v10844_v55 }
 0x3dc   : > { %4617 = vmatpush2.bf16.msra.mxu1 %v10845_v56 }
 0x3dd   : > { %4576 = vmatpush2.bf16.msra.mxu0 %v10842_v57  ;;  %4618 = vmatprep.subr.bf16.mxu1 %v10853_v48 }
 0x3de   : > { %4577 = vmatprep.subr.bf16.mxu0 %v10850_v58 }
 0x3e0   : > { %4619 = vmatpush2.bf16.msra.mxu1 %v10851_v60 }
 0x3e1   : > { %4578 = vmatpush2.bf16.msra.mxu0 %v10848_v61  ;;  %4620 = vmatprep.subr.bf16.mxu1 %v10859_v62  ;;  %v4636_v62 = vand.u32 127, %v599_v23 }
 0x3e2   : > { %4579 = vmatprep.subr.bf16.mxu0 %v10856_v0 }
 0x3e3   : > { %vm12424_vm3 = vcmp.ge.s32.totalorder %v12268_v24, %v4636_v62 }
 0x3e4   : > { %4621 = vmatpush2.bf16.msra.mxu1 %v10857_v1 }
 0x3e5   : > { %4580 = vmatpush2.bf16.msra.mxu0 %v10854_v2  ;;  %4622 = vmatprep.subr.bf16.mxu1 %v10865_v3 }
 0x3e6   : > { %4581 = vmatprep.subr.bf16.mxu0 %v10862_v59 }
 0x3e8   : > { %4623 = vmatpush2.bf16.msra.mxu1 %v10863_v7 }
 0x3e9   : > { %4582 = vmatpush2.bf16.msra.mxu0 %v10860_v8  ;;  %9831 = vmatprep.subr.bf16.mxu1 %v11935_v9 }
 0x3ea   : > { %9837 = vmatprep.subr.bf16.mxu0 %v11935_v9 }
 0x3eb   : > { %4625 = vmatmul.mubr.bf16.vlgmr.msra.gmra.mxu1 %v12300_v49 }
 0x3ec   : > { %4584 = vmatmul.mubr.bf16.vlgmr.msra.gmra.mxu0 %v12298_v47  ;;  %9832 = vmatpush3.bf16.xpose.msra.mxu1 %v4639_v10  ;;  %v4299_v47 = vadd.f32 %v12361_v5, %v12363_v6  ;;  %v4844_v5 = vpack.c.bf16 %v12334_v63, %v12334_v63 }
 0x3ed   : > { %9833 = vmatprep.mubr.msk.bf16.mxu1 %vm11936_vm1, %v11935_v9  ;;  %9843 = vmatprep.subr.bf16.mxu1 %v11935_v9 }
 0x3ee   : > { %9839 = vmatprep.mubr.msk.bf16.mxu0 %vm11936_vm1, %v11935_v9  ;;  %v4845_v34 = vpack.c.bf16 %v4299_v47, %v4299_v47 }
 0x3f3   : > { %9834 = vmatmul.mubr.bf16.vlgmr.msra.gmra.mxu1 %v4638_v11 }
 0x3f4   : > { %v4380_v49 = vpop.f32.mrf.mxu0  ;;  %9844 = vmatpush3.bf16.xpose.msra.mxu1 %v4743_v53  ;;  %9845 = vmatprep.mubr.msk.bf16.mxu1 %vm11936_vm1, %v11935_v9 }
 0x3f5   : > { %9855 = vmatprep.subr.bf16.mxu1 %v11935_v9 }
 0x3f6   : > { %v4382_v14 = vpop.f32.mrf.mxu0 }
 0x3f8   : > { %v4384_v15 = vpop.f32.mrf.mxu0 }
 0x3fa   : > { %v4385_v17 = vpop.f32.mrf.mxu0 }
 0x3fb   : > { %v4339_v19 = vpop.f32.mrf.mxu1  ;;  %9846 = vmatmul.mubr.bf16.vlgmr.msra.gmra.mxu1 %v4742_v16 }
 0x3fc   : > { %9856 = vmatpush3.bf16.xpose.msra.mxu1 %v4845_v34  ;;  %9857 = vmatprep.mubr.msk.bf16.mxu1 %vm11936_vm1, %v11935_v9  ;;  %v4381_v40 = vadd.f32 %v4380_v49, %v4339_v19 }
 0x3fd   : > { %v4341_v46 = vpop.f32.mrf.mxu1  ;;  %9867 = vmatprep.subr.bf16.mxu1 %v11935_v9 }
 0x3fe   : > { %v5049_v29 = vpack.c.bf16 %v4381_v40, %v4381_v40  ;;  %v4383_v63 = vadd.f32 %v4382_v14, %v4341_v46 }
 0x3ff   : > { %v4343_v20 = vpop.f32.mrf.mxu1 }
 0x400   : > { %v5151_v30 = vpack.c.bf16 %v4383_v63, %v4383_v63 }
 0x401   : > { %v4344_v6 = vpop.f32.mrf.mxu1 }
 0x403   : > { %9858 = vmatmul.mubr.bf16.vlgmr.msra.gmra.mxu1 %v4844_v5 }
 0x404   : > { %9868 = vmatpush3.bf16.xpose.msra.mxu1 %v4947_v21  ;;  %9869 = vmatprep.mubr.msk.bf16.mxu1 %vm11936_vm1, %v11935_v9 }
 0x405   : > { %9879 = vmatprep.subr.bf16.mxu1 %v11935_v9 }
 0x40b   : > { %9870 = vmatmul.mubr.bf16.vlgmr.msra.gmra.mxu1 %v4946_v22 }
 0x40c   : > { %9880 = vmatpush3.bf16.xpose.msra.mxu1 %v5049_v29  ;;  %9881 = vmatprep.mubr.msk.bf16.mxu1 %vm11936_vm1, %v11935_v9 }
 0x40d   : > { %9891 = vmatprep.subr.bf16.mxu1 %v11935_v9 }
 0x413   : > { %9882 = vmatmul.mubr.bf16.vlgmr.msra.gmra.mxu1 %v5048_v13 }
 0x414   : > { %9892 = vmatpush3.bf16.xpose.msra.mxu1 %v5151_v30  ;;  %9893 = vmatprep.mubr.msk.bf16.mxu1 %vm11936_vm1, %v11935_v9 }
 0x41b   : > { %9894 = vmatmul.mubr.bf16.vlgmr.msra.gmra.mxu1 %v5150_v4 }
 0x433   : > { %v4462_v31 = vpop.f32.mrf.mxu1 }
 0x434   : > { %v4421_v32 = vpop.f32.mrf.mxu0 }
 0x435   : > { %v4463_v33 = vadd.f32 %v4462_v31, %v4421_v32  ;;  %v4464_v35 = vpop.f32.mrf.mxu1 }
 0x436   : > { %v4423_v36 = vpop.f32.mrf.mxu0 }
 0x437   : > { %v4694_v37 = vpack.c.bf16 %v4463_v33, %v4463_v33  ;;  %v12410_v38 = vadd.f32 %v4464_v35, %v4423_v36  ;;  %v4466_v12 = vpop.f32.mrf.mxu1 }
 0x438   : > { %v4425_v39 = vpop.f32.mrf.mxu0 }
 0x439   : > { %v4700_v41 = vsel %vm4698_vm2, %v4694_v37, 0  ;;  %v4467_v42 = vpop.f32.mrf.mxu1 }
 0x43a   : > { %v4426_v43 = vpop.f32.mrf.mxu0  ;;  %9838 = vmatpush3.bf16.msra.mxu0 %v4700_v41 }
 0x43b   : > { %9849 = vmatprep.subr.bf16.mxu0 %v11935_v9 }
 0x46c   : > { %v4544_v18 = vpop.f32.mrf.mxu0 }
 0x46e   : > { %v4546_v44 = vpop.f32.mrf.mxu0 }
 0x470   : > { %v4548_v45 = vpop.f32.mrf.mxu0 }
 0x472   : > { %v4549_v50 = vpop.f32.mrf.mxu0 }
 0x473   : > { %v4503_v51 = vpop.f32.mrf.mxu1 }
 0x474   : > { %v12414_v52 = vadd.f32 %v4544_v18, %v4503_v51 }
 0x475   : > { %v4505_v54 = vpop.f32.mrf.mxu1 }
 0x476   : > { %v12416_v55 = vadd.f32 %v4546_v44, %v4505_v54 }
 0x477   : > { %v4507_v56 = vpop.f32.mrf.mxu1 }
 0x479   : > { %v4508_v57 = vpop.f32.mrf.mxu1 }
 0x4ab   : > { %v4626_v48 = vpop.f32.mrf.mxu1 }
 0x4ac   : > { %v4585_v58 = vpop.f32.mrf.mxu0 }
 0x4ad   : > { %v12418_v60 = vadd.f32 %v4626_v48, %v4585_v58  ;;  %v4628_v61 = vpop.f32.mrf.mxu1 }
 0x4ae   : > { %v4587_v0 = vpop.f32.mrf.mxu0 }
 0x4af   : > { %v12421_v1 = vadd.f32 %v4628_v61, %v4587_v0  ;;  %v4630_v2 = vpop.f32.mrf.mxu1 }
 0x4b0   : > { %v4589_v3 = vpop.f32.mrf.mxu0 }
 0x4b1   : > { %v4631_v59 = vpop.f32.mrf.mxu1 }
 0x4b2   : > { %v4590_v8 = vpop.f32.mrf.mxu0 }
 0x4b3   : > { %v4674_v10 = vpop.f32.mrf.mxu1 }
 0x4b4   : > { %v4680_v11 = vsel %vm12424_vm3, %v4674_v10, -1e+30 }
 0x4b5   : > { %v9835_v53 = vpop.f32.mrf.mxu1  ;;  %v4682_v23 = vsel %vm4681_vm4, %v4680_v11, -inf }
 0x4b6   : > { %4683 = vmax.xlane.f32.xlu1 %v4682_v23 }
 0x4b7   : > { %v4677_v49 = vpop.f32.mrf.mxu1 }
 0x4b9   : > { %v9836_v47 = vpop.f32.mrf.mxu1 }
 0x4bb   : > { %v4778_v14 = vpop.f32.mrf.mxu1 }
 0x4bc   : > { %v4784_v15 = vsel %vm12424_vm3, %v4778_v14, -1e+30 }
 0x4bd   : > { %v9847_v24 = vpop.f32.mrf.mxu1  ;;  %v4785_v16 = vsel %vm4681_vm4, %v4784_v15, -inf }
 0x4be   : > { %4786 = vmax.xlane.f32.xlu1 %v4785_v16 }
 0x4bf   : > { %v4781_v34 = vpop.f32.mrf.mxu1 }
 0x4c1   : > { %v9848_v17 = vpop.f32.mrf.mxu1 }
 0x4c3   : > { %v4880_v19 = vpop.f32.mrf.mxu1 }
 0x4c4   : > { %v4886_v46 = vsel %vm12424_vm3, %v4880_v19, -1e+30  ;;  %v10866_v19 = vld [vmem:[%s13245_s4 + $0xe0] ss:$16 sps:$4 sm:$0xff]  }
 0x4c5   : > { %v9859_v20 = vpop.f32.mrf.mxu1  ;;  %v4887_v5 = vsel %vm4681_vm4, %v4886_v46, -inf }
 0x4c6   : > { %4888 = vmax.xlane.f32.xlu0 %v4887_v5  ;;  %v10871_v20 = vld [vmem:[%s13245_s4 + $0xc4] ss:$16 sps:$4 sm:$0xff]   ;;  %v10869_v5 = vld [vmem:[%s13245_s4 + $0xc0] ss:$16 sps:$4 sm:$0xff]  }
 0x4c7   : > { %v4883_v6 = vpop.f32.mrf.mxu1 }
 0x4c8   : > { %v10874_v6 = vld [vmem:[%s13245_s4 + $0xa4] ss:$16 sps:$4 sm:$0xff]  }
 0x4c9   : > { %v9860_v21 = vpop.f32.mrf.mxu1 }
 0x4ca   : > { %v10872_v21 = vld [vmem:[%s13245_s4 + $0xa0] ss:$16 sps:$4 sm:$0xff]  }
 0x4cb   : > { %v4982_v40 = vpop.f32.mrf.mxu1 }
 0x4cc   : > { %v4988_v22 = vsel %vm12424_vm3, %v4982_v40, -1e+30  ;;  %v10877_v40 = vld [vmem:[%s13245_s4 + $0x84] ss:$16 sps:$4 sm:$0xff]  }
 0x4cd   : > { %v9871_v29 = vpop.f32.mrf.mxu1  ;;  %v4989_v63 = vsel %vm4681_vm4, %v4988_v22, -inf }
 0x4ce   : > { %4990 = vmax.xlane.f32.xlu1 %v4989_v63  ;;  %v10880_v29 = vld [vmem:[%s13245_s4 + $0x64] ss:$16 sps:$4 sm:$0xff]   ;;  %v10878_v63 = vld [vmem:[%s13245_s4 + $0x60] ss:$16 sps:$4 sm:$0xff]  }
 0x4cf   : > { %v4985_v13 = vpop.f32.mrf.mxu1 }
 0x4d0   : > { %v10886_v13 = vld [vmem:[%s13245_s4 + $0x44] ss:$16 sps:$4 sm:$0xff]  }
 0x4d1   : > { %v9872_v30 = vpop.f32.mrf.mxu1 }
 0x4d2   : > { %v10884_v30 = vld [vmem:[%s13245_s4 + $0x40] ss:$16 sps:$4 sm:$0xff]  }
 0x4d3   : > { %v5084_v4 = vpop.f32.mrf.mxu1 }
 0x4d4   : > { %v5090_v31 = vsel %vm12424_vm3, %v5084_v4, -1e+30  ;;  %v10892_v4 = vld [vmem:[%s13245_s4 + $0x24] ss:$16 sps:$4 sm:$0xff]  }
 0x4d5   : > { %v9883_v32 = vpop.f32.mrf.mxu1  ;;  %v5091_v33 = vsel %vm4681_vm4, %v5090_v31, -inf }
 0x4d6   : > { %5092 = vmax.xlane.f32.xlu0 %v5091_v33  ;;  %v10898_v32 = vld [vmem:[%s13245_s4 + $0x4] ss:$16 sps:$4 sm:$0xff]   ;;  %v10896_v33 = vld [vmem:[%s13245_s4] ss:$16 sps:$4 sm:$0xff]  }
 0x4d7   : > { %v5087_v35 = vpop.f32.mrf.mxu1 }
 0x4d8   : > { %v10904_v35 = vld [vmem:[%s13245_s4 + $0x1e4] ss:$16 sps:$4 sm:$0xff]  }
 0x4d9   : > { %v9884_v36 = vpop.f32.mrf.mxu1 }
 0x4da   : > { %v10902_v36 = vld [vmem:[%s13245_s4 + $0x1e0] ss:$16 sps:$4 sm:$0xff]  }
 0x4db   : > { %v5186_v37 = vpop.f32.mrf.mxu1 }
 0x4dc   : > { %v5192_v12 = vsel %vm12424_vm3, %v5186_v37, -1e+30  ;;  %v10910_v37 = vld [vmem:[%s13245_s4 + $0x1c4] ss:$16 sps:$4 sm:$0xff]  }
 0x4dd   : > { %v9895_v39 = vpop.f32.mrf.mxu1  ;;  %v5193_v41 = vsel %vm4681_vm4, %v5192_v12, -inf }
 0x4de   : > { %5194 = vmax.xlane.f32.xlu1 %v5193_v41  ;;  %v10916_v39 = vld [vmem:[%s13245_s4 + $0x1a4] ss:$16 sps:$4 sm:$0xff]   ;;  %v10914_v41 = vld [vmem:[%s13245_s4 + $0x1a0] ss:$16 sps:$4 sm:$0xff]  }
 0x4df   : > { %v5189_v42 = vpop.f32.mrf.mxu1 }
 0x4e0   : > { %v10922_v42 = vld [vmem:[%s13245_s4 + $0x184] ss:$16 sps:$4 sm:$0xff]  }
 0x4e1   : > { %v9896_v43 = vpop.f32.mrf.mxu1 }
 0x4e2   : > { %v10920_v43 = vld [vmem:[%s13245_s4 + $0x180] ss:$16 sps:$4 sm:$0xff]  }
 0x53f   : > { %v4684_v18 = vpop.xlane.xlu1 %4683 }
 0x540   : > { %v4685_v44 = vsub.f32 %v4680_v11, %v4684_v18  ;;  %v10928_v18 = vld [vmem:[%s13245_s4 + $0x164] ss:$16 sps:$4 sm:$0xff]  }
 0x542   : > { %v4686_v45 = vmul.f32 1.442695, %v4685_v44  ;;  %v10926_v44 = vld [vmem:[%s13245_s4 + $0x160] ss:$16 sps:$4 sm:$0xff]  }
 0x544   : > { %11516 = vpow2.f32 %v4686_v45  ;;  %v10934_v45 = vld [vmem:[%s13245_s4 + $0x144] ss:$16 sps:$4 sm:$0xff]  }
 0x547   : > { %v4787_v50 = vpop.xlane.xlu1 %4786 }
 0x548   : > { %v4788_v51 = vsub.f32 %v4784_v15, %v4787_v50  ;;  %v10932_v50 = vld [vmem:[%s13245_s4 + $0x140] ss:$16 sps:$4 sm:$0xff]  }
 0x54a   : > { %v4789_v54 = vmul.f32 1.442695, %v4788_v51 }
 0x54c   : > { %11518 = vpow2.f32 %v4789_v54 }
 0x54f   : > { %v4889_v56 = vpop.xlane.xlu0 %4888 }
 0x550   : > { %v4890_v57 = vsub.f32 %v4886_v46, %v4889_v56  ;;  %v10868_v46 = vld [vmem:[%s13245_s4 + $0xe4] ss:$16 sps:$4 sm:$0xff]  }
 0x551   : > { %v12446_v48 = vpop.eup %11516  ;;  %6432 = vmatprep.subr.bf16.mxu1 %v10868_v46  ;;  %v5205_v46 = vpack.c.bf16 %v12421_v1, %v12421_v1  ;;  %v10881_v1 = vld [vmem:[%s13245_s4 + $0x2e0] ss:$16 sps:$4 sm:$0xff]  }
 0x552   : > { %v4891_v58 = vmul.f32 1.442695, %v4890_v57  ;;  %v4688_v61 = vsel %vm4681_vm4, %v12446_v48, 0.0  ;;  %6433 = vmatpush1.bf16.msra.mxu1 %v10866_v19  ;;  %v4797_v57 = vpack.c.bf16 %v12410_v38, %v12410_v38 }
 0x553   : > { %4689 = vadd.xlane.f32.xlu0 %v4688_v61  ;;  %6434 = vmatprep.subr.bf16.mxu1 %v10871_v20  ;;  %v10883_v20 = vld [vmem:[%s13245_s4 + $0x2e4] ss:$16 sps:$4 sm:$0xff]  }
 0x554   : > { %11520 = vpow2.f32 %v4891_v58 }
 0x556   : > { %6435 = vmatpush1.bf16.msra.mxu1 %v10869_v5  ;;  %v5210_v5 = vsel %vm4698_vm2, %v5205_v46, 0  ;;  %v10965_v46 = vld [vmem:[%s13245_s4 + $0x4a0] ss:$16 sps:$4 sm:$0xff]  }
 0x557   : > { %v4991_v62 = vpop.xlane.xlu1 %4990  ;;  %6436 = vmatprep.subr.bf16.mxu1 %v10874_v6 }
 0x558   : > { %v4992_v0 = vsub.f32 %v4988_v22, %v4991_v62  ;;  %v10875_v22 = vld [vmem:[%s13245_s4 + $0x80] ss:$16 sps:$4 sm:$0xff]  }
 0x559   : > { %v12450_v2 = vpop.eup %11518 }
 0x55a   : > { %v4993_v3 = vmul.f32 1.442695, %v4992_v0  ;;  %v4791_v59 = vsel %vm4681_vm4, %v12450_v2, 0.0  ;;  %6437 = vmatpush1.bf16.msra.mxu1 %v10872_v21  ;;  %v4802_v0 = vsel %vm4698_vm2, %v4797_v57, 0  ;;  %v10952_v57 = vld [vmem:[%s13245_s4 + $0x364] ss:$16 sps:$4 sm:$0xff]  }
 0x55b   : > { %4792 = vadd.xlane.f32.xlu1 %v4791_v59  ;;  %6438 = vmatprep.subr.bf16.mxu1 %v10877_v40  ;;  %v4899_v59 = vpack.c.bf16 %v12414_v52, %v12414_v52  ;;  %v10889_v40 = vld [vmem:[%s13245_s4 + $0x2c4] ss:$16 sps:$4 sm:$0xff]  }
 0x55c   : > { %11522 = vpow2.f32 %v4993_v3 }
 0x55e   : > { %6439 = vmatpush1.bf16.msra.mxu1 %v10875_v22  ;;  %v10893_v22 = vld [vmem:[%s13245_s4 + $0x2a0] ss:$16 sps:$4 sm:$0xff]  }
 0x55f   : > { %v5093_v7 = vpop.xlane.xlu0 %5092  ;;  %6440 = vmatprep.subr.bf16.mxu1 %v10880_v29  ;;  %v10901_v29 = vld [vmem:[%s13245_s4 + $0x284] ss:$16 sps:$4 sm:$0xff]  }
 0x560   : > { %v5094_v8 = vsub.f32 %v5090_v31, %v5093_v7  ;;  %v10890_v31 = vld [vmem:[%s13245_s4 + $0x20] ss:$16 sps:$4 sm:$0xff]  }
 0x561   : > { %v12454_v10 = vpop.eup %11520 }
 0x562   : > { %v5095_v11 = vmul.f32 1.442695, %v5094_v8  ;;  %v4893_v53 = vsel %vm4681_vm4, %v12454_v10, 0.0  ;;  %6441 = vmatpush1.bf16.msra.mxu1 %v10878_v63  ;;  %v4904_v8 = vsel %vm4698_vm2, %v4899_v59, 0  ;;  %v10899_v63 = vld [vmem:[%s13245_s4 + $0x280] ss:$16 sps:$4 sm:$0xff]  }
 0x563   : > { %4894 = vadd.xlane.f32.xlu0 %v4893_v53  ;;  %6442 = vmatprep.subr.bf16.mxu1 %v10886_v13  ;;  %v5001_v53 = vpack.c.bf16 %v12416_v55, %v12416_v55  ;;  %v10907_v13 = vld [vmem:[%s13245_s4 + $0x264] ss:$16 sps:$4 sm:$0xff]  }
 0x564   : > { %11524 = vpow2.f32 %v5095_v11  ;;  %v10970_v59 = vld [vmem:[%s13245_s4 + $0x304] ss:$16 sps:$4 sm:$0xff]  }
 0x566   : > { %6443 = vmatpush1.bf16.msra.mxu1 %v10884_v30  ;;  %v10905_v30 = vld [vmem:[%s13245_s4 + $0x260] ss:$16 sps:$4 sm:$0xff]  }
 0x567   : > { %v5195_v23 = vpop.xlane.xlu1 %5194  ;;  %6444 = vmatprep.subr.bf16.mxu1 %v10892_v4  ;;  %v10913_v4 = vld [vmem:[%s13245_s4 + $0x244] ss:$16 sps:$4 sm:$0xff]  }
 0x568   : > { %v5196_v49 = vsub.f32 %v5192_v12, %v5195_v23  ;;  %v10908_v12 = vld [vmem:[%s13245_s4 + $0x1c0] ss:$16 sps:$4 sm:$0xff]  }
 0x569   : > { %v12458_v47 = vpop.eup %11522 }
 0x56a   : > { %v5197_v14 = vmul.f32 1.442695, %v5196_v49  ;;  %v4995_v15 = vsel %vm4681_vm4, %v12458_v47, 0.0  ;;  %6445 = vmatpush1.bf16.msra.mxu1 %v10890_v31  ;;  %v5006_v49 = vsel %vm4698_vm2, %v5001_v53, 0  ;;  %v10911_v31 = vld [vmem:[%s13245_s4 + $0x240] ss:$16 sps:$4 sm:$0xff]  }
 0x56b   : > { %4996 = vadd.xlane.f32.xlu1 %v4995_v15  ;;  %6446 = vmatprep.subr.bf16.mxu1 %v10898_v32  ;;  %v5103_v15 = vpack.c.bf16 %v12418_v60, %v12418_v60  ;;  %v10919_v32 = vld [vmem:[%s13245_s4 + $0x224] ss:$16 sps:$4 sm:$0xff]  }
 0x56c   : > { %11526 = vpow2.f32 %v5197_v14 }
 0x56e   : > { %6447 = vmatpush1.bf16.msra.mxu1 %v10896_v33  ;;  %v10917_v33 = vld [vmem:[%s13245_s4 + $0x220] ss:$16 sps:$4 sm:$0xff]  }
 0x56f   : > { %6448 = vmatprep.subr.bf16.mxu1 %v10904_v35  ;;  %v10925_v35 = vld [vmem:[%s13245_s4 + $0x204] ss:$16 sps:$4 sm:$0xff]  }
 0x571   : > { %v12462_v24 = vpop.eup %11524 }
 0x572   : > { %v5097_v16 = vsel %vm4681_vm4, %v12462_v24, 0.0  ;;  %6449 = vmatpush2.bf16.msra.mxu1 %v10902_v36  ;;  %v10923_v36 = vld [vmem:[%s13245_s4 + $0x200] ss:$16 sps:$4 sm:$0xff]  }
 0x573   : > { %5098 = vadd.xlane.f32.xlu0 %v5097_v16  ;;  %6450 = vmatprep.subr.bf16.mxu1 %v10910_v37  ;;  %v10931_v37 = vld [vmem:[%s13245_s4 + $0x3e4] ss:$16 sps:$4 sm:$0xff]  }
 0x576   : > { %6451 = vmatpush2.bf16.msra.mxu1 %v10908_v12  ;;  %v10938_v12 = vld [vmem:[%s13245_s4 + $0x120] ss:$16 sps:$4 sm:$0xff]  }
 0x577   : > { %6452 = vmatprep.subr.bf16.mxu1 %v10916_v39  ;;  %v10940_v39 = vld [vmem:[%s13245_s4 + $0x124] ss:$16 sps:$4 sm:$0xff]  }
 0x579   : > { %v12466_v34 = vpop.eup %11526 }
 0x57a   : > { %v5199_v17 = vsel %vm4681_vm4, %v12466_v34, 0.0  ;;  %6453 = vmatpush2.bf16.msra.mxu1 %v10914_v41  ;;  %v10929_v41 = vld [vmem:[%s13245_s4 + $0x3e0] ss:$16 sps:$4 sm:$0xff]  }
 0x57b   : > { %5200 = vadd.xlane.f32.xlu1 %v5199_v17  ;;  %6454 = vmatprep.subr.bf16.mxu1 %v10922_v42  ;;  %v5108_v17 = vsel %vm4698_vm2, %v5103_v15, 0  ;;  %v10937_v42 = vld [vmem:[%s13245_s4 + $0x3c4] ss:$16 sps:$4 sm:$0xff]  }
 0x57c   : > { %v10961_v15 = vld [vmem:[%s13245_s4 + $0x4c4] ss:$16 sps:$4 sm:$0xff]  }
 0x57e   : > { %6455 = vmatpush2.bf16.msra.mxu1 %v10920_v43  ;;  %v10944_v43 = vld [vmem:[%s13245_s4 + $0x100] ss:$16 sps:$4 sm:$0xff]  }
 0x57f   : > { %6456 = vmatprep.subr.bf16.mxu1 %v10928_v18  ;;  %v10946_v18 = vld [vmem:[%s13245_s4 + $0x104] ss:$16 sps:$4 sm:$0xff]  }
 0x582   : > { %6457 = vmatpush2.bf16.msra.mxu1 %v10926_v44  ;;  %v10935_v44 = vld [vmem:[%s13245_s4 + $0x3c0] ss:$16 sps:$4 sm:$0xff]  }
 0x583   : > { %6458 = vmatprep.subr.bf16.mxu1 %v10934_v45  ;;  %v10943_v45 = vld [vmem:[%s13245_s4 + $0x3a4] ss:$16 sps:$4 sm:$0xff]  }
 0x586   : > { %6459 = vmatpush2.bf16.msra.mxu1 %v10932_v50  ;;  %v10955_v50 = vld [vmem:[%s13245_s4 + $0x4e4] ss:$16 sps:$4 sm:$0xff]  }
 0x587   : > { %6460 = vmatprep.subr.bf16.mxu1 %v10940_v39  ;;  %v10994_v39 = vld [vmem:[%s13245_s4 + $0x404] ss:$16 sps:$4 sm:$0xff]  }
 0x58a   : > { %6461 = vmatpush2.bf16.msra.mxu1 %v10938_v12 }
 0x58b   : > { %6462 = vmatprep.subr.bf16.mxu1 %v10946_v18  ;;  %v10995_v18 = vld [vmem:[%s13245_s4 + $0x88] ss:$16 sps:$4 sm:$0xff]  }
 0x58e   : > { %6463 = vmatpush2.bf16.msra.mxu1 %v10944_v43  ;;  %v10992_v43 = vld [vmem:[%s13245_s4 + $0x400] ss:$16 sps:$4 sm:$0xff]  }
 0x58f   : > { %6514 = vmatprep.subr.bf16.mxu1 %v10955_v50  ;;  %v11003_v50 = vld [vmem:[%s13245_s4 + $0x6c] ss:$16 sps:$4 sm:$0xff]  }
 0x5dc   : > { %v4690_v51 = vpop.xlane.xlu0 %4689 }
 0x5dd   : > { %11528 = vrcp.f32 %v4690_v51  ;;  %v10941_v51 = vld [vmem:[%s13245_s4 + $0x3a0] ss:$16 sps:$4 sm:$0xff]  }
 0x5e4   : > { %v4793_v54 = vpop.xlane.xlu1 %4792 }
 0x5e5   : > { %11530 = vrcp.f32 %v4793_v54  ;;  %v10949_v54 = vld [vmem:[%s13245_s4 + $0x384] ss:$16 sps:$4 sm:$0xff]  }
 0x5ea   : > { %v11529_v56 = vpop.eup %11528 }
 0x5eb   : > { %v4692_v58 = vmul.f32 %v11529_v56, %v12446_v48  ;;  %v10947_v56 = vld [vmem:[%s13245_s4 + $0x380] ss:$16 sps:$4 sm:$0xff]  }
 0x5ec   : > { %v4895_v61 = vpop.xlane.xlu0 %4894 }
 0x5ed   : > { %11532 = vrcp.f32 %v4895_v61  ;;  %v4693_v62 = vpack.c.bf16 %v4692_v58, %v4692_v58  ;;  %v10950_v58 = vld [vmem:[%s13245_s4 + $0x360] ss:$16 sps:$4 sm:$0xff]   ;;  %v10958_v61 = vld [vmem:[%s13245_s4 + $0x344] ss:$16 sps:$4 sm:$0xff]  }
 0x5ef   : > { %9840 = vmatmul.mubr.msk.bf16.vlgmr.msra.gmra.mxu0 %vm4681_vm4, %v4693_v62  ;;  %v10956_v62 = vld [vmem:[%s13245_s4 + $0x340] ss:$16 sps:$4 sm:$0xff]  }
 0x5f0   : > { %9850 = vmatpush3.bf16.msra.mxu0 %v4802_v0  ;;  %9851 = vmatprep.mubr.msk.bf16.mxu0 %vm11936_vm1, %v11935_v9  ;;  %v10964_v0 = vld [vmem:[%s13245_s4 + $0x324] ss:$16 sps:$4 sm:$0xff]  }
 0x5f1   : > { %9861 = vmatprep.subr.bf16.mxu0 %v11935_v9 }
 0x5f2   : > { %v11531_v3 = vpop.eup %11530 }
 0x5f3   : > { %v4795_v38 = vmul.f32 %v11531_v3, %v12450_v2  ;;  %v10962_v3 = vld [vmem:[%s13245_s4 + $0x320] ss:$16 sps:$4 sm:$0xff]  }
 0x5f4   : > { %v4997_v48 = vpop.xlane.xlu1 %4996 }
 0x5f5   : > { %11534 = vrcp.f32 %v4997_v48  ;;  %v4796_v7 = vpack.c.bf16 %v4795_v38, %v4795_v38  ;;  %v10968_v38 = vld [vmem:[%s13245_s4 + $0x300] ss:$16 sps:$4 sm:$0xff]   ;;  %v10979_v48 = vld [vmem:[%s13245_s4 + $0xec] ss:$16 sps:$4 sm:$0xff]  }
 0x5f7   : > { %9852 = vmatmul.mubr.msk.bf16.vlgmr.msra.gmra.mxu0 %vm4681_vm4, %v4796_v7 }
 0x5f8   : > { %9862 = vmatpush3.bf16.msra.mxu0 %v4904_v8  ;;  %9863 = vmatprep.mubr.msk.bf16.mxu0 %vm11936_vm1, %v11935_v9 }
 0x5f9   : > { %9873 = vmatprep.subr.bf16.mxu0 %v11935_v9 }
 0x5fa   : > { %v11533_v11 = vpop.eup %11532 }
 0x5fb   : > { %v4897_v52 = vmul.f32 %v11533_v11, %v12454_v10 }
 0x5fc   : > { %v5099_v2 = vpop.xlane.xlu0 %5098 }
 0x5fd   : > { %11536 = vrcp.f32 %v5099_v2  ;;  %v4898_v23 = vpack.c.bf16 %v4897_v52, %v4897_v52 }
 0x5ff   : > { %9864 = vmatmul.mubr.msk.bf16.vlgmr.msra.gmra.mxu0 %vm4681_vm4, %v4898_v23  ;;  %v10953_v23 = vld [vmem:[%s13245_s4 + $0x4e0] ss:$16 sps:$4 sm:$0xff]  }
 0x600   : > { %9874 = vmatpush3.bf16.msra.mxu0 %v5006_v49  ;;  %9875 = vmatprep.mubr.msk.bf16.mxu0 %vm11936_vm1, %v11935_v9 }
 0x601   : > { %9885 = vmatprep.subr.bf16.mxu0 %v11935_v9 }
 0x602   : > { %v11535_v14 = vpop.eup %11534 }
 0x603   : > { %v4999_v55 = vmul.f32 %v11535_v14, %v12458_v47 }
 0x604   : > { %v5201_v10 = vpop.xlane.xlu1 %5200 }
 0x605   : > { %11538 = vrcp.f32 %v5201_v10  ;;  %v5000_v16 = vpack.c.bf16 %v4999_v55, %v4999_v55  ;;  %v10959_v10 = vld [vmem:[%s13245_s4 + $0x4c0] ss:$16 sps:$4 sm:$0xff]  }
 0x607   : > { %9876 = vmatmul.mubr.msk.bf16.vlgmr.msra.gmra.mxu0 %vm4681_vm4, %v5000_v16 }
 0x608   : > { %9886 = vmatpush3.bf16.msra.mxu0 %v5108_v17  ;;  %9887 = vmatprep.mubr.msk.bf16.mxu0 %vm11936_vm1, %v11935_v9  ;;  %v10967_v17 = vld [vmem:[%s13245_s4 + $0x4a4] ss:$16 sps:$4 sm:$0xff]  }
 0x609   : > { %9897 = vmatprep.subr.bf16.mxu0 %v11935_v9 }
 0x60a   : > { %v11537_v19 = vpop.eup %11536 }
 0x60b   : > { %v5101_v60 = vmul.f32 %v11537_v19, %v12462_v24 }
 0x60d   : > { %v5102_v47 = vpack.c.bf16 %v5101_v60, %v5101_v60 }
 0x60f   : > { %9888 = vmatmul.mubr.msk.bf16.vlgmr.msra.gmra.mxu0 %vm4681_vm4, %v5102_v47  ;;  %v10973_v47 = vld [vmem:[%s13245_s4 + $0x484] ss:$16 sps:$4 sm:$0xff]  }
 0x610   : > { %9898 = vmatpush3.bf16.msra.mxu0 %v5210_v5  ;;  %9899 = vmatprep.mubr.msk.bf16.mxu0 %vm11936_vm1, %v11935_v9  ;;  %v10887_v9 = vld [vmem:[%s13245_s4 + $0x2c0] ss:$16 sps:$4 sm:$0xff]  }
 0x611   : > { %6473 = vmatprep.subr.bf16.mxu0 %v10883_v20  ;;  %v10971_v5 = vld [vmem:[%s13245_s4 + $0x480] ss:$16 sps:$4 sm:$0xff]  }
 0x612   : > { %v11539_v6 = vpop.eup %11538 }
 0x613   : > { %v5203_v21 = vmul.f32 %v11539_v6, %v12466_v34  ;;  %v10895_v34 = vld [vmem:[%s13245_s4 + $0x2a4] ss:$16 sps:$4 sm:$0xff]  }
 0x615   : > { %v5204_v24 = vpack.c.bf16 %v5203_v21, %v5203_v21  ;;  %v10976_v21 = vld [vmem:[%s13245_s4 + $0x464] ss:$16 sps:$4 sm:$0xff]  }
 0x617   : > { %9900 = vmatmul.mubr.msk.bf16.vlgmr.msra.gmra.mxu0 %vm4681_vm4, %v5204_v24 }
 0x618   : > { %6474 = vmatpush1.bf16.msra.mxu0 %v10881_v1 }
 0x619   : > { %6475 = vmatprep.subr.bf16.mxu0 %v10889_v40  ;;  %v10974_v40 = vld [vmem:[%s13245_s4 + $0x460] ss:$16 sps:$4 sm:$0xff]  }
 0x61c   : > { %6476 = vmatpush1.bf16.msra.mxu0 %v10887_v9  ;;  %v10977_v9 = vld [vmem:[%s13245_s4 + $0xe8] ss:$16 sps:$4 sm:$0xff]  }
 0x61d   : > { %6477 = vmatprep.subr.bf16.mxu0 %v10895_v34 }
 0x620   : > { %6478 = vmatpush1.bf16.msra.mxu0 %v10893_v22 }
 0x621   : > { %6479 = vmatprep.subr.bf16.mxu0 %v10901_v29  ;;  %v10982_v29 = vld [vmem:[%s13245_s4 + $0x444] ss:$16 sps:$4 sm:$0xff]  }
 0x624   : > { %6480 = vmatpush1.bf16.msra.mxu0 %v10899_v63  ;;  %v10985_v63 = vld [vmem:[%s13245_s4 + $0xcc] ss:$16 sps:$4 sm:$0xff]  }
 0x625   : > { %6481 = vmatprep.subr.bf16.mxu0 %v10907_v13 }
 0x628   : > { %6482 = vmatpush1.bf16.msra.mxu0 %v10905_v30  ;;  %v10980_v30 = vld [vmem:[%s13245_s4 + $0x440] ss:$16 sps:$4 sm:$0xff]  }
 0x629   : > { %6483 = vmatprep.subr.bf16.mxu0 %v10913_v4  ;;  %v10983_v4 = vld [vmem:[%s13245_s4 + $0xc8] ss:$16 sps:$4 sm:$0xff]  }
 0x62c   : > { %6484 = vmatpush1.bf16.msra.mxu0 %v10911_v31 }
 0x62d   : > { %6485 = vmatprep.subr.bf16.mxu0 %v10919_v32  ;;  %v10988_v32 = vld [vmem:[%s13245_s4 + $0x424] ss:$16 sps:$4 sm:$0xff]  }
 0x630   : > { %6486 = vmatpush1.bf16.msra.mxu0 %v10917_v33  ;;  %v10991_v33 = vld [vmem:[%s13245_s4 + $0xac] ss:$16 sps:$4 sm:$0xff]  }
 0x631   : > { %6487 = vmatprep.subr.bf16.mxu0 %v10925_v35 }
 0x634   : > { %6488 = vmatpush1.bf16.msra.mxu0 %v10923_v36  ;;  %v10986_v36 = vld [vmem:[%s13245_s4 + $0x420] ss:$16 sps:$4 sm:$0xff]  }
 0x635   : > { %6489 = vmatprep.subr.bf16.mxu0 %v10931_v37  ;;  %v10989_v37 = vld [vmem:[%s13245_s4 + $0xa8] ss:$16 sps:$4 sm:$0xff]  }
 0x638   : > { %6490 = vmatpush2.bf16.msra.mxu0 %v10929_v41  ;;  %v10997_v41 = vld [vmem:[%s13245_s4 + $0x8c] ss:$16 sps:$4 sm:$0xff]  }
 0x639   : > { %6491 = vmatprep.subr.bf16.mxu0 %v10937_v42 }
 0x63c   : > { %6492 = vmatpush2.bf16.msra.mxu0 %v10935_v44 }
 0x63d   : > { %6493 = vmatprep.subr.bf16.mxu0 %v10943_v45  ;;  %v11000_v45 = vld [vmem:[%s13245_s4 + $0x5e4] ss:$16 sps:$4 sm:$0xff]  }
 0x640   : > { %6494 = vmatpush2.bf16.msra.mxu0 %v10941_v51 }
 0x641   : > { %6495 = vmatprep.subr.bf16.mxu0 %v10949_v54 }
 0x644   : > { %6496 = vmatpush2.bf16.msra.mxu0 %v10947_v56  ;;  %v10998_v56 = vld [vmem:[%s13245_s4 + $0x5e0] ss:$16 sps:$4 sm:$0xff]  }
 0x645   : > { %6497 = vmatprep.subr.bf16.mxu0 %v10952_v57  ;;  %v11001_v57 = vld [vmem:[%s13245_s4 + $0x68] ss:$16 sps:$4 sm:$0xff]  }
 0x648   : > { %6498 = vmatpush2.bf16.msra.mxu0 %v10950_v58 }
 0x649   : > { %6499 = vmatprep.subr.bf16.mxu0 %v10958_v61  ;;  %v11006_v61 = vld [vmem:[%s13245_s4 + $0x5c4] ss:$16 sps:$4 sm:$0xff]  }
 0x64c   : > { %6500 = vmatpush2.bf16.msra.mxu0 %v10956_v62  ;;  %v11009_v62 = vld [vmem:[%s13245_s4 + $0x4c] ss:$16 sps:$4 sm:$0xff]  }
 0x64d   : > { %6501 = vmatprep.subr.bf16.mxu0 %v10964_v0 }
 0x650   : > { %6502 = vmatpush2.bf16.msra.mxu0 %v10962_v3  ;;  %v11004_v3 = vld [vmem:[%s13245_s4 + $0x5c0] ss:$16 sps:$4 sm:$0xff]  }
 0x651   : > { %6503 = vmatprep.subr.bf16.mxu0 %v10970_v59  ;;  %v11007_v59 = vld [vmem:[%s13245_s4 + $0x48] ss:$16 sps:$4 sm:$0xff]  }
 0x654   : > { %6504 = vmatpush2.bf16.msra.mxu0 %v10968_v38 }
 0x655   : > { %6555 = vmatprep.subr.bf16.mxu0 %v10979_v48  ;;  %v11012_v48 = vld [vmem:[%s13245_s4 + $0x5a4] ss:$16 sps:$4 sm:$0xff]  }
 0x6af   : > { %v4736_v7 = vpop.f32.mrf.mxu0 }
 0x6b0   : > { %v12712_v49 = vpack.c.bf16 %v4736_v7, %v4736_v7  ;;  %v11015_v7 = vld [vmem:[%s13245_s4 + $0x2c] ss:$16 sps:$4 sm:$0xff]  }
 0x6b1   : > { %v9841_v8 = vpop.f32.mrf.mxu0 }
 0x6b2   : > { %v11010_v8 = vld [vmem:[%s13245_s4 + $0x5a0] ss:$16 sps:$4 sm:$0xff]  }
 0x6b3   : > { %v4739_v11 = vpop.f32.mrf.mxu0 }
 0x6b4   : > { %v11013_v11 = vld [vmem:[%s13245_s4 + $0x28] ss:$16 sps:$4 sm:$0xff]  }
 0x6b5   : > { %v9842_v53 = vpop.f32.mrf.mxu0 }
 0x6b6   : > { %v11018_v53 = vld [vmem:[%s13245_s4 + $0x584] ss:$16 sps:$4 sm:$0xff]  }
 0x6b7   : > { %v4838_v52 = vpop.f32.mrf.mxu0 }
 0x6b8   : > { %v5253_v2 = vpack.c.bf16 %v4838_v52, %v4838_v52  ;;  %v11021_v52 = vld [vmem:[%s13245_s4 + $0xc] ss:$16 sps:$4 sm:$0xff]  }
 0x6b9   : > { %v9853_v14 = vpop.f32.mrf.mxu0 }
 0x6ba   : > { %6464 = vmatprep.mubr.bf16.mxu1 %v5253_v2  ;;  %v11024_v14 = vld [vmem:[%s13245_s4 + $0x564] ss:$16 sps:$4 sm:$0xff]  }
 0x6bb   : > { %v4841_v55 = vpop.f32.mrf.mxu0  ;;  %6465 = vmatmul.mubr.bf16.vlgmr.msra.gmra.mxu1 %v12712_v49 }
 0x6bc   : > { %6515 = vmatpush1.bf16.msra.mxu1 %v10953_v23  ;;  %v11019_v23 = vld [vmem:[%s13245_s4 + $0x8] ss:$16 sps:$4 sm:$0xff]   ;;  %v11022_v55 = vld [vmem:[%s13245_s4 + $0x560] ss:$16 sps:$4 sm:$0xff]  }
 0x6bd   : > { %v9854_v16 = vpop.f32.mrf.mxu0  ;;  %6516 = vmatprep.subr.bf16.mxu1 %v10961_v15  ;;  %v11027_v15 = vld [vmem:[%s13245_s4 + $0x1ec] ss:$16 sps:$4 sm:$0xff]  }
 0x6be   : > { %v11030_v16 = vld [vmem:[%s13245_s4 + $0x544] ss:$16 sps:$4 sm:$0xff]  }
 0x6bf   : > { %v4940_v19 = vpop.f32.mrf.mxu0 }
 0x6c0   : > { %6517 = vmatpush1.bf16.msra.mxu1 %v10959_v10  ;;  %v12744_v34 = vpack.c.bf16 %v4940_v19, %v4940_v19  ;;  %v11025_v10 = vld [vmem:[%s13245_s4 + $0x1e8] ss:$16 sps:$4 sm:$0xff]   ;;  %v11028_v19 = vld [vmem:[%s13245_s4 + $0x540] ss:$16 sps:$4 sm:$0xff]  }
 0x6c1   : > { %v9865_v60 = vpop.f32.mrf.mxu0  ;;  %6518 = vmatprep.subr.bf16.mxu1 %v10967_v17  ;;  %v11033_v17 = vld [vmem:[%s13245_s4 + $0x1cc] ss:$16 sps:$4 sm:$0xff]  }
 0x6c2   : > { %v11036_v60 = vld [vmem:[%s13245_s4 + $0x524] ss:$16 sps:$4 sm:$0xff]  }
 0x6c3   : > { %v4943_v20 = vpop.f32.mrf.mxu0 }
 0x6c4   : > { %6519 = vmatpush1.bf16.msra.mxu1 %v10965_v46  ;;  %v11031_v46 = vld [vmem:[%s13245_s4 + $0x1c8] ss:$16 sps:$4 sm:$0xff]   ;;  %v11034_v20 = vld [vmem:[%s13245_s4 + $0x520] ss:$16 sps:$4 sm:$0xff]  }
 0x6c5   : > { %v9866_v6 = vpop.f32.mrf.mxu0  ;;  %6520 = vmatprep.subr.bf16.mxu1 %v10973_v47  ;;  %v11039_v47 = vld [vmem:[%s13245_s4 + $0x1ac] ss:$16 sps:$4 sm:$0xff]  }
 0x6c6   : > { %v11042_v6 = vld [vmem:[%s13245_s4 + $0x504] ss:$16 sps:$4 sm:$0xff]  }
 0x6c7   : > { %v5042_v1 = vpop.f32.mrf.mxu0 }
 0x6c8   : > { %v12736_v24 = vpack.c.bf16 %v5042_v1, %v5042_v1  ;;  %6521 = vmatpush1.bf16.msra.mxu1 %v10971_v5  ;;  %v11037_v5 = vld [vmem:[%s13245_s4 + $0x1a8] ss:$16 sps:$4 sm:$0xff]   ;;  %v11040_v1 = vld [vmem:[%s13245_s4 + $0x500] ss:$16 sps:$4 sm:$0xff]  }
 0x6c9   : > { %v9877_v22 = vpop.f32.mrf.mxu0  ;;  %6522 = vmatprep.subr.bf16.mxu1 %v10976_v21  ;;  %v11045_v21 = vld [vmem:[%s13245_s4 + $0x18c] ss:$16 sps:$4 sm:$0xff]  }
 0x6ca   : > { %6505 = vmatprep.mubr.bf16.mxu0 %v12736_v24  ;;  %v11051_v22 = vld [vmem:[%s13245_s4 + $0x2ec] ss:$16 sps:$4 sm:$0xff]  }
 0x6cb   : > { %v5045_v13 = vpop.f32.mrf.mxu0  ;;  %6506 = vmatmul.mubr.bf16.vlgmr.msra.gmra.mxu0 %v12744_v34 }
 0x6cc   : > { %6523 = vmatpush1.bf16.msra.mxu1 %v10974_v40  ;;  %6556 = vmatpush1.bf16.msra.mxu0 %v10977_v9  ;;  %v11043_v40 = vld [vmem:[%s13245_s4 + $0x188] ss:$16 sps:$4 sm:$0xff]   ;;  %v11048_v9 = vld [vmem:[%s13245_s4 + $0x16c] ss:$16 sps:$4 sm:$0xff]  }
 0x6cd   : > { %6587 = vmatprep.mubr.bf16.mxu0 %v5253_v2  ;;  %v9878_v31 = vpop.f32.mrf.mxu0  ;;  %6524 = vmatprep.subr.bf16.mxu1 %v10982_v29  ;;  %v11016_v2 = vld [vmem:[%s13245_s4 + $0x580] ss:$16 sps:$4 sm:$0xff]   ;;  %v11046_v29 = vld [vmem:[%s13245_s4 + $0x168] ss:$16 sps:$4 sm:$0xff]  }
 0x6ce   : > { %6557 = vmatprep.subr.bf16.mxu0 %v10985_v63  ;;  %v11049_v63 = vld [vmem:[%s13245_s4 + $0x2e8] ss:$16 sps:$4 sm:$0xff]  }
 0x6cf   : > { %v12766_v35 = vpop.f32.mrf.mxu0  ;;  %v11052_v31 = vld [vmem:[%s13245_s4 + $0x148] ss:$16 sps:$4 sm:$0xff]  }
 0x6d0   : > { %6525 = vmatpush1.bf16.msra.mxu1 %v10980_v30  ;;  %6558 = vmatpush1.bf16.msra.mxu0 %v10983_v4  ;;  %v12899_v13 = vpack.c.bf16 %v12766_v35, %v12766_v35  ;;  %v11054_v30 = vld [vmem:[%s13245_s4 + $0x14c] ss:$16 sps:$4 sm:$0xff]  }
 0x6d1   : > { %v9889_v12 = vpop.f32.mrf.mxu0  ;;  %6526 = vmatprep.subr.bf16.mxu1 %v10988_v32  ;;  %6559 = vmatprep.subr.bf16.mxu0 %v10991_v33  ;;  %v11057_v4 = vld [vmem:[%s13245_s4 + $0x2cc] ss:$16 sps:$4 sm:$0xff]   ;;  %v11055_v32 = vld [vmem:[%s13245_s4 + $0x2c8] ss:$16 sps:$4 sm:$0xff]  }
 0x6d2   : > { %v11060_v33 = vld [vmem:[%s13245_s4 + $0x12c] ss:$16 sps:$4 sm:$0xff]  }
 0x6d3   : > { %v5147_v42 = vpop.f32.mrf.mxu0  ;;  %v11063_v35 = vld [vmem:[%s13245_s4 + $0x2ac] ss:$16 sps:$4 sm:$0xff]  }
 0x6d4   : > { %6527 = vmatpush1.bf16.msra.mxu1 %v10986_v36  ;;  %6560 = vmatpush1.bf16.msra.mxu0 %v10989_v37  ;;  %v11058_v36 = vld [vmem:[%s13245_s4 + $0x128] ss:$16 sps:$4 sm:$0xff]   ;;  %v11066_v37 = vld [vmem:[%s13245_s4 + $0x10c] ss:$16 sps:$4 sm:$0xff]  }
 0x6d5   : > { %v9890_v44 = vpop.f32.mrf.mxu0  ;;  %6528 = vmatprep.subr.bf16.mxu1 %v10994_v39  ;;  %6561 = vmatprep.subr.bf16.mxu0 %v10997_v41  ;;  %v11069_v12 = vld [vmem:[%s13245_s4 + $0x28c] ss:$16 sps:$4 sm:$0xff]   ;;  %v11064_v39 = vld [vmem:[%s13245_s4 + $0x108] ss:$16 sps:$4 sm:$0xff]  }
 0x6d6   : > { %v11067_v41 = vld [vmem:[%s13245_s4 + $0x288] ss:$16 sps:$4 sm:$0xff]   ;;  %v11072_v42 = vld [vmem:[%s13245_s4 + $0x26c] ss:$16 sps:$4 sm:$0xff]  }
 0x6d7   : > { %v5246_v51 = vpop.f32.mrf.mxu0  ;;  %v11073_v44 = vld [vmem:[%s13245_s4 + $0x4e8] ss:$16 sps:$4 sm:$0xff]  }
 0x6d8   : > { %v12792_v54 = vpack.c.bf16 %v5246_v51, %v5246_v51  ;;  %6529 = vmatpush1.bf16.msra.mxu1 %v10992_v43  ;;  %6562 = vmatpush1.bf16.msra.mxu0 %v10995_v18  ;;  %v11075_v43 = vld [vmem:[%s13245_s4 + $0x4ec] ss:$16 sps:$4 sm:$0xff]   ;;  %v11070_v18 = vld [vmem:[%s13245_s4 + $0x268] ss:$16 sps:$4 sm:$0xff]  }
 0x6d9   : > { %v9901_v58 = vpop.f32.mrf.mxu0  ;;  %6530 = vmatprep.subr.bf16.mxu1 %v11000_v45  ;;  %6563 = vmatprep.subr.bf16.mxu0 %v11003_v50  ;;  %v11078_v45 = vld [vmem:[%s13245_s4 + $0x24c] ss:$16 sps:$4 sm:$0xff]   ;;  %v11076_v51 = vld [vmem:[%s13245_s4 + $0x248] ss:$16 sps:$4 sm:$0xff]  }
 0x6da   : > { %6546 = vmatprep.mubr.bf16.mxu1 %v12792_v54  ;;  %v11081_v50 = vld [vmem:[%s13245_s4 + $0x4cc] ss:$16 sps:$4 sm:$0xff]   ;;  %v11082_v58 = vld [vmem:[%s13245_s4 + $0x228] ss:$16 sps:$4 sm:$0xff]  }
 0x6db   : > { %v5249_v0 = vpop.f32.mrf.mxu0 }
 0x6dc   : > { %6531 = vmatpush2.bf16.msra.mxu1 %v10998_v56  ;;  %6564 = vmatpush1.bf16.msra.mxu0 %v11001_v57  ;;  %v11079_v56 = vld [vmem:[%s13245_s4 + $0x4c8] ss:$16 sps:$4 sm:$0xff]   ;;  %v11084_v57 = vld [vmem:[%s13245_s4 + $0x22c] ss:$16 sps:$4 sm:$0xff]  }
 0x6dd   : > { %v9902_v38 = vpop.f32.mrf.mxu0  ;;  %6532 = vmatprep.subr.bf16.mxu1 %v11006_v61  ;;  %6565 = vmatprep.subr.bf16.mxu0 %v11009_v62  ;;  %v11090_v61 = vld [vmem:[%s13245_s4 + $0x20c] ss:$16 sps:$4 sm:$0xff]   ;;  %v11088_v0 = vld [vmem:[%s13245_s4 + $0x208] ss:$16 sps:$4 sm:$0xff]  }
 0x6de   : > { %v11093_v62 = vld [vmem:[%s13245_s4 + $0x48c] ss:$16 sps:$4 sm:$0xff]  }
 0x6df   : > { %v11099_v38 = vld [vmem:[%s13245_s4 + $0x46c] ss:$16 sps:$4 sm:$0xff]  }
 0x6e0   : > { %6533 = vmatpush2.bf16.msra.mxu1 %v11004_v3  ;;  %6566 = vmatpush1.bf16.msra.mxu0 %v11007_v59  ;;  %v11091_v3 = vld [vmem:[%s13245_s4 + $0x488] ss:$16 sps:$4 sm:$0xff]   ;;  %v11096_v59 = vld [vmem:[%s13245_s4 + $0x3ec] ss:$16 sps:$4 sm:$0xff]  }
 0x6e1   : > { %6534 = vmatprep.subr.bf16.mxu1 %v11012_v48  ;;  %6567 = vmatprep.subr.bf16.mxu0 %v11015_v7  ;;  %v11094_v48 = vld [vmem:[%s13245_s4 + $0x3e8] ss:$16 sps:$4 sm:$0xff]  }
 0x6e2   : > { %v11097_v7 = vld [vmem:[%s13245_s4 + $0x468] ss:$16 sps:$4 sm:$0xff]  }
 0x6e4   : > { %6535 = vmatpush2.bf16.msra.mxu1 %v11010_v8  ;;  %6568 = vmatpush1.bf16.msra.mxu0 %v11013_v11  ;;  %v11102_v8 = vld [vmem:[%s13245_s4 + $0x3cc] ss:$16 sps:$4 sm:$0xff]  }
 0x6e5   : > { %6536 = vmatprep.subr.bf16.mxu1 %v11018_v53  ;;  %6569 = vmatprep.subr.bf16.mxu0 %v11021_v52  ;;  %v11105_v11 = vld [vmem:[%s13245_s4 + $0x44c] ss:$16 sps:$4 sm:$0xff]   ;;  %v11100_v53 = vld [vmem:[%s13245_s4 + $0x3c8] ss:$16 sps:$4 sm:$0xff]  }
 0x6e6   : > { %v11103_v52 = vld [vmem:[%s13245_s4 + $0x448] ss:$16 sps:$4 sm:$0xff]  }
 0x6e8   : > { %6537 = vmatpush2.bf16.msra.mxu1 %v11016_v2  ;;  %6570 = vmatpush1.bf16.msra.mxu0 %v11019_v23  ;;  %v11108_v2 = vld [vmem:[%s13245_s4 + $0x3ac] ss:$16 sps:$4 sm:$0xff]  }
 0x6e9   : > { %6538 = vmatprep.subr.bf16.mxu1 %v11024_v14  ;;  %6571 = vmatprep.subr.bf16.mxu0 %v11027_v15  ;;  %v11111_v23 = vld [vmem:[%s13245_s4 + $0x42c] ss:$16 sps:$4 sm:$0xff]   ;;  %v11106_v14 = vld [vmem:[%s13245_s4 + $0x3a8] ss:$16 sps:$4 sm:$0xff]  }
 0x6ea   : > { %v11109_v15 = vld [vmem:[%s13245_s4 + $0x428] ss:$16 sps:$4 sm:$0xff]  }
 0x6ec   : > { %6539 = vmatpush2.bf16.msra.mxu1 %v11022_v55  ;;  %6572 = vmatpush2.bf16.msra.mxu0 %v11025_v10  ;;  %v11114_v55 = vld [vmem:[%s13245_s4 + $0x38c] ss:$16 sps:$4 sm:$0xff]  }
 0x6ed   : > { %6540 = vmatprep.subr.bf16.mxu1 %v11030_v16  ;;  %6573 = vmatprep.subr.bf16.mxu0 %v11033_v17  ;;  %v11117_v10 = vld [vmem:[%s13245_s4 + $0x40c] ss:$16 sps:$4 sm:$0xff]   ;;  %v11112_v16 = vld [vmem:[%s13245_s4 + $0x388] ss:$16 sps:$4 sm:$0xff]  }
 0x6ee   : > { %v11115_v17 = vld [vmem:[%s13245_s4 + $0x408] ss:$16 sps:$4 sm:$0xff]  }
 0x6f0   : > { %6541 = vmatpush2.bf16.msra.mxu1 %v11028_v19  ;;  %6574 = vmatpush2.bf16.msra.mxu0 %v11031_v46  ;;  %v11120_v19 = vld [vmem:[%s13245_s4 + $0x36c] ss:$16 sps:$4 sm:$0xff]  }
 0x6f1   : > { %6542 = vmatprep.subr.bf16.mxu1 %v11036_v60  ;;  %6575 = vmatprep.subr.bf16.mxu0 %v11039_v47  ;;  %v11123_v46 = vld [vmem:[%s13245_s4 + $0x5ec] ss:$16 sps:$4 sm:$0xff]   ;;  %v11118_v60 = vld [vmem:[%s13245_s4 + $0x368] ss:$16 sps:$4 sm:$0xff]  }
 0x6f2   : > { %v11121_v47 = vld [vmem:[%s13245_s4 + $0x5e8] ss:$16 sps:$4 sm:$0xff]  }
 0x6f4   : > { %6543 = vmatpush2.bf16.msra.mxu1 %v11034_v20  ;;  %6576 = vmatpush2.bf16.msra.mxu0 %v11037_v5  ;;  %v11126_v20 = vld [vmem:[%s13245_s4 + $0x34c] ss:$16 sps:$4 sm:$0xff]  }
 0x6f5   : > { %6544 = vmatprep.subr.bf16.mxu1 %v11042_v6  ;;  %6577 = vmatprep.subr.bf16.mxu0 %v11045_v21  ;;  %v11129_v5 = vld [vmem:[%s13245_s4 + $0x5cc] ss:$16 sps:$4 sm:$0xff]   ;;  %v11124_v6 = vld [vmem:[%s13245_s4 + $0x348] ss:$16 sps:$4 sm:$0xff]  }
 0x6f6   : > { %v11127_v21 = vld [vmem:[%s13245_s4 + $0x5c8] ss:$16 sps:$4 sm:$0xff]  }
 0x6f8   : > { %6545 = vmatpush2.bf16.msra.mxu1 %v11040_v1  ;;  %6578 = vmatpush2.bf16.msra.mxu0 %v11043_v40  ;;  %v11132_v1 = vld [vmem:[%s13245_s4 + $0x32c] ss:$16 sps:$4 sm:$0xff]  }
 0x6f9   : > { %6579 = vmatprep.subr.bf16.mxu0 %v11048_v9  ;;  %6596 = vmatprep.subr.bf16.mxu1 %v11051_v22  ;;  %v11135_v40 = vld [vmem:[%s13245_s4 + $0x5ac] ss:$16 sps:$4 sm:$0xff]   ;;  %v11130_v9 = vld [vmem:[%s13245_s4 + $0x328] ss:$16 sps:$4 sm:$0xff]  }
 0x6fa   : > { %v11133_v22 = vld [vmem:[%s13245_s4 + $0x5a8] ss:$16 sps:$4 sm:$0xff]  }
 0x6fb   : > { %6547 = vmatmul.mubr.bf16.vlgmr.msra.gmra.mxu1 %v12899_v13 }
 0x6fc   : > { %6580 = vmatpush2.bf16.msra.mxu0 %v11046_v29  ;;  %6597 = vmatpush1.bf16.msra.mxu1 %v11049_v63  ;;  %v11138_v29 = vld [vmem:[%s13245_s4 + $0x30c] ss:$16 sps:$4 sm:$0xff]  }
 0x6fd   : > { %6628 = vmatprep.mubr.bf16.mxu1 %v12736_v24  ;;  %6581 = vmatprep.subr.bf16.mxu0 %v11054_v30  ;;  %v11061_v24 = vld [vmem:[%s13245_s4 + $0x2a8] ss:$16 sps:$4 sm:$0xff]   ;;  %v11141_v63 = vld [vmem:[%s13245_s4 + $0x58c] ss:$16 sps:$4 sm:$0xff]  }
 0x6fe   : > { %6598 = vmatprep.subr.bf16.mxu1 %v11057_v4  ;;  %v11136_v30 = vld [vmem:[%s13245_s4 + $0x308] ss:$16 sps:$4 sm:$0xff]  }
 0x6ff   : > { %v11139_v4 = vld [vmem:[%s13245_s4 + $0x588] ss:$16 sps:$4 sm:$0xff]  }
 0x700   : > { %6582 = vmatpush2.bf16.msra.mxu0 %v11052_v31  ;;  %6599 = vmatpush1.bf16.msra.mxu1 %v11055_v32  ;;  %v11144_v31 = vld [vmem:[%s13245_s4 + $0x56c] ss:$16 sps:$4 sm:$0xff]   ;;  %v11142_v32 = vld [vmem:[%s13245_s4 + $0x568] ss:$16 sps:$4 sm:$0xff]  }
 0x701   : > { %6583 = vmatprep.subr.bf16.mxu0 %v11060_v33  ;;  %6600 = vmatprep.subr.bf16.mxu1 %v11063_v35  ;;  %v11147_v33 = vld [vmem:[%s13245_s4 + $0x54c] ss:$16 sps:$4 sm:$0xff]   ;;  %v11145_v35 = vld [vmem:[%s13245_s4 + $0x548] ss:$16 sps:$4 sm:$0xff]  }
 0x704   : > { %6584 = vmatpush2.bf16.msra.mxu0 %v11058_v36  ;;  %6601 = vmatpush1.bf16.msra.mxu1 %v11061_v24  ;;  %v11150_v36 = vld [vmem:[%s13245_s4 + $0x52c] ss:$16 sps:$4 sm:$0xff]   ;;  %v11148_v24 = vld [vmem:[%s13245_s4 + $0x528] ss:$16 sps:$4 sm:$0xff]  }
 0x705   : > { %6585 = vmatprep.subr.bf16.mxu0 %v11066_v37  ;;  %6602 = vmatprep.subr.bf16.mxu1 %v11069_v12  ;;  %v11151_v37 = vld [vmem:[%s13245_s4 + $0x508] ss:$16 sps:$4 sm:$0xff]  }
 0x708   : > { %6586 = vmatpush2.bf16.msra.mxu0 %v11064_v39  ;;  %6603 = vmatpush1.bf16.msra.mxu1 %v11067_v41 }
 0x709   : > { %6604 = vmatprep.subr.bf16.mxu1 %v11072_v42  ;;  %6637 = vmatprep.subr.bf16.mxu0 %v11075_v43  ;;  %v5450_v43 = vld [vmem:[#allocation10] sm:$0xf] }
 0x70b   : > { %6588 = vmatmul.mubr.bf16.vlgmr.msra.gmra.mxu0 %v12712_v49  ;;  %v11087_v49 = vld [vmem:[%s13245_s4 + $0x4ac] ss:$16 sps:$4 sm:$0xff]  }
 0x70c   : > { %6605 = vmatpush1.bf16.msra.mxu1 %v11070_v18  ;;  %6638 = vmatpush1.bf16.msra.mxu0 %v11073_v44  ;;  %v5455_v18 = vrot.slane %v5450_v43, %v12277_v27  ;;  %v5459_v44 = vrot.slane %v5450_v43, %v12271_v25 }
 0x70d   : > { %6669 = vmatprep.mubr.bf16.mxu0 %v12792_v54  ;;  %6606 = vmatprep.subr.bf16.mxu1 %v11078_v45  ;;  %v11085_v54 = vld [vmem:[%s13245_s4 + $0x4a8] ss:$16 sps:$4 sm:$0xff]  }
 0x70e   : > { %6639 = vmatprep.subr.bf16.mxu0 %v11081_v50 }
 0x710   : > { %6607 = vmatpush1.bf16.msra.mxu1 %v11076_v51  ;;  %6640 = vmatpush1.bf16.msra.mxu0 %v11079_v56 }
 0x711   : > { %6608 = vmatprep.subr.bf16.mxu1 %v11084_v57  ;;  %6641 = vmatprep.subr.bf16.mxu0 %v11087_v49 }
 0x714   : > { %6609 = vmatpush1.bf16.msra.mxu1 %v11082_v58  ;;  %6642 = vmatpush1.bf16.msra.mxu0 %v11085_v54 }
 0x715   : > { %6610 = vmatprep.subr.bf16.mxu1 %v11090_v61  ;;  %6643 = vmatprep.subr.bf16.mxu0 %v11093_v62 }
 0x718   : > { %6611 = vmatpush1.bf16.msra.mxu1 %v11088_v0  ;;  %6644 = vmatpush1.bf16.msra.mxu0 %v11091_v3 }
 0x719   : > { %6612 = vmatprep.subr.bf16.mxu1 %v11096_v59  ;;  %6645 = vmatprep.subr.bf16.mxu0 %v11099_v38 }
 0x71c   : > { %6613 = vmatpush2.bf16.msra.mxu1 %v11094_v48  ;;  %6646 = vmatpush1.bf16.msra.mxu0 %v11097_v7 }
 0x71d   : > { %6614 = vmatprep.subr.bf16.mxu1 %v11102_v8  ;;  %6647 = vmatprep.subr.bf16.mxu0 %v11105_v11 }
 0x720   : > { %6615 = vmatpush2.bf16.msra.mxu1 %v11100_v53  ;;  %6648 = vmatpush1.bf16.msra.mxu0 %v11103_v52 }
 0x721   : > { %6616 = vmatprep.subr.bf16.mxu1 %v11108_v2  ;;  %6649 = vmatprep.subr.bf16.mxu0 %v11111_v23  ;;  %v5463_v23 = vrot.slane %v5450_v43, %v12280_v28 }
 0x724   : > { %6617 = vmatpush2.bf16.msra.mxu1 %v11106_v14  ;;  %6650 = vmatpush1.bf16.msra.mxu0 %v11109_v15  ;;  %v5467_v14 = vrot.slane %v5450_v43, %v12274_v26  ;;  %v11168_v43 = vld [vmem:[#allocation14 + $0x84] ss:$16 sps:$4 sm:$0xff]  }
 0x725   : > { %6618 = vmatprep.subr.bf16.mxu1 %v11114_v55  ;;  %6651 = vmatprep.subr.bf16.mxu0 %v11117_v10  ;;  %v11542_v55 = vld [vmem:[%s12203_s8 + $0x8] sm:$0xff] }
 0x728   : > { %6619 = vmatpush2.bf16.msra.mxu1 %v11112_v16  ;;  %6652 = vmatpush1.bf16.msra.mxu0 %v11115_v17 }
 0x729   : > { %6620 = vmatprep.subr.bf16.mxu1 %v11120_v19  ;;  %6653 = vmatprep.subr.bf16.mxu0 %v11123_v46  ;;  %v11543_v46 = vld [vmem:[%s12203_s8] sm:$0xff] }
 0x72c   : > { %6621 = vmatpush2.bf16.msra.mxu1 %v11118_v60  ;;  %6654 = vmatpush2.bf16.msra.mxu0 %v11121_v47 }
 0x72d   : > { %6622 = vmatprep.subr.bf16.mxu1 %v11126_v20  ;;  %6655 = vmatprep.subr.bf16.mxu0 %v11129_v5 }
 0x730   : > { %6623 = vmatpush2.bf16.msra.mxu1 %v11124_v6  ;;  %6656 = vmatpush2.bf16.msra.mxu0 %v11127_v21  ;;  %v11544_v6 = vld [vmem:[%s12203_s8 + $0x10] sm:$0xff] }
 0x731   : > { %6624 = vmatprep.subr.bf16.mxu1 %v11132_v1  ;;  %6657 = vmatprep.subr.bf16.mxu0 %v11135_v40 }
 0x734   : > { %6625 = vmatpush2.bf16.msra.mxu1 %v11130_v9  ;;  %6658 = vmatpush2.bf16.msra.mxu0 %v11133_v22  ;;  %v11545_v22 = vld [vmem:[%s12203_s8 + $0x18] sm:$0xff]  ;;  %s560_s8 = scalar_lea.vmem [#allocation20], %s8797_s20 }
 0x735   : > { %6626 = vmatprep.subr.bf16.mxu1 %v11138_v29  ;;  %6659 = vmatprep.subr.bf16.mxu0 %v11141_v63  ;;  %s8615_s20 = sshll.u32 %s560_s8, 4  ;;  %s8616_s20 = int_to_ptr.vmem [resolvable:$true] %s8615_s20 }
 0x736   : > { %s11834_s7 = scalar_lea.vmem %s8616_s20, 512  ;;  %p11841_p10 = scmp.lt.s32.totalorder %s8616_s20, %s11839_s2 }
 0x737   : > { %p11835_p4 = scmp.ne.s32.totalorder %s8616_s20, %s11834_s7  ;;  %p11842_p12 = scmp.lt.s32.totalorder %s11840_s3, %s11834_s7 }
 0x738   : > { %6627 = vmatpush2.bf16.msra.mxu1 %v11136_v30  ;;  %6660 = vmatpush2.bf16.msra.mxu0 %v11139_v4 }
 0x739   : > { %6661 = vmatprep.subr.bf16.mxu0 %v11144_v31  ;;  %p11836_p13 = pnand %p11835_p4, %p13295_p3  ;;  %p11843_p1 = por %p11842_p12, %p11841_p10 }
 0x73b   : > { %6629 = vmatmul.mubr.bf16.vlgmr.msra.gmra.mxu1 %v12744_v34  ;;  %v11153_v34 = vld [vmem:[%s13245_s4 + $0x50c] ss:$16 sps:$4 sm:$0xff]   ;;  %p11837_p6 = pneg %p11836_p13 }
 0x73c   : > { %6662 = vmatpush2.bf16.msra.mxu0 %v11142_v32  ;;  %v11154_v32 = vld [vmem:[#allocation14 + $0xe0] ss:$16 sps:$4 sm:$0xff]  }
 0x73d   : > { %6663 = vmatprep.subr.bf16.mxu0 %v11147_v33  ;;  %v11156_v33 = vld [vmem:[#allocation14 + $0xe4] ss:$16 sps:$4 sm:$0xff]   ;;  %p11844_p7 = pnand %p11843_p1, %p11837_p6 }
 0x73e   : > { %7511 = vmatprep.subr.bf16.mxu1 %v11156_v33  ;;  %v11219_v33 = vld [vmem:[#allocation14 + $0x384] ss:$16 sps:$4 sm:$0xff]  }
 0x73f   : > { %7512 = vmatpush1.bf16.msra.mxu1 %v11154_v32  ;;  %v11217_v32 = vld [vmem:[#allocation14 + $0x380] ss:$16 sps:$4 sm:$0xff]  }
 0x740   : > { %6664 = vmatpush2.bf16.msra.mxu0 %v11145_v35  ;;  %v11159_v35 = vld [vmem:[#allocation14 + $0xc4] ss:$16 sps:$4 sm:$0xff]  }
 0x741   : > { %6665 = vmatprep.subr.bf16.mxu0 %v11150_v36  ;;  %v11163_v36 = vld [vmem:[#allocation14 + $0x2e0] ss:$16 sps:$4 sm:$0xff]   ;;  %7513 = vmatprep.subr.bf16.mxu1 %v11159_v35  ;;  %v11222_v35 = vld [vmem:[#allocation14 + $0x164] ss:$16 sps:$4 sm:$0xff]  }
 0x744   : > { %6666 = vmatpush2.bf16.msra.mxu0 %v11148_v24  ;;  %v11165_v24 = vld [vmem:[#allocation14 + $0x2e4] ss:$16 sps:$4 sm:$0xff]  }
 0x745   : > { %6667 = vmatprep.subr.bf16.mxu0 %v11153_v34  ;;  %v11157_v34 = vld [vmem:[#allocation14 + $0xc0] ss:$16 sps:$4 sm:$0xff]  }
 0x746   : > { %7514 = vmatpush1.bf16.msra.mxu1 %v11157_v34  ;;  %v11223_v34 = vld [vmem:[#allocation14 + $0x360] ss:$16 sps:$4 sm:$0xff]  }
 0x748   : > { %6668 = vmatpush2.bf16.msra.mxu0 %v11151_v37  ;;  %v11171_v37 = vld [vmem:[#allocation14 + $0x2c4] ss:$16 sps:$4 sm:$0xff]  }
 0x749   : > { %7552 = vmatprep.subr.bf16.mxu0 %v11165_v24  ;;  %v11220_v24 = vld [vmem:[#allocation14 + $0x160] ss:$16 sps:$4 sm:$0xff]  }
 0x74b   : > { %6670 = vmatmul.mubr.bf16.vlgmr.msra.gmra.mxu0 %v12899_v13 }
 0x74c   : > { %7553 = vmatpush1.bf16.msra.mxu0 %v11163_v36  ;;  %v11225_v36 = vld [vmem:[#allocation14 + $0x364] ss:$16 sps:$4 sm:$0xff]  }
 0x74d   : > { %7554 = vmatprep.subr.bf16.mxu0 %v11171_v37  ;;  %v11228_v37 = vld [vmem:[#allocation14 + $0x144] ss:$16 sps:$4 sm:$0xff]  }
 0x77b   : > { %v6466_v12 = vpop.f32.mrf.mxu1 }
 0x77c   : > { %v6467_v45 = vadd.f32 %v6466_v12, %v5455_v18  ;;  %v11162_v12 = vld [vmem:[#allocation14 + $0xa4] ss:$16 sps:$4 sm:$0xff]   ;;  %v11175_v18 = vld [vmem:[#allocation14 + $0x2a0] ss:$16 sps:$4 sm:$0xff]  }
 0x77d   : > { %v6468_v39 = vpop.f32.mrf.mxu1  ;;  %7515 = vmatprep.subr.bf16.mxu1 %v11162_v12  ;;  %v11231_v12 = vld [vmem:[#allocation14 + $0x344] ss:$16 sps:$4 sm:$0xff]  }
 0x77e   : > { %v6469_v51 = vadd.f32 %v6468_v39, %v5459_v44  ;;  %v11169_v39 = vld [vmem:[#allocation14 + $0x2c0] ss:$16 sps:$4 sm:$0xff]   ;;  %v11183_v44 = vld [vmem:[#allocation14 + $0x284] ss:$16 sps:$4 sm:$0xff]  }
 0x77f   : > { %v6470_v41 = vpop.f32.mrf.mxu1  ;;  %7555 = vmatpush1.bf16.msra.mxu0 %v11169_v39  ;;  %v11226_v39 = vld [vmem:[#allocation14 + $0x140] ss:$16 sps:$4 sm:$0xff]  }
 0x780   : > { %v11177_v41 = vld [vmem:[#allocation14 + $0x2a4] ss:$16 sps:$4 sm:$0xff]  }
 0x781   : > { %v6471_v42 = vpop.f32.mrf.mxu1  ;;  %7556 = vmatprep.subr.bf16.mxu0 %v11177_v41  ;;  %v11229_v41 = vld [vmem:[#allocation14 + $0x340] ss:$16 sps:$4 sm:$0xff]  }
 0x782   : > { %v11160_v42 = vld [vmem:[#allocation14 + $0xa0] ss:$16 sps:$4 sm:$0xff]  }
 0x783   : > { %7516 = vmatpush1.bf16.msra.mxu1 %v11160_v42  ;;  %7557 = vmatpush1.bf16.msra.mxu0 %v11175_v18  ;;  %v11234_v42 = vld [vmem:[#allocation14 + $0x124] ss:$16 sps:$4 sm:$0xff]   ;;  %v11232_v18 = vld [vmem:[#allocation14 + $0x120] ss:$16 sps:$4 sm:$0xff]  }
 0x784   : > { %7517 = vmatprep.subr.bf16.mxu1 %v11168_v43  ;;  %7558 = vmatprep.subr.bf16.mxu0 %v11183_v44  ;;  %v11237_v43 = vld [vmem:[#allocation14 + $0x324] ss:$16 sps:$4 sm:$0xff]   ;;  %v11235_v44 = vld [vmem:[#allocation14 + $0x320] ss:$16 sps:$4 sm:$0xff]  }
 0x78b   : > { %v6507_v50 = vpop.f32.mrf.mxu0 }
 0x78c   : > { %v6508_v56 = vadd.f32 %v6507_v50, %v6467_v45  ;;  %v11166_v45 = vld [vmem:[#allocation14 + $0x80] ss:$16 sps:$4 sm:$0xff]   ;;  %v11174_v50 = vld [vmem:[#allocation14 + $0x64] ss:$16 sps:$4 sm:$0xff]  }
 0x78d   : > { %v6509_v57 = vpop.f32.mrf.mxu0  ;;  %7518 = vmatpush1.bf16.msra.mxu1 %v11166_v45  ;;  %v11240_v45 = vld [vmem:[#allocation14 + $0x104] ss:$16 sps:$4 sm:$0xff]  }
 0x78e   : > { %v6510_v49 = vadd.f32 %v6509_v57, %v6469_v51  ;;  %v11181_v51 = vld [vmem:[#allocation14 + $0x280] ss:$16 sps:$4 sm:$0xff]   ;;  %7519 = vmatprep.subr.bf16.mxu1 %v11174_v50  ;;  %v11243_v50 = vld [vmem:[#allocation14 + $0x304] ss:$16 sps:$4 sm:$0xff]  }
 0x78f   : > { %v6511_v58 = vpop.f32.mrf.mxu0  ;;  %v11172_v57 = vld [vmem:[#allocation14 + $0x60] ss:$16 sps:$4 sm:$0xff]   ;;  %7559 = vmatpush1.bf16.msra.mxu0 %v11181_v51 }
 0x790   : > { %v11187_v58 = vld [vmem:[#allocation14 + $0x260] ss:$16 sps:$4 sm:$0xff]  }
 0x791   : > { %v6512_v54 = vpop.f32.mrf.mxu0  ;;  %7520 = vmatpush1.bf16.msra.mxu1 %v11172_v57  ;;  %v11238_v51 = vld [vmem:[#allocation14 + $0x100] ss:$16 sps:$4 sm:$0xff]   ;;  %v11246_v57 = vld [vmem:[#allocation14 + $0xec] ss:$16 sps:$4 sm:$0xff]  }
 0x792   : > { %v11195_v54 = vld [vmem:[#allocation14 + $0x244] ss:$16 sps:$4 sm:$0xff]  }
 0x7bb   : > { %v6548_v61 = vpop.f32.mrf.mxu1 }
 0x7bc   : > { %v6549_v62 = vadd.f32 %v6548_v61, %v6508_v56  ;;  %v11189_v56 = vld [vmem:[#allocation14 + $0x264] ss:$16 sps:$4 sm:$0xff]   ;;  %v11178_v61 = vld [vmem:[#allocation14 + $0x40] ss:$16 sps:$4 sm:$0xff]  }
 0x7bd   : > { %v6550_v13 = vpop.f32.mrf.mxu1  ;;  %7560 = vmatprep.subr.bf16.mxu0 %v11189_v56  ;;  %v11241_v56 = vld [vmem:[#allocation14 + $0x300] ss:$16 sps:$4 sm:$0xff]  }
 0x7be   : > { %v6551_v0 = vadd.f32 %v6550_v13, %v6510_v49  ;;  %v13119_v60 = vadd.f32 %v11543_v46, %v6549_v62  ;;  %v11180_v49 = vld [vmem:[#allocation14 + $0x44] ss:$16 sps:$4 sm:$0xff]   ;;  %7561 = vmatpush1.bf16.msra.mxu0 %v11187_v58  ;;  %v11193_v13 = vld [vmem:[#allocation14 + $0x240] ss:$16 sps:$4 sm:$0xff]  }
 0x7bf   : > { %v6552_v3 = vpop.f32.mrf.mxu1  ;;  %7521 = vmatprep.subr.bf16.mxu1 %v11180_v49  ;;  %v11186_v62 = vld [vmem:[#allocation14 + $0x24] ss:$16 sps:$4 sm:$0xff]   ;;  %7562 = vmatprep.subr.bf16.mxu0 %v11195_v54  ;;  %v11249_v49 = vld [vmem:[#allocation14 + $0x2ec] ss:$16 sps:$4 sm:$0xff]  }
 0x7c0   : > { %v13116_v10 = vadd.f32 %v11542_v55, %v6551_v0  ;;  %v11201_v0 = vld [vmem:[#allocation14 + $0x224] ss:$16 sps:$4 sm:$0xff]   ;;  %7522 = vmatpush1.bf16.msra.mxu1 %v11178_v61  ;;  %v11184_v3 = vld [vmem:[#allocation14 + $0x20] ss:$16 sps:$4 sm:$0xff]  }
 0x7c1   : > { %v6553_v59 = vpop.f32.mrf.mxu1  ;;  %7523 = vmatprep.subr.bf16.mxu1 %v11186_v62  ;;  %v6682_v62 = vld [vmem:[#allocation11] sm:$0xf] }
 0x7c2   : > { %v6684_v40 = vadd.f32 %v13116_v10, %v13119_v60  ;;  %v11192_v59 = vld [vmem:[#allocation14 + $0x4] ss:$16 sps:$4 sm:$0xff]   ;;  %7563 = vmatpush1.bf16.msra.mxu0 %v11193_v13  ;;  %v6683_v13 = vld [vmem:[#allocation13] sm:$0xf] }
 0x7c3   : > { %7564 = vmatprep.subr.bf16.mxu0 %v11201_v0  ;;  %v6720_v0 = vrot.slane %v6682_v62, %v12271_v25 }
 0x7c4   : > { %7524 = vmatpush1.bf16.msra.mxu1 %v11184_v3  ;;  %v6728_v3 = vrot.slane %v6682_v62, %v12274_v26 }
 0x7c5   : > { %7525 = vmatprep.subr.bf16.mxu1 %v11192_v59  ;;  %v6716_v59 = vrot.slane %v6682_v62, %v12277_v27 }
 0x7cb   : > { %v6589_v38 = vpop.f32.mrf.mxu0 }
 0x7cc   : > { %v6590_v15 = vadd.f32 %v6589_v38, %v5463_v23  ;;  %v11199_v38 = vld [vmem:[#allocation14 + $0x220] ss:$16 sps:$4 sm:$0xff]  }
 0x7cd   : > { %v6591_v48 = vpop.f32.mrf.mxu0  ;;  %7565 = vmatpush1.bf16.msra.mxu0 %v11199_v38  ;;  %v6724_v38 = vrot.slane %v6682_v62, %v12280_v28  ;;  %v11289_v62 = vld [vmem:[#allocation14 + $0x208] ss:$16 sps:$4 sm:$0xff]  }
 0x7ce   : > { %v6592_v16 = vadd.f32 %v6591_v48, %v5467_v14  ;;  %v11207_v48 = vld [vmem:[#allocation14 + $0x204] ss:$16 sps:$4 sm:$0xff]  }
 0x7cf   : > { %v6593_v7 = vpop.f32.mrf.mxu0  ;;  %7566 = vmatprep.subr.bf16.mxu0 %v11207_v48 }
 0x7d0   : > { %v11190_v7 = vld [vmem:[#allocation14] ss:$16 sps:$4 sm:$0xff]  }
 0x7d1   : > { %v6594_v8 = vpop.f32.mrf.mxu0  ;;  %7526 = vmatpush1.bf16.msra.mxu1 %v11190_v7  ;;  %v6745_v7 = vrot.slane %v6683_v13, %v12271_v25 }
 0x7d2   : > { %v11198_v8 = vld [vmem:[#allocation14 + $0x1e4] ss:$16 sps:$4 sm:$0xff]  }
 0x7d3   : > { %7527 = vmatprep.subr.bf16.mxu1 %v11198_v8  ;;  %v6753_v8 = vrot.slane %v6683_v13, %v12274_v26 }
 0x7fb   : > { %v6630_v11 = vpop.f32.mrf.mxu1 }
 0x7fc   : > { %v6631_v17 = vadd.f32 %v6630_v11, %v6590_v15  ;;  %v11205_v11 = vld [vmem:[#allocation14 + $0x200] ss:$16 sps:$4 sm:$0xff]  }
 0x7fd   : > { %v6632_v53 = vpop.f32.mrf.mxu1  ;;  %7567 = vmatpush1.bf16.msra.mxu0 %v11205_v11  ;;  %v6741_v11 = vrot.slane %v6683_v13, %v12277_v27 }
 0x7fe   : > { %v6633_v47 = vadd.f32 %v6632_v53, %v6592_v16  ;;  %v11196_v53 = vld [vmem:[#allocation14 + $0x1e0] ss:$16 sps:$4 sm:$0xff]  }
 0x7ff   : > { %v6634_v52 = vpop.f32.mrf.mxu1  ;;  %7528 = vmatpush2.bf16.msra.mxu1 %v11196_v53  ;;  %v6749_v53 = vrot.slane %v6683_v13, %v12280_v28  ;;  %v11294_v13 = vld [vmem:[#allocation14 + $0x1ec] ss:$16 sps:$4 sm:$0xff]  }
 0x800   : > { %v11204_v52 = vld [vmem:[#allocation14 + $0x1c4] ss:$16 sps:$4 sm:$0xff]  }
 0x801   : > { %v6635_v2 = vpop.f32.mrf.mxu1  ;;  %7529 = vmatprep.subr.bf16.mxu1 %v11204_v52 }
 0x802   : > { %v11202_v2 = vld [vmem:[#allocation14 + $0x1c0] ss:$16 sps:$4 sm:$0xff]  }
 0x803   : > { %7530 = vmatpush2.bf16.msra.mxu1 %v11202_v2 }
 0x80b   : > { %v6671_v19 = vpop.f32.mrf.mxu0 }
 0x80c   : > { %v6672_v20 = vadd.f32 %v6671_v19, %v6631_v17 }
 0x80d   : > { %v6673_v5 = vpop.f32.mrf.mxu0 }
 0x80e   : > { %v13122_v21 = vadd.f32 %v11544_v6, %v6672_v20  ;;  %v6674_v1 = vadd.f32 %v6673_v5, %v6633_v47 }
 0x80f   : > { %v6675_v9 = vpop.f32.mrf.mxu0 }
 0x810   : > { %v13127_v29 = vadd.f32 %v11545_v22, %v6674_v1  ;;  %v6685_v63 = vadd.f32 %v6684_v40, %v13122_v21  ;;  %v11210_v9 = vld [vmem:[#allocation14 + $0x1a4] ss:$16 sps:$4 sm:$0xff]  }
 0x811   : > { %v6676_v30 = vpop.f32.mrf.mxu0  ;;  %v11213_v22 = vld [vmem:[#allocation14 + $0x3a4] ss:$16 sps:$4 sm:$0xff]   ;;  %7531 = vmatprep.subr.bf16.mxu1 %v11210_v9 }
 0x812   : > { %v6686_v4 = vsel %vm570_vm0, %v13127_v29, 0.0  ;;  %v11211_v30 = vld [vmem:[#allocation14 + $0x3a0] ss:$16 sps:$4 sm:$0xff]   ;;  %7572 = vmatprep.subr.bf16.mxu0 %v11213_v22 }
 0x813   : > { %v6687_v31 = vadd.f32 %v6686_v4, %v6685_v63  ;;  %v11208_v63 = vld [vmem:[#allocation14 + $0x1a0] ss:$16 sps:$4 sm:$0xff]   ;;  %7573 = vmatpush2.bf16.msra.mxu0 %v11211_v30  ;;  %v11247_v30 = vld [vmem:[#allocation14 + $0x2e8] ss:$16 sps:$4 sm:$0xff]  }
 0x814   : > { %7532 = vmatpush2.bf16.msra.mxu1 %v11208_v63  ;;  %v11214_v4 = vld [vmem:[#allocation14 + $0x180] ss:$16 sps:$4 sm:$0xff]   ;;  %7574 = vmatprep.subr.bf16.mxu0 %v11219_v33  ;;  %v11244_v63 = vld [vmem:[#allocation14 + $0xe8] ss:$16 sps:$4 sm:$0xff]   ;;  %v11261_v33 = vld [vmem:[#allocation14 + $0x2ac] ss:$16 sps:$4 sm:$0xff]  }
 0x815   : > { %6688 = vadd.xlane.f32.xlu0 %v6687_v31  ;;  %v11216_v31 = vld [vmem:[#allocation14 + $0x184] ss:$16 sps:$4 sm:$0xff]  }
 0x816   : > { %7533 = vmatprep.subr.bf16.mxu1 %v11216_v31  ;;  %v11253_v31 = vld [vmem:[#allocation14 + $0x2c8] ss:$16 sps:$4 sm:$0xff]  }
 0x817   : > { %7575 = vmatpush2.bf16.msra.mxu0 %v11217_v32  ;;  %v11258_v32 = vld [vmem:[#allocation14 + $0xac] ss:$16 sps:$4 sm:$0xff]  }
 0x818   : > { %7534 = vmatpush2.bf16.msra.mxu1 %v11214_v4  ;;  %7576 = vmatprep.subr.bf16.mxu0 %v11225_v36  ;;  %v11259_v36 = vld [vmem:[#allocation14 + $0x2a8] ss:$16 sps:$4 sm:$0xff]  }
 0x819   : > { %7535 = vmatprep.subr.bf16.mxu1 %v11222_v35  ;;  %v11256_v35 = vld [vmem:[#allocation14 + $0xa8] ss:$16 sps:$4 sm:$0xff]  }
 0x81b   : > { %7577 = vmatpush2.bf16.msra.mxu0 %v11223_v34  ;;  %v11267_v34 = vld [vmem:[#allocation14 + $0x28c] ss:$16 sps:$4 sm:$0xff]  }
 0x81c   : > { %7536 = vmatpush2.bf16.msra.mxu1 %v11220_v24  ;;  %7578 = vmatprep.subr.bf16.mxu0 %v11231_v12  ;;  %v11264_v24 = vld [vmem:[#allocation14 + $0x8c] ss:$16 sps:$4 sm:$0xff]   ;;  %v11265_v12 = vld [vmem:[#allocation14 + $0x288] ss:$16 sps:$4 sm:$0xff]  }
 0x81d   : > { %7537 = vmatprep.subr.bf16.mxu1 %v11228_v37  ;;  %v11262_v37 = vld [vmem:[#allocation14 + $0x88] ss:$16 sps:$4 sm:$0xff]  }
 0x81f   : > { %7579 = vmatpush2.bf16.msra.mxu0 %v11229_v41  ;;  %v11273_v41 = vld [vmem:[#allocation14 + $0x26c] ss:$16 sps:$4 sm:$0xff]  }
 0x820   : > { %7538 = vmatpush2.bf16.msra.mxu1 %v11226_v39  ;;  %7580 = vmatprep.subr.bf16.mxu0 %v11237_v43  ;;  %v11270_v39 = vld [vmem:[#allocation14 + $0x6c] ss:$16 sps:$4 sm:$0xff]   ;;  %v11271_v43 = vld [vmem:[#allocation14 + $0x268] ss:$16 sps:$4 sm:$0xff]  }
 0x821   : > { %7539 = vmatprep.subr.bf16.mxu1 %v11234_v42  ;;  %v11268_v42 = vld [vmem:[#allocation14 + $0x68] ss:$16 sps:$4 sm:$0xff]  }
 0x823   : > { %7581 = vmatpush2.bf16.msra.mxu0 %v11235_v44  ;;  %v11279_v44 = vld [vmem:[#allocation14 + $0x24c] ss:$16 sps:$4 sm:$0xff]  }
 0x824   : > { %7540 = vmatpush2.bf16.msra.mxu1 %v11232_v18  ;;  %7582 = vmatprep.subr.bf16.mxu0 %v11243_v50  ;;  %v11276_v18 = vld [vmem:[#allocation14 + $0x4c] ss:$16 sps:$4 sm:$0xff]   ;;  %v11277_v50 = vld [vmem:[#allocation14 + $0x248] ss:$16 sps:$4 sm:$0xff]  }
 0x825   : > { %7541 = vmatprep.subr.bf16.mxu1 %v11240_v45  ;;  %v11274_v45 = vld [vmem:[#allocation14 + $0x48] ss:$16 sps:$4 sm:$0xff]  }
 0x827   : > { %7583 = vmatpush2.bf16.msra.mxu0 %v11241_v56  ;;  %v11285_v56 = vld [vmem:[#allocation14 + $0x22c] ss:$16 sps:$4 sm:$0xff]  }
 0x828   : > { %7542 = vmatpush2.bf16.msra.mxu1 %v11238_v51  ;;  %7593 = vmatprep.subr.bf16.mxu0 %v11246_v57  ;;  %v11282_v51 = vld [vmem:[#allocation14 + $0x2c] ss:$16 sps:$4 sm:$0xff]   ;;  %v11280_v57 = vld [vmem:[#allocation14 + $0x28] ss:$16 sps:$4 sm:$0xff]  }
 0x829   : > { %7634 = vmatprep.subr.bf16.mxu1 %v11249_v49  ;;  %v11283_v49 = vld [vmem:[#allocation14 + $0x228] ss:$16 sps:$4 sm:$0xff]  }
 0x89e   : > { %v6689_v23 = vpop.xlane.xlu0 %6688 }
 0x89f   : > { %v6690_v14 = vmul.f32 0.0020833334, %v6689_v23 }
 0x8a1   : > { %v13133_v15 = vsub.f32 %v13119_v60, %v6690_v14  ;;  %v13136_v55 = vsub.f32 %v13116_v10, %v6690_v14  ;;  %v13139_v16 = vsub.f32 %v13122_v21, %v6690_v14  ;;  %v13142_v17 = vsub.f32 %v13127_v29, %v6690_v14 }
 0x8a3   : > { %v6695_v19 = vmul.f32 %v13133_v15, %v13133_v15  ;;  %v6696_v46 = vmul.f32 %v13136_v55, %v13136_v55  ;;  %v6698_v47 = vmul.f32 %v13142_v17, %v13142_v17  ;;  %v6697_v20 = vmul.f32 %v13139_v16, %v13139_v16 }
 0x8a5   : > { %v6699_v5 = vadd.f32 %v6696_v46, %v6695_v19  ;;  %v6701_v1 = vsel %vm570_vm0, %v6698_v47, 0.0 }
 0x8a7   : > { %v6700_v6 = vadd.f32 %v6699_v5, %v6697_v20 }
 0x8a9   : > { %v6702_v40 = vadd.f32 %v6701_v1, %v6700_v6 }
 0x8ab   : > { %6703 = vadd.xlane.f32.xlu1 %v6702_v40 }
 0x934   : > { %v6704_v58 = vpop.xlane.xlu1 %6703 }
 0x935   : > { %v6705_v54 = vmul.f32 0.0020833334, %v6704_v58  ;;  %v11288_v58 = vld [vmem:[#allocation14 + $0xc] ss:$16 sps:$4 sm:$0xff]  }
 0x937   : > { %v6706_v61 = vadd.f32 1e-05, %v6705_v54  ;;  %v11291_v54 = vld [vmem:[#allocation14 + $0x20c] ss:$16 sps:$4 sm:$0xff]  }
 0x939   : > { %11540 = vrsqrt.f32 %v6706_v61  ;;  %v11286_v61 = vld [vmem:[#allocation14 + $0x8] ss:$16 sps:$4 sm:$0xff]  }
 0x946   : > { %v11541_v48 = vpop.eup %11540 }
 0x947   : > { %v6709_v52 = vmul.f32 %v11541_v48, %v13136_v55  ;;  %v6711_v2 = vmul.f32 %v11541_v48, %v13142_v17  ;;  %v6708_v23 = vmul.f32 %v11541_v48, %v13133_v15  ;;  %v6710_v14 = vmul.f32 %v11541_v48, %v13139_v16  ;;  %v11252_v15 = vld [vmem:[#allocation14 + $0xcc] ss:$16 sps:$4 sm:$0xff]   ;;  %v11250_v17 = vld [vmem:[#allocation14 + $0xc8] ss:$16 sps:$4 sm:$0xff]  }
 0x948   : > { %v11255_v16 = vld [vmem:[#allocation14 + $0x2cc] ss:$16 sps:$4 sm:$0xff]  }
 0x949   : > { %v6734_v19 = vmul.f32 %v6720_v0, %v6709_v52  ;;  %v6736_v46 = vmul.f32 %v6728_v3, %v6711_v2  ;;  %v6733_v47 = vmul.f32 %v6716_v59, %v6708_v23  ;;  %v6735_v20 = vmul.f32 %v6724_v38, %v6710_v14  ;;  %v11297_v0 = vld [vmem:[#allocation14 + $0x3ac] ss:$16 sps:$4 sm:$0xff]   ;;  %v11292_v3 = vld [vmem:[#allocation14 + $0x1e8] ss:$16 sps:$4 sm:$0xff]  }
 0x94a   : > { %v11295_v59 = vld [vmem:[#allocation14 + $0x3a8] ss:$16 sps:$4 sm:$0xff]   ;;  %v11300_v38 = vld [vmem:[#allocation14 + $0x1cc] ss:$16 sps:$4 sm:$0xff]  }
 0x94b   : > { %v6759_v5 = vadd.f32 %v6745_v7, %v6734_v19  ;;  %v6761_v6 = vadd.f32 %v6753_v8, %v6736_v46  ;;  %v6758_v1 = vadd.f32 %v6741_v11, %v6733_v47  ;;  %v6760_v40 = vadd.f32 %v6749_v53, %v6735_v20  ;;  %v11303_v48 = vld [vmem:[#allocation14 + $0x38c] ss:$16 sps:$4 sm:$0xff]   ;;  %v11298_v7 = vld [vmem:[#allocation14 + $0x1c8] ss:$16 sps:$4 sm:$0xff]  }
 0x94c   : > { %v11301_v8 = vld [vmem:[#allocation14 + $0x388] ss:$16 sps:$4 sm:$0xff]   ;;  %v11306_v11 = vld [vmem:[#allocation14 + $0x1ac] ss:$16 sps:$4 sm:$0xff]  }
 0x94d   : > { %v6763_v9 = vpack.c.bf16 %v6759_v5, %v6759_v5  ;;  %v6765_v22 = vpack.c.bf16 %v6761_v6, %v6761_v6  ;;  %v13165_v4 = vpack.c.bf16 %v6758_v1, %v6758_v1  ;;  %v13167_v55 = vpack.c.bf16 %v6760_v40, %v6760_v40  ;;  %v11309_v53 = vld [vmem:[#allocation14 + $0x36c] ss:$16 sps:$4 sm:$0xff]   ;;  %v11304_v52 = vld [vmem:[#allocation14 + $0x1a8] ss:$16 sps:$4 sm:$0xff]  }
 0x94e   : > { %v11307_v2 = vld [vmem:[#allocation14 + $0x368] ss:$16 sps:$4 sm:$0xff]   ;;  %v11312_v23 = vld [vmem:[#allocation14 + $0x18c] ss:$16 sps:$4 sm:$0xff]  }
 0x94f   : > { %7543 = vmatprep.mubr.bf16.mxu1 %v6763_v9  ;;  %9676 = vmatprep.mubr.msk.bf16.mxu0 %vm570_vm0, %v6765_v22  ;;  %v11315_v14 = vld [vmem:[#allocation14 + $0x34c] ss:$16 sps:$4 sm:$0xff]   ;;  %v11310_v19 = vld [vmem:[#allocation14 + $0x188] ss:$16 sps:$4 sm:$0xff]  }
 0x950   : > { %7544 = vmatmul.mubr.bf16.vlgmr.msra.gmra.mxu1 %v13165_v4  ;;  %7585 = vmatmul.mubr.bf16.vlgmr.msra.gmra.mxu0 %v13167_v55  ;;  %v11313_v46 = vld [vmem:[#allocation14 + $0x348] ss:$16 sps:$4 sm:$0xff]   ;;  %v11318_v47 = vld [vmem:[#allocation14 + $0x16c] ss:$16 sps:$4 sm:$0xff]  }
 0x951   : > { %7594 = vmatpush1.bf16.msra.mxu0 %v11244_v63  ;;  %7635 = vmatpush1.bf16.msra.mxu1 %v11247_v30  ;;  %v11321_v20 = vld [vmem:[#allocation14 + $0x32c] ss:$16 sps:$4 sm:$0xff]   ;;  %v11316_v5 = vld [vmem:[#allocation14 + $0x168] ss:$16 sps:$4 sm:$0xff]  }
 0x952   : > { %7625 = vmatprep.mubr.bf16.mxu0 %v6763_v9  ;;  %9677 = vmatprep.mubr.msk.bf16.mxu1 %vm570_vm0, %v6765_v22  ;;  %v11319_v6 = vld [vmem:[#allocation14 + $0x328] ss:$16 sps:$4 sm:$0xff]   ;;  %v11324_v1 = vld [vmem:[#allocation14 + $0x14c] ss:$16 sps:$4 sm:$0xff]  }
 0x953   : > { %7595 = vmatprep.subr.bf16.mxu0 %v11252_v15  ;;  %7636 = vmatprep.subr.bf16.mxu1 %v11255_v16  ;;  %v11327_v40 = vld [vmem:[#allocation14 + $0x30c] ss:$16 sps:$4 sm:$0xff]   ;;  %v11322_v9 = vld [vmem:[#allocation14 + $0x148] ss:$16 sps:$4 sm:$0xff]   ;;  %v11334_v16 = vld [vmem:[#allocation17 + $0xe0] ss:$16 sps:$4 sm:$0xff]  }
 0x954   : > { %v11325_v22 = vld [vmem:[#allocation14 + $0x308] ss:$16 sps:$4 sm:$0xff]   ;;  %v11330_v63 = vld [vmem:[#allocation14 + $0x12c] ss:$16 sps:$4 sm:$0xff]  }
 0x955   : > { %7596 = vmatpush1.bf16.msra.mxu0 %v11250_v17  ;;  %7637 = vmatpush1.bf16.msra.mxu1 %v11253_v31  ;;  %v11336_v30 = vld [vmem:[#allocation17 + $0xe4] ss:$16 sps:$4 sm:$0xff]   ;;  %v11333_v17 = vld [vmem:[#allocation14 + $0x10c] ss:$16 sps:$4 sm:$0xff]  }
 0x956   : > { %7597 = vmatprep.subr.bf16.mxu0 %v11258_v32  ;;  %7638 = vmatprep.subr.bf16.mxu1 %v11261_v33  ;;  %v11328_v15 = vld [vmem:[#allocation14 + $0x128] ss:$16 sps:$4 sm:$0xff]   ;;  %v11337_v33 = vld [vmem:[#allocation17 + $0xc0] ss:$16 sps:$4 sm:$0xff]  }
 0x957   : > { %v11339_v31 = vld [vmem:[#allocation17 + $0xc4] ss:$16 sps:$4 sm:$0xff]  }
 0x958   : > { %v11331_v32 = vld [vmem:[#allocation14 + $0x108] ss:$16 sps:$4 sm:$0xff]  }
 0x959   : > { %7598 = vmatpush1.bf16.msra.mxu0 %v11256_v35  ;;  %7639 = vmatpush1.bf16.msra.mxu1 %v11259_v36  ;;  %v11342_v35 = vld [vmem:[#allocation17 + $0xa4] ss:$16 sps:$4 sm:$0xff]   ;;  %v11340_v36 = vld [vmem:[#allocation17 + $0xa0] ss:$16 sps:$4 sm:$0xff]  }
 0x95a   : > { %7599 = vmatprep.subr.bf16.mxu0 %v11264_v24  ;;  %7640 = vmatprep.subr.bf16.mxu1 %v11267_v34  ;;  %v11345_v24 = vld [vmem:[#allocation17 + $0x84] ss:$16 sps:$4 sm:$0xff]   ;;  %v11343_v34 = vld [vmem:[#allocation17 + $0x80] ss:$16 sps:$4 sm:$0xff]  }
 0x95d   : > { %7600 = vmatpush1.bf16.msra.mxu0 %v11262_v37  ;;  %7641 = vmatpush1.bf16.msra.mxu1 %v11265_v12  ;;  %v11348_v37 = vld [vmem:[#allocation17 + $0x64] ss:$16 sps:$4 sm:$0xff]  }
 0x95e   : > { %7601 = vmatprep.subr.bf16.mxu0 %v11270_v39  ;;  %7642 = vmatprep.subr.bf16.mxu1 %v11273_v41  ;;  %v11351_v12 = vld [vmem:[#allocation17 + $0x44] ss:$16 sps:$4 sm:$0xff]   ;;  %v11349_v39 = vld [vmem:[#allocation17 + $0x40] ss:$16 sps:$4 sm:$0xff]  }
 0x95f   : > { %v11354_v41 = vld [vmem:[#allocation17 + $0x24] ss:$16 sps:$4 sm:$0xff]  }
 0x961   : > { %7602 = vmatpush1.bf16.msra.mxu0 %v11268_v42  ;;  %7643 = vmatpush1.bf16.msra.mxu1 %v11271_v43  ;;  %v11382_v42 = vld [vmem:[#allocation17 + $0x2e0] ss:$16 sps:$4 sm:$0xff]   ;;  %v11384_v43 = vld [vmem:[#allocation17 + $0x2e4] ss:$16 sps:$4 sm:$0xff]  }
 0x962   : > { %7603 = vmatprep.subr.bf16.mxu0 %v11276_v18  ;;  %7644 = vmatprep.subr.bf16.mxu1 %v11279_v44  ;;  %v11352_v18 = vld [vmem:[#allocation17 + $0x20] ss:$16 sps:$4 sm:$0xff]   ;;  %v11390_v44 = vld [vmem:[#allocation17 + $0x2c4] ss:$16 sps:$4 sm:$0xff]  }
 0x965   : > { %7604 = vmatpush1.bf16.msra.mxu0 %v11274_v45  ;;  %7645 = vmatpush1.bf16.msra.mxu1 %v11277_v50  ;;  %v11357_v45 = vld [vmem:[#allocation17 + $0x4] ss:$16 sps:$4 sm:$0xff]   ;;  %v11355_v50 = vld [vmem:[#allocation17] ss:$16 sps:$4 sm:$0xff]  }
 0x966   : > { %7605 = vmatprep.subr.bf16.mxu0 %v11282_v51  ;;  %7646 = vmatprep.subr.bf16.mxu1 %v11285_v56  ;;  %v11396_v51 = vld [vmem:[#allocation17 + $0x2a4] ss:$16 sps:$4 sm:$0xff]  }
 0x967   : > { %v11360_v56 = vld [vmem:[#allocation17 + $0x1e4] ss:$16 sps:$4 sm:$0xff]  }
 0x969   : > { %7606 = vmatpush1.bf16.msra.mxu0 %v11280_v57  ;;  %7647 = vmatpush1.bf16.msra.mxu1 %v11283_v49  ;;  %v11394_v57 = vld [vmem:[#allocation17 + $0x2a0] ss:$16 sps:$4 sm:$0xff]  }
 0x96a   : > { %7607 = vmatprep.subr.bf16.mxu0 %v11288_v58  ;;  %7648 = vmatprep.subr.bf16.mxu1 %v11291_v54  ;;  %v11358_v49 = vld [vmem:[#allocation17 + $0x1e0] ss:$16 sps:$4 sm:$0xff]   ;;  %v11402_v58 = vld [vmem:[#allocation17 + $0x284] ss:$16 sps:$4 sm:$0xff]  }
 0x96b   : > { %v11363_v54 = vld [vmem:[#allocation17 + $0x1c4] ss:$16 sps:$4 sm:$0xff]  }
 0x96d   : > { %7608 = vmatpush1.bf16.msra.mxu0 %v11286_v61  ;;  %7649 = vmatpush1.bf16.msra.mxu1 %v11289_v62  ;;  %v11400_v61 = vld [vmem:[#allocation17 + $0x280] ss:$16 sps:$4 sm:$0xff]  }
 0x96e   : > { %7609 = vmatprep.subr.bf16.mxu0 %v11294_v13  ;;  %7654 = vmatprep.subr.bf16.mxu1 %v11297_v0  ;;  %v11361_v62 = vld [vmem:[#allocation17 + $0x1c0] ss:$16 sps:$4 sm:$0xff]   ;;  %v11408_v13 = vld [vmem:[#allocation17 + $0x264] ss:$16 sps:$4 sm:$0xff]  }
 0x96f   : > { %v11366_v0 = vld [vmem:[#allocation17 + $0x1a4] ss:$16 sps:$4 sm:$0xff]  }
 0x971   : > { %7610 = vmatpush2.bf16.msra.mxu0 %v11292_v3  ;;  %7655 = vmatpush2.bf16.msra.mxu1 %v11295_v59  ;;  %v11406_v3 = vld [vmem:[#allocation17 + $0x260] ss:$16 sps:$4 sm:$0xff]  }
 0x972   : > { %7611 = vmatprep.subr.bf16.mxu0 %v11300_v38  ;;  %7656 = vmatprep.subr.bf16.mxu1 %v11303_v48  ;;  %v11364_v59 = vld [vmem:[#allocation17 + $0x1a0] ss:$16 sps:$4 sm:$0xff]   ;;  %v11414_v38 = vld [vmem:[#allocation17 + $0x244] ss:$16 sps:$4 sm:$0xff]  }
 0x973   : > { %v11369_v48 = vld [vmem:[#allocation17 + $0x184] ss:$16 sps:$4 sm:$0xff]  }
 0x975   : > { %7612 = vmatpush2.bf16.msra.mxu0 %v11298_v7  ;;  %7657 = vmatpush2.bf16.msra.mxu1 %v11301_v8  ;;  %v11412_v7 = vld [vmem:[#allocation17 + $0x240] ss:$16 sps:$4 sm:$0xff]  }
 0x976   : > { %7613 = vmatprep.subr.bf16.mxu0 %v11306_v11  ;;  %7658 = vmatprep.subr.bf16.mxu1 %v11309_v53  ;;  %v11367_v8 = vld [vmem:[#allocation17 + $0x180] ss:$16 sps:$4 sm:$0xff]   ;;  %v11420_v11 = vld [vmem:[#allocation17 + $0x224] ss:$16 sps:$4 sm:$0xff]  }
 0x977   : > { %v11372_v53 = vld [vmem:[#allocation17 + $0x164] ss:$16 sps:$4 sm:$0xff]  }
 0x979   : > { %7614 = vmatpush2.bf16.msra.mxu0 %v11304_v52  ;;  %7659 = vmatpush2.bf16.msra.mxu1 %v11307_v2  ;;  %v11418_v52 = vld [vmem:[#allocation17 + $0x220] ss:$16 sps:$4 sm:$0xff]  }
 0x97a   : > { %7615 = vmatprep.subr.bf16.mxu0 %v11312_v23  ;;  %7660 = vmatprep.subr.bf16.mxu1 %v11315_v14  ;;  %v11370_v2 = vld [vmem:[#allocation17 + $0x160] ss:$16 sps:$4 sm:$0xff]   ;;  %v11426_v23 = vld [vmem:[#allocation17 + $0x204] ss:$16 sps:$4 sm:$0xff]  }
 0x97b   : > { %v11375_v14 = vld [vmem:[#allocation17 + $0x144] ss:$16 sps:$4 sm:$0xff]  }
 0x97d   : > { %7616 = vmatpush2.bf16.msra.mxu0 %v11310_v19  ;;  %7661 = vmatpush2.bf16.msra.mxu1 %v11313_v46  ;;  %v11424_v19 = vld [vmem:[#allocation17 + $0x200] ss:$16 sps:$4 sm:$0xff]  }
 0x97e   : > { %7617 = vmatprep.subr.bf16.mxu0 %v11318_v47  ;;  %7662 = vmatprep.subr.bf16.mxu1 %v11321_v20  ;;  %v11373_v46 = vld [vmem:[#allocation17 + $0x140] ss:$16 sps:$4 sm:$0xff]   ;;  %v11432_v47 = vld [vmem:[#allocation17 + $0x3a4] ss:$16 sps:$4 sm:$0xff]  }
 0x97f   : > { %v11378_v20 = vld [vmem:[#allocation17 + $0x124] ss:$16 sps:$4 sm:$0xff]  }
 0x981   : > { %7618 = vmatpush2.bf16.msra.mxu0 %v11316_v5  ;;  %7663 = vmatpush2.bf16.msra.mxu1 %v11319_v6  ;;  %v11430_v5 = vld [vmem:[#allocation17 + $0x3a0] ss:$16 sps:$4 sm:$0xff]  }
 0x982   : > { %7619 = vmatprep.subr.bf16.mxu0 %v11324_v1  ;;  %7664 = vmatprep.subr.bf16.mxu1 %v11327_v40  ;;  %v11376_v6 = vld [vmem:[#allocation17 + $0x120] ss:$16 sps:$4 sm:$0xff]   ;;  %v11438_v1 = vld [vmem:[#allocation17 + $0x384] ss:$16 sps:$4 sm:$0xff]  }
 0x983   : > { %v11381_v40 = vld [vmem:[#allocation17 + $0x104] ss:$16 sps:$4 sm:$0xff]  }
 0x985   : > { %7620 = vmatpush2.bf16.msra.mxu0 %v11322_v9  ;;  %7665 = vmatpush2.bf16.msra.mxu1 %v11325_v22  ;;  %v11436_v9 = vld [vmem:[#allocation17 + $0x380] ss:$16 sps:$4 sm:$0xff]  }
 0x986   : > { %7621 = vmatprep.subr.bf16.mxu0 %v11330_v63  ;;  %8428 = vmatprep.subr.bf16.mxu1 %v11336_v30  ;;  %v11379_v22 = vld [vmem:[#allocation17 + $0x100] ss:$16 sps:$4 sm:$0xff]   ;;  %v11387_v63 = vld [vmem:[#allocation17 + $0x2ec] ss:$16 sps:$4 sm:$0xff]   ;;  %v11444_v30 = vld [vmem:[#allocation17 + $0x364] ss:$16 sps:$4 sm:$0xff]  }
 0x988   : > { %7667 = vmatmul.mubr.bf16.vlgmr.msra.gmra.mxu1 %v13167_v55  ;;  %v11346_v55 = vld [vmem:[#allocation17 + $0x60] ss:$16 sps:$4 sm:$0xff]  }
 0x989   : > { %7622 = vmatpush2.bf16.msra.mxu0 %v11328_v15  ;;  %8429 = vmatpush1.bf16.msra.mxu1 %v11334_v16  ;;  %v11442_v15 = vld [vmem:[#allocation17 + $0x360] ss:$16 sps:$4 sm:$0xff]   ;;  %v11450_v16 = vld [vmem:[#allocation17 + $0x344] ss:$16 sps:$4 sm:$0xff]  }
 0x98a   : > { %7623 = vmatprep.subr.bf16.mxu0 %v11333_v17  ;;  %8430 = vmatprep.subr.bf16.mxu1 %v11339_v31  ;;  %v11448_v17 = vld [vmem:[#allocation17 + $0x340] ss:$16 sps:$4 sm:$0xff]   ;;  %v11456_v31 = vld [vmem:[#allocation17 + $0x324] ss:$16 sps:$4 sm:$0xff]  }
 0x98d   : > { %7624 = vmatpush2.bf16.msra.mxu0 %v11331_v32  ;;  %8431 = vmatpush1.bf16.msra.mxu1 %v11337_v33  ;;  %v11454_v32 = vld [vmem:[#allocation17 + $0x320] ss:$16 sps:$4 sm:$0xff]   ;;  %v11462_v33 = vld [vmem:[#allocation17 + $0x304] ss:$16 sps:$4 sm:$0xff]  }
 0x98e   : > { %8432 = vmatprep.subr.bf16.mxu1 %v11342_v35  ;;  %8469 = vmatprep.subr.bf16.mxu0 %v11384_v43  ;;  %v11460_v35 = vld [vmem:[#allocation17 + $0x300] ss:$16 sps:$4 sm:$0xff]  }
 0x990   : > { %7626 = vmatmul.mubr.bf16.vlgmr.msra.gmra.mxu0 %v13165_v4  ;;  %v11388_v4 = vld [vmem:[#allocation17 + $0x2c0] ss:$16 sps:$4 sm:$0xff]  }
 0x991   : > { %8433 = vmatpush1.bf16.msra.mxu1 %v11340_v36  ;;  %8470 = vmatpush1.bf16.msra.mxu0 %v11382_v42  ;;  %v11468_v36 = vld [vmem:[#allocation17 + $0xec] ss:$16 sps:$4 sm:$0xff]  }
 0x992   : > { %8434 = vmatprep.subr.bf16.mxu1 %v11345_v24  ;;  %8471 = vmatprep.subr.bf16.mxu0 %v11390_v44  ;;  %v13175_v24 = vld [vmem:[#allocation16] sm:$0xf] }
 0x995   : > { %8435 = vmatpush1.bf16.msra.mxu1 %v11343_v34  ;;  %8472 = vmatpush1.bf16.msra.mxu0 %v11388_v4  ;;  %v6891_v34 = vrot.slane %v13175_v24, %v12277_v27 }
 0x996   : > { %8436 = vmatprep.subr.bf16.mxu1 %v11348_v37  ;;  %8473 = vmatprep.subr.bf16.mxu0 %v11396_v51  ;;  %v6895_v37 = vrot.slane %v13175_v24, %v12271_v25 }
 0x999   : > { %8437 = vmatpush1.bf16.msra.mxu1 %v11346_v55  ;;  %8474 = vmatpush1.bf16.msra.mxu0 %v11394_v57 }
 0x99a   : > { %8438 = vmatprep.subr.bf16.mxu1 %v11351_v12  ;;  %8475 = vmatprep.subr.bf16.mxu0 %v11402_v58  ;;  %v11385_v58 = vld [vmem:[#allocation17 + $0x2e8] ss:$16 sps:$4 sm:$0xff]  }
 0x99d   : > { %8439 = vmatpush1.bf16.msra.mxu1 %v11349_v39  ;;  %8476 = vmatpush1.bf16.msra.mxu0 %v11400_v61  ;;  %v11393_v61 = vld [vmem:[#allocation17 + $0x2cc] ss:$16 sps:$4 sm:$0xff]  }
 0x99e   : > { %8440 = vmatprep.subr.bf16.mxu1 %v11354_v41  ;;  %8477 = vmatprep.subr.bf16.mxu0 %v11408_v13  ;;  %v11399_v13 = vld [vmem:[#allocation17 + $0x2ac] ss:$16 sps:$4 sm:$0xff]  }
 0x9a1   : > { %8441 = vmatpush1.bf16.msra.mxu1 %v11352_v18  ;;  %8478 = vmatpush1.bf16.msra.mxu0 %v11406_v3  ;;  %v11405_v3 = vld [vmem:[#allocation17 + $0x28c] ss:$16 sps:$4 sm:$0xff]  }
 0x9a2   : > { %8442 = vmatprep.subr.bf16.mxu1 %v11357_v45  ;;  %8479 = vmatprep.subr.bf16.mxu0 %v11414_v38  ;;  %v11411_v38 = vld [vmem:[#allocation17 + $0x26c] ss:$16 sps:$4 sm:$0xff]  }
 0x9a5   : > { %8443 = vmatpush1.bf16.msra.mxu1 %v11355_v50  ;;  %8480 = vmatpush1.bf16.msra.mxu0 %v11412_v7  ;;  %v11417_v7 = vld [vmem:[#allocation17 + $0x24c] ss:$16 sps:$4 sm:$0xff]  }
 0x9a6   : > { %8444 = vmatprep.subr.bf16.mxu1 %v11360_v56  ;;  %8481 = vmatprep.subr.bf16.mxu0 %v11420_v11  ;;  %v11423_v11 = vld [vmem:[#allocation17 + $0x22c] ss:$16 sps:$4 sm:$0xff]  }
 0x9a9   : > { %8445 = vmatpush2.bf16.msra.mxu1 %v11358_v49  ;;  %8482 = vmatpush1.bf16.msra.mxu0 %v11418_v52  ;;  %v11429_v52 = vld [vmem:[#allocation17 + $0x20c] ss:$16 sps:$4 sm:$0xff]  }
 0x9aa   : > { %8446 = vmatprep.subr.bf16.mxu1 %v11363_v54  ;;  %8483 = vmatprep.subr.bf16.mxu0 %v11426_v23  ;;  %v11435_v23 = vld [vmem:[#allocation17 + $0x3ac] ss:$16 sps:$4 sm:$0xff]  }
 0x9ad   : > { %8447 = vmatpush2.bf16.msra.mxu1 %v11361_v62  ;;  %8484 = vmatpush1.bf16.msra.mxu0 %v11424_v19  ;;  %v11391_v62 = vld [vmem:[#allocation17 + $0x2c8] ss:$16 sps:$4 sm:$0xff]   ;;  %v11441_v19 = vld [vmem:[#allocation17 + $0x38c] ss:$16 sps:$4 sm:$0xff]  }
 0x9ae   : > { %8448 = vmatprep.subr.bf16.mxu1 %v11366_v0  ;;  %8489 = vmatprep.subr.bf16.mxu0 %v11432_v47  ;;  %v11397_v0 = vld [vmem:[#allocation17 + $0x2a8] ss:$16 sps:$4 sm:$0xff]   ;;  %v11447_v47 = vld [vmem:[#allocation17 + $0x36c] ss:$16 sps:$4 sm:$0xff]  }
 0x9b1   : > { %8449 = vmatpush2.bf16.msra.mxu1 %v11364_v59  ;;  %8490 = vmatpush2.bf16.msra.mxu0 %v11430_v5  ;;  %v11403_v59 = vld [vmem:[#allocation17 + $0x288] ss:$16 sps:$4 sm:$0xff]   ;;  %v11453_v5 = vld [vmem:[#allocation17 + $0x34c] ss:$16 sps:$4 sm:$0xff]  }
 0x9b2   : > { %8450 = vmatprep.subr.bf16.mxu1 %v11369_v48  ;;  %8491 = vmatprep.subr.bf16.mxu0 %v11438_v1  ;;  %v11409_v48 = vld [vmem:[#allocation17 + $0x268] ss:$16 sps:$4 sm:$0xff]   ;;  %v11459_v1 = vld [vmem:[#allocation17 + $0x32c] ss:$16 sps:$4 sm:$0xff]  }
 0x9b5   : > { %8451 = vmatpush2.bf16.msra.mxu1 %v11367_v8  ;;  %8492 = vmatpush2.bf16.msra.mxu0 %v11436_v9  ;;  %v11415_v8 = vld [vmem:[#allocation17 + $0x248] ss:$16 sps:$4 sm:$0xff]  }
 0x9b6   : > { %8452 = vmatprep.subr.bf16.mxu1 %v11372_v53  ;;  %8493 = vmatprep.subr.bf16.mxu0 %v11444_v30  ;;  %v11421_v53 = vld [vmem:[#allocation17 + $0x228] ss:$16 sps:$4 sm:$0xff]  }
 0x9b7   : > { %v11457_v9 = vld [vmem:[#allocation17 + $0x328] ss:$16 sps:$4 sm:$0xff]  }
 0x9b9   : > { %8453 = vmatpush2.bf16.msra.mxu1 %v11370_v2  ;;  %8494 = vmatpush2.bf16.msra.mxu0 %v11442_v15  ;;  %v11427_v2 = vld [vmem:[#allocation17 + $0x208] ss:$16 sps:$4 sm:$0xff]   ;;  %v6899_v15 = vrot.slane %v13175_v24, %v12280_v28 }
 0x9ba   : > { %8454 = vmatprep.subr.bf16.mxu1 %v11375_v14  ;;  %8495 = vmatprep.subr.bf16.mxu0 %v11450_v16  ;;  %v11433_v14 = vld [vmem:[#allocation17 + $0x3a8] ss:$16 sps:$4 sm:$0xff]  }
 0x9bb   : > { %v11463_v16 = vld [vmem:[#allocation17 + $0x308] ss:$16 sps:$4 sm:$0xff]  }
 0x9bd   : > { %8455 = vmatpush2.bf16.msra.mxu1 %v11373_v46  ;;  %8496 = vmatpush2.bf16.msra.mxu0 %v11448_v17  ;;  %v11439_v46 = vld [vmem:[#allocation17 + $0x388] ss:$16 sps:$4 sm:$0xff]  }
 0x9be   : > { %8456 = vmatprep.subr.bf16.mxu1 %v11378_v20  ;;  %8497 = vmatprep.subr.bf16.mxu0 %v11456_v31  ;;  %v11445_v20 = vld [vmem:[#allocation17 + $0x368] ss:$16 sps:$4 sm:$0xff]   ;;  %v6903_v31 = vrot.slane %v13175_v24, %v12274_v26 }
 0x9bf   : > { %v11469_v24 = vld [vmem:[#allocation17 + $0xc8] ss:$16 sps:$4 sm:$0xff]  }
 0x9c1   : > { %8457 = vmatpush2.bf16.msra.mxu1 %v11376_v6  ;;  %8498 = vmatpush2.bf16.msra.mxu0 %v11454_v32  ;;  %v11451_v6 = vld [vmem:[#allocation17 + $0x348] ss:$16 sps:$4 sm:$0xff]  }
 0x9c2   : > { %8458 = vmatprep.subr.bf16.mxu1 %v11381_v40  ;;  %8499 = vmatprep.subr.bf16.mxu0 %v11462_v33 }
 0x9c5   : > { %8459 = vmatpush2.bf16.msra.mxu1 %v11379_v22  ;;  %8500 = vmatpush2.bf16.msra.mxu0 %v11460_v35 }
 0x9c6   : > { %8551 = vmatprep.subr.bf16.mxu1 %v11387_v63  ;;  %8510 = vmatprep.subr.bf16.mxu0 %v11468_v36  ;;  %v11465_v63 = vld [vmem:[#allocation17 + $0x30c] ss:$16 sps:$4 sm:$0xff]  }
 0xa10   : > { %v7545_v55 = vpop.f32.mrf.mxu1  ;;  %v7586_v12 = vpop.f32.mrf.mxu0 }
 0xa11   : > { %v7546_v39 = vadd.f32 %v7545_v55, %v6891_v34 }
 0xa12   : > { %v7547_v41 = vpop.f32.mrf.mxu1  ;;  %v7588_v42 = vpop.f32.mrf.mxu0 }
 0xa13   : > { %v7587_v43 = vadd.f32 %v7586_v12, %v7546_v39  ;;  %v7548_v18 = vadd.f32 %v7547_v41, %v6895_v37 }
 0xa14   : > { %v7549_v44 = vpop.f32.mrf.mxu1  ;;  %v7590_v45 = vpop.f32.mrf.mxu0 }
 0xa15   : > { %v7589_v4 = vadd.f32 %v7588_v42, %v7548_v18  ;;  %v7675_v50 = vmax.f32 %v7587_v43, 0.0  ;;  %v11466_v43 = vld [vmem:[#allocation17 + $0xe8] ss:$16 sps:$4 sm:$0xff]   ;;  %v11471_v44 = vld [vmem:[#allocation17 + $0xcc] ss:$16 sps:$4 sm:$0xff]  }
 0xa16   : > { %v7550_v51 = vpop.f32.mrf.mxu1  ;;  %v7591_v56 = vpop.f32.mrf.mxu0  ;;  %v11474_v45 = vld [vmem:[#allocation17 + $0xac] ss:$16 sps:$4 sm:$0xff]  }
 0xa17   : > { %v7676_v57 = vmax.f32 %v7589_v4, 0.0  ;;  %v13183_v54 = vpack.c.bf16 %v7675_v50, %v7675_v50  ;;  %v11472_v4 = vld [vmem:[#allocation17 + $0xa8] ss:$16 sps:$4 sm:$0xff]   ;;  %v11477_v50 = vld [vmem:[#allocation17 + $0x8c] ss:$16 sps:$4 sm:$0xff]  }
 0xa18   : > { %v11475_v51 = vld [vmem:[#allocation17 + $0x88] ss:$16 sps:$4 sm:$0xff]   ;;  %v11480_v56 = vld [vmem:[#allocation17 + $0x6c] ss:$16 sps:$4 sm:$0xff]  }
 0xa19   : > { %v13181_v49 = vpack.c.bf16 %v7676_v57, %v7676_v57  ;;  %v11478_v57 = vld [vmem:[#allocation17 + $0x68] ss:$16 sps:$4 sm:$0xff]  }
 0xa1b   : > { %8460 = vmatprep.mubr.bf16.mxu1 %v13181_v49 }
 0xa1c   : > { %8461 = vmatmul.mubr.bf16.vlgmr.msra.gmra.mxu1 %v13183_v54 }
 0xa1d   : > { %8552 = vmatpush1.bf16.msra.mxu1 %v11385_v58  ;;  %v11483_v58 = vld [vmem:[#allocation17 + $0x4c] ss:$16 sps:$4 sm:$0xff]  }
 0xa1e   : > { %8553 = vmatprep.subr.bf16.mxu1 %v11393_v61  ;;  %v11481_v61 = vld [vmem:[#allocation17 + $0x48] ss:$16 sps:$4 sm:$0xff]  }
 0xa21   : > { %8554 = vmatpush1.bf16.msra.mxu1 %v11391_v62  ;;  %v11486_v62 = vld [vmem:[#allocation17 + $0x2c] ss:$16 sps:$4 sm:$0xff]  }
 0xa22   : > { %8555 = vmatprep.subr.bf16.mxu1 %v11399_v13  ;;  %v11489_v13 = vld [vmem:[#allocation17 + $0xc] ss:$16 sps:$4 sm:$0xff]  }
 0xa25   : > { %8556 = vmatpush1.bf16.msra.mxu1 %v11397_v0  ;;  %v11487_v0 = vld [vmem:[#allocation17 + $0x8] ss:$16 sps:$4 sm:$0xff]  }
 0xa26   : > { %8557 = vmatprep.subr.bf16.mxu1 %v11405_v3  ;;  %v11492_v3 = vld [vmem:[#allocation17 + $0x1ec] ss:$16 sps:$4 sm:$0xff]  }
 0xa29   : > { %8558 = vmatpush1.bf16.msra.mxu1 %v11403_v59  ;;  %v11490_v59 = vld [vmem:[#allocation17 + $0x1e8] ss:$16 sps:$4 sm:$0xff]  }
 0xa2a   : > { %8559 = vmatprep.subr.bf16.mxu1 %v11411_v38  ;;  %v11495_v38 = vld [vmem:[#allocation17 + $0x1cc] ss:$16 sps:$4 sm:$0xff]  }
 0xa2d   : > { %8560 = vmatpush1.bf16.msra.mxu1 %v11409_v48  ;;  %v11493_v48 = vld [vmem:[#allocation17 + $0x1c8] ss:$16 sps:$4 sm:$0xff]  }
 0xa2e   : > { %8561 = vmatprep.subr.bf16.mxu1 %v11417_v7  ;;  %v11498_v7 = vld [vmem:[#allocation17 + $0x1ac] ss:$16 sps:$4 sm:$0xff]  }
 0xa31   : > { %8562 = vmatpush1.bf16.msra.mxu1 %v11415_v8  ;;  %v11496_v8 = vld [vmem:[#allocation17 + $0x1a8] ss:$16 sps:$4 sm:$0xff]  }
 0xa32   : > { %8563 = vmatprep.subr.bf16.mxu1 %v11423_v11  ;;  %v11501_v11 = vld [vmem:[#allocation17 + $0x18c] ss:$16 sps:$4 sm:$0xff]  }
 0xa35   : > { %8564 = vmatpush1.bf16.msra.mxu1 %v11421_v53  ;;  %v11499_v53 = vld [vmem:[#allocation17 + $0x188] ss:$16 sps:$4 sm:$0xff]  }
 0xa36   : > { %8565 = vmatprep.subr.bf16.mxu1 %v11429_v52  ;;  %v11504_v52 = vld [vmem:[#allocation17 + $0x16c] ss:$16 sps:$4 sm:$0xff]  }
 0xa39   : > { %8566 = vmatpush1.bf16.msra.mxu1 %v11427_v2  ;;  %v11502_v2 = vld [vmem:[#allocation17 + $0x168] ss:$16 sps:$4 sm:$0xff]  }
 0xa3a   : > { %8571 = vmatprep.subr.bf16.mxu1 %v11435_v23  ;;  %v11507_v23 = vld [vmem:[#allocation17 + $0x14c] ss:$16 sps:$4 sm:$0xff]  }
 0xa3d   : > { %8572 = vmatpush2.bf16.msra.mxu1 %v11433_v14  ;;  %v11505_v14 = vld [vmem:[#allocation17 + $0x148] ss:$16 sps:$4 sm:$0xff]  }
 0xa3e   : > { %8573 = vmatprep.subr.bf16.mxu1 %v11441_v19  ;;  %v11510_v19 = vld [vmem:[#allocation17 + $0x12c] ss:$16 sps:$4 sm:$0xff]  }
 0xa41   : > { %8574 = vmatpush2.bf16.msra.mxu1 %v11439_v46  ;;  %v11508_v46 = vld [vmem:[#allocation17 + $0x128] ss:$16 sps:$4 sm:$0xff]  }
 0xa42   : > { %8575 = vmatprep.subr.bf16.mxu1 %v11447_v47  ;;  %v11513_v47 = vld [vmem:[#allocation17 + $0x10c] ss:$16 sps:$4 sm:$0xff]  }
 0xa45   : > { %8576 = vmatpush2.bf16.msra.mxu1 %v11445_v20  ;;  %v11511_v20 = vld [vmem:[#allocation17 + $0x108] ss:$16 sps:$4 sm:$0xff]  }
 0xa46   : > { %8577 = vmatprep.subr.bf16.mxu1 %v11453_v5 }
 0xa48   : > { %v7668_v40 = vpop.f32.mrf.mxu1 }
 0xa49   : > { %8578 = vmatpush2.bf16.msra.mxu1 %v11451_v6 }
 0xa4a   : > { %v7670_v22 = vpop.f32.mrf.mxu1  ;;  %8579 = vmatprep.subr.bf16.mxu1 %v11459_v1 }
 0xa4c   : > { %v7672_v30 = vpop.f32.mrf.mxu1 }
 0xa4d   : > { %8580 = vmatpush2.bf16.msra.mxu1 %v11457_v9  ;;  %v7803_v9 = vld [vmem:[#allocation19] sm:$0xf] }
 0xa4e   : > { %v7673_v17 = vpop.f32.mrf.mxu1  ;;  %8581 = vmatprep.subr.bf16.mxu1 %v11465_v63  ;;  %v7812_v63 = vrot.slane %v7803_v9, %v12271_v25 }
 0xa50   : > { %v7627_v32 = vpop.f32.mrf.mxu0 }
 0xa51   : > { %v7628_v33 = vadd.f32 %v7627_v32, %v6899_v15  ;;  %8582 = vmatpush2.bf16.msra.mxu1 %v11463_v16 }
 0xa52   : > { %v7629_v35 = vpop.f32.mrf.mxu0 }
 0xa53   : > { %v7669_v36 = vadd.f32 %v7668_v40, %v7628_v33  ;;  %v7630_v34 = vadd.f32 %v7629_v35, %v6903_v31 }
 0xa54   : > { %v7631_v37 = vpop.f32.mrf.mxu0 }
 0xa55   : > { %v7671_v55 = vadd.f32 %v7670_v22, %v7630_v34  ;;  %v7677_v12 = vmax.f32 %v7669_v36, 0.0  ;;  %v7808_v22 = vrot.slane %v7803_v9, %v12277_v27 }
 0xa56   : > { %v7632_v39 = vpop.f32.mrf.mxu0 }
 0xa57   : > { %v7678_v41 = vmax.f32 %v7671_v55, 0.0  ;;  %v7681_v18 = vpack.c.bf16 %v7677_v12, %v7677_v12  ;;  %v7816_v55 = vrot.slane %v7803_v9, %v12280_v28  ;;  %v7820_v12 = vrot.slane %v7803_v9, %v12274_v26 }
 0xa59   : > { %v7682_v42 = vpack.c.bf16 %v7678_v41, %v7678_v41 }
 0xa5b   : > { %9798 = vmatprep.mubr.msk.bf16.mxu0 %vm570_vm0, %v7682_v42  ;;  %9799 = vmatprep.mubr.msk.bf16.mxu1 %vm570_vm0, %v7682_v42 }
 0xa5c   : > { %8502 = vmatmul.mubr.bf16.vlgmr.msra.gmra.mxu0 %v7681_v18  ;;  %8584 = vmatmul.mubr.bf16.vlgmr.msra.gmra.mxu1 %v7681_v18 }
 0xa5d   : > { %8511 = vmatpush1.bf16.msra.mxu0 %v11466_v43  ;;  %8542 = vmatprep.mubr.bf16.mxu0 %v13181_v49  ;;  %v11484_v49 = vld [vmem:[#allocation17 + $0x28] ss:$16 sps:$4 sm:$0xff]  }
 0xa5e   : > { %8512 = vmatprep.subr.bf16.mxu0 %v11471_v44 }
 0xa61   : > { %8513 = vmatpush1.bf16.msra.mxu0 %v11469_v24 }
 0xa62   : > { %8514 = vmatprep.subr.bf16.mxu0 %v11474_v45 }
 0xa65   : > { %8515 = vmatpush1.bf16.msra.mxu0 %v11472_v4 }
 0xa66   : > { %8516 = vmatprep.subr.bf16.mxu0 %v11477_v50 }
 0xa69   : > { %8517 = vmatpush1.bf16.msra.mxu0 %v11475_v51 }
 0xa6a   : > { %8518 = vmatprep.subr.bf16.mxu0 %v11480_v56 }
 0xa6d   : > { %8519 = vmatpush1.bf16.msra.mxu0 %v11478_v57 }
 0xa6e   : > { %8520 = vmatprep.subr.bf16.mxu0 %v11483_v58 }
 0xa71   : > { %8521 = vmatpush1.bf16.msra.mxu0 %v11481_v61 }
 0xa72   : > { %8522 = vmatprep.subr.bf16.mxu0 %v11486_v62 }
 0xa75   : > { %8523 = vmatpush1.bf16.msra.mxu0 %v11484_v49 }
 0xa76   : > { %8524 = vmatprep.subr.bf16.mxu0 %v11489_v13 }
 0xa79   : > { %8525 = vmatpush1.bf16.msra.mxu0 %v11487_v0 }
 0xa7a   : > { %8526 = vmatprep.subr.bf16.mxu0 %v11492_v3 }
 0xa7d   : > { %8527 = vmatpush2.bf16.msra.mxu0 %v11490_v59 }
 0xa7e   : > { %8528 = vmatprep.subr.bf16.mxu0 %v11495_v38 }
 0xa81   : > { %8529 = vmatpush2.bf16.msra.mxu0 %v11493_v48 }
 0xa82   : > { %8530 = vmatprep.subr.bf16.mxu0 %v11498_v7 }
 0xa85   : > { %8531 = vmatpush2.bf16.msra.mxu0 %v11496_v8 }
 0xa86   : > { %8532 = vmatprep.subr.bf16.mxu0 %v11501_v11 }
 0xa89   : > { %8533 = vmatpush2.bf16.msra.mxu0 %v11499_v53 }
 0xa8a   : > { %8534 = vmatprep.subr.bf16.mxu0 %v11504_v52 }
 0xa8d   : > { %8535 = vmatpush2.bf16.msra.mxu0 %v11502_v2 }
 0xa8e   : > { %8536 = vmatprep.subr.bf16.mxu0 %v11507_v23 }
 0xa91   : > { %8537 = vmatpush2.bf16.msra.mxu0 %v11505_v14 }
 0xa92   : > { %8538 = vmatprep.subr.bf16.mxu0 %v11510_v19 }
 0xa95   : > { %8539 = vmatpush2.bf16.msra.mxu0 %v11508_v46 }
 0xa96   : > { %8540 = vmatprep.subr.bf16.mxu0 %v11513_v47 }
 0xa99   : > { %8541 = vmatpush2.bf16.msra.mxu0 %v11511_v20 }
 0xa9c   : > { %8543 = vmatmul.mubr.bf16.vlgmr.msra.gmra.mxu0 %v13183_v54 }
 0xadc   : > { %v8462_v5 = vpop.f32.mrf.mxu1 }
 0xadd   : > { %v8463_v30 = vadd.f32 %v8462_v5, %v7808_v22 }
 0xade   : > { %v8464_v6 = vpop.f32.mrf.mxu1 }
 0xadf   : > { %v8465_v17 = vadd.f32 %v8464_v6, %v7812_v63 }
 0xae0   : > { %v8466_v1 = vpop.f32.mrf.mxu1 }
 0xae2   : > { %v8467_v40 = vpop.f32.mrf.mxu1 }
 0xb1c   : > { %v8503_v15 = vpop.f32.mrf.mxu0  ;;  %v8585_v16 = vpop.f32.mrf.mxu1 }
 0xb1d   : > { %v8504_v31 = vadd.f32 %v8503_v15, %v8463_v30 }
 0xb1e   : > { %v8505_v32 = vpop.f32.mrf.mxu0  ;;  %v8587_v33 = vpop.f32.mrf.mxu1 }
 0xb1f   : > { %v8592_v35 = vadd.f32 %v8504_v31, %v13119_v60  ;;  %v8506_v54 = vadd.f32 %v8505_v32, %v8465_v17 }
 0xb20   : > { %v8507_v36 = vpop.f32.mrf.mxu0  ;;  %v8589_v34 = vpop.f32.mrf.mxu1 }
 0xb21   : > { %8596 = vst [vmem:[%s560_s8] sm:$0xff] %v8592_v35  ;;  %v8593_v27 = vadd.f32 %v8506_v54, %v13116_v10 }
 0xb22   : > { %v8508_v37 = vpop.f32.mrf.mxu0  ;;  %v8590_v25 = vpop.f32.mrf.mxu1 }
 0xb23   : > { %8597 = vst [vmem:[%s560_s8 + $0x8] sm:$0xff] %v8593_v27 }
 0xb5c   : > { %v8544_v39 = vpop.f32.mrf.mxu0 }
 0xb5d   : > { %v8545_v41 = vadd.f32 %v8544_v39, %v7816_v55 }
 0xb5e   : > { %v8546_v60 = vpop.f32.mrf.mxu0 }
 0xb5f   : > { %v8586_v42 = vadd.f32 %v8585_v16, %v8545_v41  ;;  %v8547_v43 = vadd.f32 %v8546_v60, %v7820_v12 }
 0xb60   : > { %v8548_v18 = vpop.f32.mrf.mxu0 }
 0xb61   : > { %v8594_v44 = vadd.f32 %v8586_v42, %v13122_v21  ;;  %v8588_v10 = vadd.f32 %v8587_v33, %v8547_v43 }
 0xb62   : > { %v8549_v24 = vpop.f32.mrf.mxu0 }
 0xb63   : > { %8598 = vst [vmem:[%s560_s8 + $0x10] sm:$0xff] %v8594_v44  ;;  %v8595_v45 = vadd.f32 %v8588_v10, %v13127_v29 }
 0xb65   : > { %8599 = vst.msk [vmem:[%s560_s8 + $0x18] sm:$0xff] %vm570_vm0, %v8595_v45 }
 0xb66   : > { %11847 = shalt.err (!%p11844_p7)
}
 0xb67   : > { %s11848_s5 = scalar_lea.hbm %s8613_s19, 512  ;;  %s11852_s29 = scalar_lea.hbm %s13253_s12, 1024 }
 0xb68   : > { %p11849_p0 = scmp.ne.s32.totalorder %s8613_s19, %s11848_s5  ;;  %p11853_p8 = scmp.lt.s32.totalorder %s8613_s19, %s13253_s12 }
 0xb69   : > { %p11854_p9 = scmp.lt.s32.totalorder %s11852_s29, %s11848_s5 }
 0xb6a   : > { %p11850_p5 = pnand %p11849_p0, %p13295_p3 }
 0xb6b   : > { %p11855_p11 = por %p11854_p9, %p11853_p8 }
 0xb6c   : > { %p11851_p2 = pneg %p11850_p5 }
 0xb6e   : > { %p11856_p4 = pnand %p11855_p11, %p11851_p2 }
 0xb70   : > { %11859 = shalt.err (!%p11856_p4)
}
 0xb71   : > { %9945 = dma.vmem_to_hbm [thread:$0]  (%p13295_p3), %s8616_s20, 512, %s8613_s19, %s8601_s18  }
 0xb72 PF: > { %s8627_s8 = sand.u32 1, %s11906_s21   ;;  %p13296_p13 = scmp.ne.s32.totalorder %s13279_s26, 0 }
 0xb73   : > { %p13297_p6 = scmp.ge.s32.totalorder %s11918_s24, 2  ;;  %s8628_s1 = scalar_lea.sflag [#allocation4], %s8627_s8 }
 0xb75   : > { %p9983_p10 = pnand %p13297_p6, %p13296_p13 }
 0xb77   : > { %p9984_p12 = pneg %p9983_p10 }
 0xb79   : > { %11901 = dma.done.wait (%p9984_p12), %s8628_s1, 512  }
 0xb7a   : > { %11903 = vsyncadd (%p9984_p12), %s8628_s1, 4294966784  ;;  %p30_p1 = scmp.ge.s32.totalorder %s12134_s13, 4   ;;  %s13298_s21 = smov %s11910_s22 }
 0xb7b   : > { %s13299_s22 = smov %s11914_s23  ;;  %s13300_s23 = smov %s12145_s17 }
 0xb7c   : > { %s13301_s24 = smov %s12134_s13  ;;  %32 = sbr.rel (!%p30_p1) target bundleno = 18 (0x12), region = 153 }
 0xb81   :  { %8633 = vsyncpa [#allocation3], 1 }
 0xb82   :  { %8635 = vsyncpa [#allocation3 + $0x1], 1 }
 0xb83   :  { %8636 = vsyncpa [#allocation6], 1 }
 0xb84   :  { %8637 = vsyncpa [#allocation9], 1 }
 0xb85   :  { %8638 = vsyncpa [#allocation12], 1 }
 0xb86   :  { %8639 = vsyncpa [#allocation15], 1 }
 0xb87   :  { %8640 = vsyncpa [#allocation18], 1 }
 0xb88   :  { %8641 = vsyncpa [#allocation4], 1 }
 0xb89   :  { %8643 = vsyncpa [#allocation4 + $0x1], 1 }

</bundles_post_ra>
